<compile_context>
chip_gen: v7x
topology: tpu7x:2x2x1
jax: 0.10.0
libtpu: 0.0.40
codegen_flags: <defaults>
</compile_context>

<pallas_src>
import math
import functools
import numpy as np
import jax
import jax.numpy as jnp
from jax import lax
from jax.experimental import pallas as pl
from jax.experimental.pallas import tpu as pltpu


# ----------------------------------------------------------------------------
# Fused kernel: conv3x3+BN+ReLU -> {conv3x3 + 1x1 skip, fused BN, add} -> ReLU,
#               DCT pooling, 2-layer FC gate (sigmoid), channel rescale.
# One grid step processes `Nb` batch elements (folded into the matmul M dim).
# ----------------------------------------------------------------------------
def _scm_kernel(H, W, We_ext,
                a1_ref, xin_ref, mask_ref, w1_ref, s1_ref, b1_ref,
                w2c_ref, b2c_ref, dct_ref, fc1_ref, fc2_ref, o_ref):
    Nb, P2, K1 = a1_ref.shape
    He = H + 2
    Cm = w1_ref.shape[1]
    Cout = o_ref.shape[2]
    HW = H * W

    # ---- conv1: ONE K = 9*Cin bf16 matmul (f32 accumulation) + folded BN1 + ReLU.
    # The interior mask (zeroing the halo / padded columns of the extended domain so
    # conv2 sees exact SAME zero padding) is fused with the one-time bf16 cast.
    y1 = jnp.dot(a1_ref[...].reshape(Nb * P2, K1), w1_ref[...],
                 preferred_element_type=jnp.float32)
    y1 = jnp.maximum(y1 * s1_ref[...] + b1_ref[...], 0.0)
    y1 = (y1.reshape(Nb, P2, Cm) * mask_ref[...][None]).astype(jnp.bfloat16)
    y1e = y1.reshape(Nb, He, We_ext, Cm)                          # zero-padded y1 (bf16)

    # ---- conv2 + fused 1x1 skip: ONE K = 9*Cm + Cin contraction.
    # The wrapper pre-scaled w2 by the BN2 scale and wsk by the skip-BN scale and
    # appended wsk rows to the folded weight, so a single dot + single bias suffices.
    taps = [y1e[:, dh:dh + H, dw:dw + W, :] for dh in range(3) for dw in range(3)]
    slab = jnp.concatenate(taps + [xin_ref[...]], axis=-1)        # (Nb, H, W, 9*Cm+Cin)
    y2 = jnp.dot(slab.reshape(Nb * HW, slab.shape[-1]), w2c_ref[...],
                 preferred_element_type=jnp.float32)
    y = jnp.maximum(y2 + b2c_ref[...], 0.0).reshape(Nb, HW, Cout)  # residual output

    # ---- fused multi-spectral (DCT) channel attention: y never leaves VMEM.
    v = jnp.sum(y * dct_ref[...][None], axis=1)                    # (Nb, Cout) DCT "pool"
    z = jnp.maximum(jnp.dot(v, fc1_ref[...], preferred_element_type=jnp.float32), 0.0)
    s = jax.nn.sigmoid(jnp.dot(z, fc2_ref[...], preferred_element_type=jnp.float32))
    o_ref[...] = (y * s[:, None, :]).astype(o_ref.dtype)


def _num_tensorcores():
    """TensorCores per chip: 2 on v7x, 1 on v5e/v6e (and as a safe default)."""
    try:
        kind = jax.devices()[0].device_kind.lower()
    except Exception:
        return 1
    return 2 if "v7" in kind else 1


def _pick_nb(N, num_tc):
    # Single-TC chips (v5e/v6e): a "parallel" grid axis buys nothing and each extra grid
    # step costs ~0.35 us of pipeline overhead, so collapse to a single step.
    # On v7x keep at least `num_tc` grid steps so the batch axis can shard across cores.
    if num_tc <= 1:
        return N
    for cand in (8, 4, 2, 1):
        if N % cand == 0 and N // cand >= num_tc:
            return cand
    return N


# ----------------------------------------------------------------------------
# Wrapper
# ----------------------------------------------------------------------------
def scm_forward(x_nchw, p, nb=None):
    x = jnp.transpose(x_nchw, (0, 2, 3, 1)).astype(jnp.float32)    # NCHW -> NHWC
    N, H, W, Cin = x.shape
    Cm = p['w1'].shape[-1]
    Cout = p['w2'].shape[-1]
    Cr = p['fc1'].shape[-1]

    He = H + 2
    # Extend the conv1 output domain on W so He*We_ext is a multiple of 8 (sublane-
    # aligned conv1 M dim, clean reshapes).  Extra columns are zeroed by the interior
    # mask and never feed conv2.
    We_ext = W + 2
    while (He * We_ext) % 8:
        We_ext += 1
    P2 = He * We_ext
    HW = H * W
    K2 = 9 * Cm + Cin

    if nb is None:
        nb = _pick_nb(N, _num_tensorcores())
    assert N % nb == 0
    grid = (N // nb,)

    # conv1 im2col on the extended (He, We_ext) domain (2-px halo), bf16 operands.
    # NOTE(v5e): at production H/W/Cin this 9-tap im2col inflates conv1 HBM reads ~4.5x;
    # if that becomes bandwidth-bound, pass only the padded input and fold conv1 taps
    # in-kernel like conv2.  Negligible at 16x16x4.
    xp = jnp.pad(x, ((0, 0), (2, 2), (2, We_ext - W), (0, 0)))
    taps = [xp[:, dh:dh + He, dw:dw + We_ext, :] for dh in range(3) for dw in range(3)]
    a1 = jnp.concatenate(taps, axis=-1).reshape(N, P2, 9 * Cin).astype(jnp.bfloat16)
    xin = x.astype(jnp.bfloat16)                                   # skip-path operand

    # Interior (non-halo, non-padding) mask of the extended domain, built once.
    row = np.arange(He)[:, None]
    col = np.arange(We_ext)[None, :]
    mask = ((row >= 1) & (row <= H) & (col >= 1) & (col <= W)).astype(np.float32)
    mask = jnp.asarray(mask.reshape(P2, 1))

    # Fold conv1 weight; fold BN2 / skip-BN scales into the conv2 / skip weights and
    # fuse the 1x1 skip projection into the conv2 contraction (K = 9*Cm + Cin).
    w1f = p['w1'].reshape(9 * Cin, Cm).astype(jnp.bfloat16)
    w2c = jnp.concatenate([p['w2'].reshape(9 * Cm, Cout) * p['s2'],
                           p['wsk'] * p['ssk']], axis=0).astype(jnp.bfloat16)
    b2c = p['b2'] + p['bsk']
    dct2 = p['dct'].reshape(HW, Cout)

    kernel = functools.partial(_scm_kernel, H, W, We_ext)
    full = lambda shape: pl.BlockSpec(shape, lambda n, _s=len(shape): (0,) * _s)

    # Per-step VMEM footprint is well under 1 MiB at this size, far below the scoped
    # default on v5e/v6e/v7x.  If nb/H/W/Cout are scaled up, re-derive nb against v7x's
    # 64 MiB physical / 32 MiB scoped VMEM and set vmem_limit_bytes explicitly.
    out = pl.pallas_call(
        kernel,
        out_shape=jax.ShapeDtypeStruct((N, HW, Cout), jnp.float32),
        grid_spec=pltpu.PrefetchScalarGridSpec(
            num_scalar_prefetch=0,
            grid=grid,
            in_specs=[
                pl.BlockSpec((nb, P2, 9 * Cin), lambda n: (n, 0, 0)),
                pl.BlockSpec((nb, H, W, Cin), lambda n: (n, 0, 0, 0)),
                full((P2, 1)),
                full((9 * Cin, Cm)), full((1, Cm)), full((1, Cm)),
                full((K2, Cout)), full((1, Cout)),
                full((HW, Cout)),
                full((Cout, Cr)), full((Cr, Cout)),
            ],
            out_specs=pl.BlockSpec((nb, HW, Cout), lambda n: (n, 0, 0)),
        ),
        compiler_params=pltpu.CompilerParams(dimension_semantics=("parallel",)),
    )(a1, xin, mask, w1f, p['s1'], p['b1'], w2c, b2c, dct2, p['fc1'], p['fc2'])

    out = out.reshape(N, H, W, Cout)
    return jnp.transpose(out, (0, 3, 1, 2))                        # NHWC -> NCHW


# ----------------------------------------------------------------------------
# FcaNet DCT filter ('top16') and deterministic parameter construction
# ----------------------------------------------------------------------------
def get_freq_indices_top16():
    all_x = [0, 0, 6, 0, 0, 1, 1, 4, 5, 1, 3, 0, 0, 0, 3, 2]
    all_y = [0, 1, 0, 5, 2, 0, 2, 0, 0, 6, 0, 4, 6, 3, 5, 2]
    return all_x, all_y


def build_dct_filter(dct_h, dct_w, channel):
    mapper_x, mapper_y = get_freq_indices_top16()
    mapper_x = [u * (dct_h // 7) for u in mapper_x]
    mapper_y = [v * (dct_w // 7) for v in mapper_y]
    num_freq = len(mapper_x)
    c_part = channel // num_freq

    def basis(pos, freq, L):
        r = math.cos(math.pi * freq * (pos + 0.5) / L) / math.sqrt(L)
        return r if freq == 0 else r * math.sqrt(2)

    f = np.zeros((channel, dct_h, dct_w), dtype=np.float32)
    for i, (u, v) in enumerate(zip(mapper_x, mapper_y)):
        for tx in range(dct_h):
            for ty in range(dct_w):
                f[i * c_part:(i + 1) * c_part, tx, ty] = basis(tx, u, dct_h) * basis(ty, v, dct_w)
    return jnp.asarray(np.transpose(f, (1, 2, 0)))                 # (H, W, C) for NHWC


def make_params(key, in_c, out_c, dct_h, dct_w, reduction):
    ks = jax.random.split(key, 10)
    mid = out_c

    def bn_fold(k, c):
        gamma = 1.0 + 0.1 * jax.random.normal(k, (1, c), jnp.float32)
        beta = 0.05 * jax.random.normal(jax.random.fold_in(k, 1), (1, c), jnp.float32)
        mean = jnp.zeros((1, c), jnp.float32)      # eval-mode default running stats
        var = jnp.ones((1, c), jnp.float32)
        scale = gamma / jnp.sqrt(var + 1e-5)
        bias = beta - mean * scale
        return scale, bias

    s1, b1 = bn_fold(ks[3], mid)
    s2, b2 = bn_fold(ks[4], out_c)
    ssk, bsk = bn_fold(ks[5], out_c)
    return {
        'w1': 0.1 * jax.random.normal(ks[0], (3, 3, in_c, mid), jnp.float32),
        'w2': 0.1 * jax.random.normal(ks[1], (3, 3, mid, out_c), jnp.float32),
        'wsk': 0.1 * jax.random.normal(ks[2], (in_c, out_c), jnp.float32),
        's1': s1, 'b1': b1, 's2': s2, 'b2': b2, 'ssk': ssk, 'bsk': bsk,
        'fc1': 0.1 * jax.random.normal(ks[6], (out_c, out_c // reduction), jnp.float32),
        'fc2': 0.1 * jax.random.normal(ks[7], (out_c // reduction, out_c), jnp.float32),
        'dct': build_dct_filter(dct_h, dct_w, out_c),
    }


# ----------------------------------------------------------------------------
# Pure-JAX f32 reference (for numerical verification of the Pallas kernel)
# ----------------------------------------------------------------------------
def ref_forward(x_nchw, p):
    x = jnp.transpose(x_nchw, (0, 2, 3, 1)).astype(jnp.float32)
    dn = ('NHWC', 'HWIO', 'NHWC')
    y1 = lax.conv_general_dilated(x, p['w1'], (1, 1), 'SAME', dimension_numbers=dn)
    y1 = jnp.maximum(y1 * p['s1'] + p['b1'], 0.0)
    y2 = lax.conv_general_dilated(y1, p['w2'], (1, 1), 'SAME', dimension_numbers=dn)
    y2 = y2 * p['s2'] + p['b2']
    ysk = jnp.einsum('nhwc,cd->nhwd', x, p['wsk']) * p['ssk'] + p['bsk']
    y = jnp.maximum(y2 + ysk, 0.0)
    v = jnp.sum(y * p['dct'][None], axis=(1, 2))                   # (N, C)
    z = jnp.maximum(v @ p['fc1'], 0.0)
    s = jax.nn.sigmoid(z @ p['fc2'])
    out = y * s[:, None, None, :]
    return jnp.transpose(out, (0, 3, 1, 2))


if __name__ == "__main__":
    # SCM(in_channel=4, out_channel=32, dct_w=16, dct_h=16, reduction=4, hg_depth=2)
    N, C_IN, C_OUT, H, W = 2, 4, 32, 16, 16
    REDUCTION = 4

    key = jax.random.PRNGKey(0)
    kx, kp = jax.random.split(key)
    x = jax.random.normal(kx, (N, C_IN, H, W), jnp.float32)
    params = make_params(kp, C_IN, C_OUT, H, W, REDUCTION)

    out = jax.block_until_ready(jax.jit(scm_forward)(x, params))
    ref = jax.block_until_ready(ref_forward(x, params))

    assert out.shape == (N, C_OUT, H, W)
    # Conv matmul operands (activations + weights) are bf16 with f32 accumulation per the
    # v6e/v7x MXU guidance, so tolerance is 2e-2 against the pure-f32 reference.
    np.testing.assert_allclose(np.asarray(out), np.asarray(ref), rtol=2e-2, atol=2e-2)
    print("KERNEL_OK")
</pallas_src>

<mosaic_0001>
module attributes {stable_mosaic.version = 11 : i64} {
  func.func @_scm_kernel(%arg0: i32, %arg1: memref<2x360x36xbf16, #tpu.memory_space<vmem>>, %arg2: memref<2x16x16x4xbf16, #tpu.memory_space<vmem>>, %arg3: memref<360x1xf32, #tpu.memory_space<vmem>>, %arg4: memref<36x32xbf16, #tpu.memory_space<vmem>>, %arg5: memref<1x32xf32, #tpu.memory_space<vmem>>, %arg6: memref<1x32xf32, #tpu.memory_space<vmem>>, %arg7: memref<292x32xbf16, #tpu.memory_space<vmem>>, %arg8: memref<1x32xf32, #tpu.memory_space<vmem>>, %arg9: memref<256x32xf32, #tpu.memory_space<vmem>>, %arg10: memref<32x8xf32, #tpu.memory_space<vmem>>, %arg11: memref<8x32xf32, #tpu.memory_space<vmem>>, %arg12: memref<2x256x32xf32, #tpu.memory_space<vmem>>) attributes {dimension_semantics = [#tpu.dimension_semantics<parallel>], iteration_bounds = array<i64: 1>, scalar_prefetch = 0 : i64, scratch_operands = 0 : i64, tpu.core_type = #tpu.core_type<tc>, window_params = [{transform_indices = @transform_0, window_bounds = array<i64: 2, 360, 36>}, {transform_indices = @transform_1, window_bounds = array<i64: 2, 16, 16, 4>}, {pipeline_mode = #tpu.pipeline_mode<synchronous>, transform_indices = @transform_2, window_bounds = array<i64: 360, 1>}, {pipeline_mode = #tpu.pipeline_mode<synchronous>, transform_indices = @transform_3, window_bounds = array<i64: 36, 32>}, {pipeline_mode = #tpu.pipeline_mode<synchronous>, transform_indices = @transform_4, window_bounds = array<i64: 1, 32>}, {pipeline_mode = #tpu.pipeline_mode<synchronous>, transform_indices = @transform_5, window_bounds = array<i64: 1, 32>}, {pipeline_mode = #tpu.pipeline_mode<synchronous>, transform_indices = @transform_6, window_bounds = array<i64: 292, 32>}, {pipeline_mode = #tpu.pipeline_mode<synchronous>, transform_indices = @transform_7, window_bounds = array<i64: 1, 32>}, {pipeline_mode = #tpu.pipeline_mode<synchronous>, transform_indices = @transform_8, window_bounds = array<i64: 256, 32>}, {pipeline_mode = #tpu.pipeline_mode<synchronous>, transform_indices = @transform_9, window_bounds = array<i64: 32, 8>}, {pipeline_mode = #tpu.pipeline_mode<synchronous>, transform_indices = @transform_10, window_bounds = array<i64: 8, 32>}, {transform_indices = @transform_11, window_bounds = array<i64: 2, 256, 32>}]} {
    %c0 = arith.constant 0 : index
    %c0_0 = arith.constant 0 : index
    %c0_1 = arith.constant 0 : index
    %0 = vector.load %arg1[%c0, %c0_0, %c0_1] : memref<2x360x36xbf16, #tpu.memory_space<vmem>>, vector<2x360x36xbf16>
    %1 = vector.shape_cast %0 : vector<2x360x36xbf16> to vector<720x36xbf16>
    %c0_2 = arith.constant 0 : index
    %c0_3 = arith.constant 0 : index
    %2 = vector.load %arg4[%c0_2, %c0_3] : memref<36x32xbf16, #tpu.memory_space<vmem>>, vector<36x32xbf16>
    %cst = arith.constant dense<0.000000e+00> : vector<720x32xf32>
    %3 = tpu.matmul %1, %2, %cst {dimension_numbers = #tpu.dot_dimension_numbers<[1], [0], [0], [1], [0, 0, 1, 1], [], []>} : vector<720x36xbf16>, vector<36x32xbf16>, vector<720x32xf32> -> vector<720x32xf32>
    %c0_4 = arith.constant 0 : index
    %c0_5 = arith.constant 0 : index
    %4 = vector.load %arg5[%c0_4, %c0_5] : memref<1x32xf32, #tpu.memory_space<vmem>>, vector<1x32xf32>
    %5 = vector.broadcast %4 : vector<1x32xf32> to vector<720x32xf32>
    %6 = arith.mulf %3, %5 : vector<720x32xf32>
    %c0_6 = arith.constant 0 : index
    %c0_7 = arith.constant 0 : index
    %7 = vector.load %arg6[%c0_6, %c0_7] : memref<1x32xf32, #tpu.memory_space<vmem>>, vector<1x32xf32>
    %8 = vector.broadcast %7 : vector<1x32xf32> to vector<720x32xf32>
    %9 = arith.addf %6, %8 : vector<720x32xf32>
    %cst_8 = arith.constant 0.000000e+00 : f32
    %10 = vector.broadcast %cst_8 : f32 to vector<720x32xf32>
    %11 = arith.maximumf %9, %10 : vector<720x32xf32>
    %12 = vector.shape_cast %11 : vector<720x32xf32> to vector<2x360x32xf32>
    %c0_9 = arith.constant 0 : index
    %c0_10 = arith.constant 0 : index
    %13 = vector.load %arg3[%c0_9, %c0_10] : memref<360x1xf32, #tpu.memory_space<vmem>>, vector<360x1xf32>
    %14 = vector.shape_cast %13 : vector<360x1xf32> to vector<1x360x1xf32>
    %15 = vector.broadcast %14 : vector<1x360x1xf32> to vector<2x360x32xf32>
    %16 = arith.mulf %12, %15 : vector<2x360x32xf32>
    %17 = arith.truncf %16 : vector<2x360x32xf32> to vector<2x360x32xbf16>
    %18 = vector.shape_cast %17 : vector<2x360x32xbf16> to vector<2x18x20x32xbf16>
    %19 = vector.extract_strided_slice %18 {offsets = [0, 0, 0, 0], sizes = [2, 16, 16, 32], strides = [1, 1, 1, 1]} : vector<2x18x20x32xbf16> to vector<2x16x16x32xbf16>
    %20 = vector.extract_strided_slice %18 {offsets = [0, 0, 1, 0], sizes = [2, 16, 16, 32], strides = [1, 1, 1, 1]} : vector<2x18x20x32xbf16> to vector<2x16x16x32xbf16>
    %21 = vector.extract_strided_slice %18 {offsets = [0, 0, 2, 0], sizes = [2, 16, 16, 32], strides = [1, 1, 1, 1]} : vector<2x18x20x32xbf16> to vector<2x16x16x32xbf16>
    %22 = vector.extract_strided_slice %18 {offsets = [0, 1, 0, 0], sizes = [2, 16, 16, 32], strides = [1, 1, 1, 1]} : vector<2x18x20x32xbf16> to vector<2x16x16x32xbf16>
    %23 = vector.extract_strided_slice %18 {offsets = [0, 1, 1, 0], sizes = [2, 16, 16, 32], strides = [1, 1, 1, 1]} : vector<2x18x20x32xbf16> to vector<2x16x16x32xbf16>
    %24 = vector.extract_strided_slice %18 {offsets = [0, 1, 2, 0], sizes = [2, 16, 16, 32], strides = [1, 1, 1, 1]} : vector<2x18x20x32xbf16> to vector<2x16x16x32xbf16>
    %25 = vector.extract_strided_slice %18 {offsets = [0, 2, 0, 0], sizes = [2, 16, 16, 32], strides = [1, 1, 1, 1]} : vector<2x18x20x32xbf16> to vector<2x16x16x32xbf16>
    %26 = vector.extract_strided_slice %18 {offsets = [0, 2, 1, 0], sizes = [2, 16, 16, 32], strides = [1, 1, 1, 1]} : vector<2x18x20x32xbf16> to vector<2x16x16x32xbf16>
    %27 = vector.extract_strided_slice %18 {offsets = [0, 2, 2, 0], sizes = [2, 16, 16, 32], strides = [1, 1, 1, 1]} : vector<2x18x20x32xbf16> to vector<2x16x16x32xbf16>
    %c0_11 = arith.constant 0 : index
    %c0_12 = arith.constant 0 : index
    %c0_13 = arith.constant 0 : index
    %c0_14 = arith.constant 0 : index
    %28 = vector.load %arg2[%c0_11, %c0_12, %c0_13, %c0_14] : memref<2x16x16x4xbf16, #tpu.memory_space<vmem>>, vector<2x16x16x4xbf16>
    %29 = tpu.concatenate %19, %20, %21, %22, %23, %24, %25, %26, %27, %28 in 3 : vector<2x16x16x32xbf16>, vector<2x16x16x32xbf16>, vector<2x16x16x32xbf16>, vector<2x16x16x32xbf16>, vector<2x16x16x32xbf16>, vector<2x16x16x32xbf16>, vector<2x16x16x32xbf16>, vector<2x16x16x32xbf16>, vector<2x16x16x32xbf16>, vector<2x16x16x4xbf16> -> vector<2x16x16x292xbf16>
    %30 = vector.shape_cast %29 : vector<2x16x16x292xbf16> to vector<512x292xbf16>
    %c0_15 = arith.constant 0 : index
    %c0_16 = arith.constant 0 : index
    %31 = vector.load %arg7[%c0_15, %c0_16] : memref<292x32xbf16, #tpu.memory_space<vmem>>, vector<292x32xbf16>
    %cst_17 = arith.constant dense<0.000000e+00> : vector<512x32xf32>
    %32 = tpu.matmul %30, %31, %cst_17 {dimension_numbers = #tpu.dot_dimension_numbers<[1], [0], [0], [1], [0, 0, 1, 1], [], []>} : vector<512x292xbf16>, vector<292x32xbf16>, vector<512x32xf32> -> vector<512x32xf32>
    %c0_18 = arith.constant 0 : index
    %c0_19 = arith.constant 0 : index
    %33 = vector.load %arg8[%c0_18, %c0_19] : memref<1x32xf32, #tpu.memory_space<vmem>>, vector<1x32xf32>
    %34 = vector.broadcast %33 : vector<1x32xf32> to vector<512x32xf32>
    %35 = arith.addf %32, %34 : vector<512x32xf32>
    %cst_20 = arith.constant 0.000000e+00 : f32
    %36 = vector.broadcast %cst_20 : f32 to vector<512x32xf32>
    %37 = arith.maximumf %35, %36 : vector<512x32xf32>
    %38 = vector.shape_cast %37 : vector<512x32xf32> to vector<2x256x32xf32>
    %c0_21 = arith.constant 0 : index
    %c0_22 = arith.constant 0 : index
    %39 = vector.load %arg9[%c0_21, %c0_22] : memref<256x32xf32, #tpu.memory_space<vmem>>, vector<256x32xf32>
    %40 = vector.shape_cast %39 : vector<256x32xf32> to vector<1x256x32xf32>
    %41 = vector.broadcast %40 : vector<1x256x32xf32> to vector<2x256x32xf32>
    %42 = arith.mulf %38, %41 : vector<2x256x32xf32>
    %cst_23 = arith.constant dense<0.000000e+00> : vector<2x32xf32>
    %43 = vector.multi_reduction <add>, %42, %cst_23 [1] : vector<2x256x32xf32> to vector<2x32xf32>
    %c0_24 = arith.constant 0 : index
    %c0_25 = arith.constant 0 : index
    %44 = vector.load %arg10[%c0_24, %c0_25] : memref<32x8xf32, #tpu.memory_space<vmem>>, vector<32x8xf32>
    %cst_26 = arith.constant dense<0.000000e+00> : vector<2x8xf32>
    %45 = tpu.matmul %43, %44, %cst_26 {dimension_numbers = #tpu.dot_dimension_numbers<[1], [0], [0], [1], [0, 0, 1, 1], [], []>} : vector<2x32xf32>, vector<32x8xf32>, vector<2x8xf32> -> vector<2x8xf32>
    %cst_27 = arith.constant 0.000000e+00 : f32
    %46 = vector.broadcast %cst_27 : f32 to vector<2x8xf32>
    %47 = arith.maximumf %45, %46 : vector<2x8xf32>
    %c0_28 = arith.constant 0 : index
    %c0_29 = arith.constant 0 : index
    %48 = vector.load %arg11[%c0_28, %c0_29] : memref<8x32xf32, #tpu.memory_space<vmem>>, vector<8x32xf32>
    %cst_30 = arith.constant dense<0.000000e+00> : vector<2x32xf32>
    %49 = tpu.matmul %47, %48, %cst_30 {dimension_numbers = #tpu.dot_dimension_numbers<[1], [0], [0], [1], [0, 0, 1, 1], [], []>} : vector<2x8xf32>, vector<8x32xf32>, vector<2x32xf32> -> vector<2x32xf32>
    %50 = arith.negf %49 : vector<2x32xf32>
    %51 = math.exp %50 : vector<2x32xf32>
    %cst_31 = arith.constant 1.000000e+00 : f32
    %52 = vector.broadcast %cst_31 : f32 to vector<2x32xf32>
    %53 = arith.addf %52, %51 : vector<2x32xf32>
    %54 = arith.divf %52, %53 : vector<2x32xf32>
    %55 = vector.shape_cast %54 : vector<2x32xf32> to vector<2x1x32xf32>
    %56 = vector.broadcast %55 : vector<2x1x32xf32> to vector<2x256x32xf32>
    %57 = arith.mulf %38, %56 : vector<2x256x32xf32>
    %c0_32 = arith.constant 0 : index
    %c0_33 = arith.constant 0 : index
    %c0_34 = arith.constant 0 : index
    %58 = vector.load %arg12[%c0_32, %c0_33, %c0_34] : memref<2x256x32xf32, #tpu.memory_space<vmem>>, vector<2x256x32xf32>
    tpu.vector_store %arg12[%c0_32, %c0_33, %c0_34], %57 {strides = array<i32>} : memref<2x256x32xf32, #tpu.memory_space<vmem>>, vector<2x256x32xf32>,
    return
  }
  func.func @transform_0(%arg0: i32) -> (i32, i32, i32) {
    %c0_i32 = arith.constant 0 : i32
    %c0_i32_0 = arith.constant 0 : i32
    %c0_i32_1 = arith.constant 0 : i32
    return %arg0, %c0_i32, %c0_i32_0 : i32, i32, i32
  }
  func.func @transform_1(%arg0: i32) -> (i32, i32, i32, i32) {
    %c0_i32 = arith.constant 0 : i32
    %c0_i32_0 = arith.constant 0 : i32
    %c0_i32_1 = arith.constant 0 : i32
    %c0_i32_2 = arith.constant 0 : i32
    return %arg0, %c0_i32, %c0_i32_0, %c0_i32_1 : i32, i32, i32, i32
  }
  func.func @transform_2(%arg0: i32) -> (i32, i32) {
    %c0_i32 = arith.constant 0 : i32
    %c0_i32_0 = arith.constant 0 : i32
    %c0_i32_1 = arith.constant 0 : i32
    return %c0_i32, %c0_i32_0 : i32, i32
  }
  func.func @transform_3(%arg0: i32) -> (i32, i32) {
    %c0_i32 = arith.constant 0 : i32
    %c0_i32_0 = arith.constant 0 : i32
    %c0_i32_1 = arith.constant 0 : i32
    return %c0_i32, %c0_i32_0 : i32, i32
  }
  func.func @transform_4(%arg0: i32) -> (i32, i32) {
    %c0_i32 = arith.constant 0 : i32
    %c0_i32_0 = arith.constant 0 : i32
    %c0_i32_1 = arith.constant 0 : i32
    return %c0_i32, %c0_i32_0 : i32, i32
  }
  func.func @transform_5(%arg0: i32) -> (i32, i32) {
    %c0_i32 = arith.constant 0 : i32
    %c0_i32_0 = arith.constant 0 : i32
    %c0_i32_1 = arith.constant 0 : i32
    return %c0_i32, %c0_i32_0 : i32, i32
  }
  func.func @transform_6(%arg0: i32) -> (i32, i32) {
    %c0_i32 = arith.constant 0 : i32
    %c0_i32_0 = arith.constant 0 : i32
    %c0_i32_1 = arith.constant 0 : i32
    return %c0_i32, %c0_i32_0 : i32, i32
  }
  func.func @transform_7(%arg0: i32) -> (i32, i32) {
    %c0_i32 = arith.constant 0 : i32
    %c0_i32_0 = arith.constant 0 : i32
    %c0_i32_1 = arith.constant 0 : i32
    return %c0_i32, %c0_i32_0 : i32, i32
  }
  func.func @transform_8(%arg0: i32) -> (i32, i32) {
    %c0_i32 = arith.constant 0 : i32
    %c0_i32_0 = arith.constant 0 : i32
    %c0_i32_1 = arith.constant 0 : i32
    return %c0_i32, %c0_i32_0 : i32, i32
  }
  func.func @transform_9(%arg0: i32) -> (i32, i32) {
    %c0_i32 = arith.constant 0 : i32
    %c0_i32_0 = arith.constant 0 : i32
    %c0_i32_1 = arith.constant 0 : i32
    return %c0_i32, %c0_i32_0 : i32, i32
  }
  func.func @transform_10(%arg0: i32) -> (i32, i32) {
    %c0_i32 = arith.constant 0 : i32
    %c0_i32_0 = arith.constant 0 : i32
    %c0_i32_1 = arith.constant 0 : i32
    return %c0_i32, %c0_i32_0 : i32, i32
  }
  func.func @transform_11(%arg0: i32) -> (i32, i32, i32) {
    %c0_i32 = arith.constant 0 : i32
    %c0_i32_0 = arith.constant 0 : i32
    %c0_i32_1 = arith.constant 0 : i32
    return %arg0, %c0_i32, %c0_i32_0 : i32, i32, i32
  }
}

</mosaic_0001>

<bundles_post_ra>
// kernel: scm_forward.1
= control target key start
LH: loop header
LB: loop body
LE: loop exit
PB: predicated region body
PF: predicated region fallthrough
CT: control target
= control target key end

     0   :  { %v11087_v1 = vmov 0.0   ;;  %vm7277_vm0 = vmmov 0   ;;  %vm511_vm1 = vcmask 1041408   ;;  %v11085_v4 = vmov 0   ;;  %s11073_s0 = inlined_call_operand.vmem [shape: bf16[2,360,36], index: 0, kind: input, shape index: {}]   ;;  %s11074_s1 = inlined_call_operand.vmem [shape: bf16[2,16,16,4], index: 1, kind: input, shape index: {}]   ;;  %s11075_s2 = inlined_call_operand.vmem [shape: f32[360,1], index: 2, kind: input, shape index: {}]   ;;  %s11076_s3 = inlined_call_operand.vmem [shape: bf16[36,32], index: 3, kind: input, shape index: {}]   ;;  %s11077_s4 = inlined_call_operand.vmem [shape: f32[1,32], index: 4, kind: input, shape index: {}]   ;;  %s11078_s5 = inlined_call_operand.vmem [shape: f32[1,32], index: 5, kind: input, shape index: {}]   ;;  %s11079_s6 = inlined_call_operand.vmem [shape: bf16[292,32], index: 6, kind: input, shape index: {}]   ;;  %s11080_s7 = inlined_call_operand.vmem [shape: f32[1,32], index: 7, kind: input, shape index: {}]   ;;  %s11081_s8 = inlined_call_operand.vmem [shape: f32[256,32], index: 8, kind: input, shape index: {}]   ;;  %s11082_s9 = inlined_call_operand.vmem [shape: f32[32,8], index: 9, kind: input, shape index: {}]   ;;  %s11083_s10 = inlined_call_operand.vmem [shape: f32[8,32], index: 10, kind: input, shape index: {}]   ;;  %s11084_s11 = inlined_call_operand.hbm [shape: f32[2,256,32], index: 11, kind: output, shape index: {}]  }
   0x1   :  { %v7143_v0 = vld [vmem:[%s11076_s3] sm:$0xff]   ;;  %6818 = vmatprep.subr.bf16.mxu0 %v11087_v1  ;;  %v7144_v2 = vld [vmem:[%s11076_s3 + $0x8] sm:$0xff]   ;;  %v7145_v3 = vld [vmem:[%s11076_s3 + $0x10] ss:$0 sps:$4 sm:$0x33]   ;;  %6824 = vmatprep.mubr.msk.bf16.mxu0 %vm7277_vm0, %v11087_v1  ;;  %vm375_vm2 = vcmask 293888  }
   0x2   :  { %6819 = vmatpush3.bf16.msra.mxu0 %v7143_v0  ;;  %7141 = vset.pattern.permute.xlu0 %v11085_v4  ;;  %v1202_v5 = vld [vmem:[%s11075_s2 + $0x50] sm:$0xff]  ;;  %v1207_v6 = vld [vmem:[%s11075_s2 + $0x78] sm:$0xff]  ;;  %v513_v7 = vsel %vm511_vm1, %v7145_v3, 0  ;;  %v7146_v9 = vld [vmem:[%s11073_s0] sm:$0xff]  }
   0x3   :  { %6820 = vmatprep.subr.bf16.mxu0 %v11087_v1  ;;  %1289 = vperm.xlu0 %7141, %v1202_v5   ;;  %v1203_v8 = vld [vmem:[%s11075_s2 + $0x58] sm:$0xff]  ;;  %v1208_v10 = vld [vmem:[%s11075_s2 + $0x80] sm:$0xff]  ;;  %v1209_v11 = vld [vmem:[%s11075_s2 + $0x88] sm:$0xff] }
   0x4   :  { %7142 = vset.pattern.permute.xlu1 %v11085_v4  ;;  %7096 = vmatprep.subr.bf16.mxu1 %v11085_v4  ;;  %v1204_v12 = vld [vmem:[%s11075_s2 + $0x60] sm:$0xff]  ;;  %v1205_v13 = vld [vmem:[%s11075_s2 + $0x68] sm:$0xff]  ;;  %v1206_v15 = vld [vmem:[%s11075_s2 + $0x70] sm:$0xff] }
   0x5   :  { %1314 = vperm.xlu1 %7142, %v1207_v6   ;;  %v7147_v14 = vld [vmem:[%s11073_s0 + $0x8] sm:$0xff]   ;;  %v1210_v16 = vld [vmem:[%s11075_s2 + $0x90] sm:$0xff]  ;;  %v1211_v17 = vld [vmem:[%s11075_s2 + $0x98] sm:$0xff] }
   0x6   :  { %6821 = vmatpush3.bf16.msra.mxu0 %v7144_v2  ;;  %v1212_v18 = vld [vmem:[%s11075_s2 + $0xa0] sm:$0xff]  ;;  %v7148_v19 = vld [vmem:[%s11073_s0 + $0x10] sm:$0xff]   ;;  %v1213_v20 = vld [vmem:[%s11075_s2 + $0xa8] sm:$0xff] }
   0x7   :  { %6822 = vmatprep.subr.bf16.mxu0 %v11087_v1  ;;  %1294 = vperm.xlu0 %7141, %v1203_v8   ;;  %v1214_v21 = vld [vmem:[%s11075_s2 + $0xb0] sm:$0xff]  ;;  %v1215_v22 = vld [vmem:[%s11075_s2 + $0xb8] sm:$0xff]  ;;  %v1216_v23 = vld [vmem:[%s11075_s2 + $0xc0] sm:$0xff] }
   0x8   :  { %v7149_v24 = vld [vmem:[%s11073_s0 + $0x18] sm:$0xff]   ;;  %v1217_v25 = vld [vmem:[%s11075_s2 + $0xc8] sm:$0xff]  ;;  %v1218_v26 = vld [vmem:[%s11075_s2 + $0xd0] sm:$0xff] }
   0x9   :  { %1319 = vperm.xlu1 %7142, %v1208_v10   ;;  %v1219_v27 = vld [vmem:[%s11075_s2 + $0xd8] sm:$0xff]  ;;  %v7150_v28 = vld [vmem:[%s11073_s0 + $0x20] sm:$0xff]   ;;  %v1221_v30 = vld [vmem:[%s11075_s2 + $0xe8] sm:$0xff] }
   0xa   :  { %6823 = vmatpush3.bf16.msra.mxu0 %v513_v7  ;;  %v1220_v29 = vld [vmem:[%s11075_s2 + $0xe0] sm:$0xff]  ;;  %v1222_v31 = vld [vmem:[%s11075_s2 + $0xf0] sm:$0xff]  ;;  %v1223_v32 = vld [vmem:[%s11075_s2 + $0xf8] sm:$0xff] }
   0xb   :  { %5287 = vmatprep.subr.bf16.mxu0 %v11085_v4  ;;  %1324 = vperm.xlu0 %7141, %v1209_v11   ;;  %v1224_v33 = vld [vmem:[%s11075_s2 + $0x100] sm:$0xff]  ;;  %v7151_v34 = vld [vmem:[%s11073_s0 + $0x28] sm:$0xff]   ;;  %v1226_v36 = vld [vmem:[%s11075_s2 + $0x110] sm:$0xff] }
   0xc   :  { %v1225_v35 = vld [vmem:[%s11075_s2 + $0x108] sm:$0xff]  ;;  %v1227_v37 = vld [vmem:[%s11075_s2 + $0x118] sm:$0xff]  ;;  %v1228_v38 = vld [vmem:[%s11075_s2 + $0x120] sm:$0xff] }
   0xd   :  { %6825 = vmatmul.mubr.msk.bf16.vlgmr.msra.gmra.mrb[0].mxu0 %vm375_vm2, %v7146_v9  ;;  %1299 = vperm.xlu1 %7142, %v1204_v12   ;;  %v7152_v39 = vld [vmem:[%s11073_s0 + $0x30] sm:$0xff]   ;;  %v1229_v40 = vld [vmem:[%s11075_s2 + $0x128] sm:$0xff]  ;;  %v1231_v42 = vld [vmem:[%s11075_s2 + $0x138] sm:$0xff] }
   0xe   :  { %6828 = vmatprep.mubr.msk.bf16.mxu0 %vm7277_vm0, %v11087_v1  ;;  %v1230_v41 = vld [vmem:[%s11075_s2 + $0x130] sm:$0xff]  ;;  %v1232_v43 = vld [vmem:[%s11075_s2 + $0x140] sm:$0xff]  ;;  %v7153_v44 = vld [vmem:[%s11073_s0 + $0x38] sm:$0xff]  }
   0xf   :  { %1304 = vperm.xlu0 %7141, %v1205_v13   ;;  %v1233_v45 = vld [vmem:[%s11075_s2 + $0x148] sm:$0xff]  ;;  %v1234_v46 = vld [vmem:[%s11075_s2 + $0x150] sm:$0xff]  ;;  %v1235_v47 = vld [vmem:[%s11075_s2 + $0x158] sm:$0xff] }
  0x10   :  { %v1236_v48 = vld [vmem:[%s11075_s2 + $0x160] sm:$0xff]  ;;  %v1193_v50 = vld [vmem:[%s11075_s2 + $0x8] sm:$0xff]  ;;  %v1198_v53 = vld [vmem:[%s11075_s2 + $0x30] sm:$0xff] }
  0x11   :  { %1309 = vperm.xlu1 %7142, %v1206_v15   ;;  %v7154_v49 = vld [vmem:[%s11073_s0 + $0x40] sm:$0xff]   ;;  %v1197_v52 = vld [vmem:[%s11075_s2 + $0x28] sm:$0xff]  ;;  %v1199_v55 = vld [vmem:[%s11075_s2 + $0x38] sm:$0xff] }
  0x12   :  { %v1192_v51 = vld [vmem:[%s11075_s2] sm:$0xff]  ;;  %v7155_v54 = vld [vmem:[%s11073_s0 + $0x48] sm:$0xff]   ;;  %v1194_v56 = vld [vmem:[%s11075_s2 + $0x10] sm:$0xff] }
  0x13   :  { %1329 = vperm.xlu0 %7141, %v1210_v16   ;;  %v1195_v57 = vld [vmem:[%s11075_s2 + $0x18] sm:$0xff]  ;;  %v1196_v58 = vld [vmem:[%s11075_s2 + $0x20] sm:$0xff]  ;;  %v7156_v59 = vld [vmem:[%s11073_s0 + $0x50] sm:$0xff]  }
  0x14   :  { %v1200_v60 = vld [vmem:[%s11075_s2 + $0x40] sm:$0xff] }
  0x15   :  { %6829 = vmatmul.mubr.msk.bf16.gmra.mrb[4].mxu0 %vm375_vm2, %v7147_v14  ;;  %1334 = vperm.xlu1 %7142, %v1211_v17  }
  0x16   :  { %6832 = vmatprep.mubr.msk.bf16.mxu0 %vm7277_vm0, %v11087_v1 }
  0x17   :  { %1339 = vperm.xlu0 %7141, %v1212_v18  }
  0x19   :  { %1344 = vperm.xlu1 %7142, %v1213_v20  }
  0x1b   :  { %1349 = vperm.xlu0 %7141, %v1214_v21  }
  0x1d   :  { %6833 = vmatmul.mubr.msk.bf16.gmra.mrb[8].mxu0 %vm375_vm2, %v7148_v19  ;;  %1354 = vperm.xlu1 %7142, %v1215_v22  }
  0x1e   :  { %6836 = vmatprep.mubr.msk.bf16.mxu0 %vm7277_vm0, %v11087_v1 }
  0x1f   :  { %1359 = vperm.xlu0 %7141, %v1216_v23  }
  0x21   :  { %1364 = vperm.xlu1 %7142, %v1217_v25  }
  0x23   :  { %1369 = vperm.xlu0 %7141, %v1218_v26  }
  0x25   :  { %6837 = vmatmul.mubr.msk.bf16.gmra.mrb[12].mxu0 %vm375_vm2, %v7149_v24  ;;  %1374 = vperm.xlu1 %7142, %v1219_v27  }
  0x26   :  { %6840 = vmatprep.mubr.msk.bf16.mxu0 %vm7277_vm0, %v11087_v1 }
  0x27   :  { %1379 = vperm.xlu0 %7141, %v1220_v29  }
  0x29   :  { %1384 = vperm.xlu1 %7142, %v1221_v30  }
  0x2b   :  { %1389 = vperm.xlu0 %7141, %v1222_v31  }
  0x2d   :  { %6841 = vmatmul.mubr.msk.bf16.gmra.mrb[16].mxu0 %vm375_vm2, %v7150_v28  ;;  %1394 = vperm.xlu1 %7142, %v1223_v32  }
  0x2e   :  { %6844 = vmatprep.mubr.msk.bf16.mxu0 %vm7277_vm0, %v11087_v1 }
  0x2f   :  { %1399 = vperm.xlu0 %7141, %v1224_v33  }
  0x31   :  { %1404 = vperm.xlu1 %7142, %v1225_v35  }
  0x33   :  { %1409 = vperm.xlu0 %7141, %v1226_v36  }
  0x35   :  { %6845 = vmatmul.mubr.msk.bf16.gmra.mrb[20].mxu0 %vm375_vm2, %v7151_v34  ;;  %1414 = vperm.xlu1 %7142, %v1227_v37  }
  0x36   :  { %6848 = vmatprep.mubr.msk.bf16.mxu0 %vm7277_vm0, %v11087_v1 }
  0x37   :  { %1419 = vperm.xlu0 %7141, %v1228_v38  }
  0x39   :  { %1424 = vperm.xlu1 %7142, %v1229_v40  }
  0x3b   :  { %1429 = vperm.xlu0 %7141, %v1230_v41  }
  0x3d   :  { %6849 = vmatmul.mubr.msk.bf16.gmra.mrb[24].mxu0 %vm375_vm2, %v7152_v39  ;;  %1434 = vperm.xlu1 %7142, %v1231_v42  }
  0x3e   :  { %6852 = vmatprep.mubr.msk.bf16.mxu0 %vm7277_vm0, %v11087_v1 }
  0x3f   :  { %1439 = vperm.xlu0 %7141, %v1232_v43  }
  0x41   :  { %1444 = vperm.xlu1 %7142, %v1233_v45  }
  0x43   :  { %1449 = vperm.xlu0 %7141, %v1234_v46  }
  0x45   :  { %6853 = vmatmul.mubr.msk.bf16.gmra.mrb[28].mxu0 %vm375_vm2, %v7153_v44  ;;  %1454 = vperm.xlu1 %7142, %v1235_v47  }
  0x46   :  { %6856 = vmatprep.mubr.msk.bf16.mxu0 %vm7277_vm0, %v11087_v1 }
  0x47   :  { %1459 = vperm.xlu0 %7141, %v1236_v48  }
  0x49   :  { %1244 = vperm.xlu1 %7142, %v1193_v50  }
  0x4b   :  { %1239 = vperm.xlu0 %7141, %v1192_v51  }
  0x4d   :  { %6857 = vmatmul.mubr.msk.bf16.gmra.mrb[32].mxu0 %vm375_vm2, %v7154_v49  ;;  %1264 = vperm.xlu1 %7142, %v1197_v52  }
  0x4e   :  { %6860 = vmatprep.mubr.msk.bf16.mxu0 %vm7277_vm0, %v11087_v1 }
  0x4f   :  { %1269 = vperm.xlu0 %7141, %v1198_v53  }
  0x51   :  { %1274 = vperm.xlu1 %7142, %v1199_v55  }
  0x53   :  { %1249 = vperm.xlu0 %7141, %v1194_v56  }
  0x55   :  { %6861 = vmatmul.mubr.msk.bf16.gmra.mrb[36].mxu0 %vm375_vm2, %v7155_v54  ;;  %1254 = vperm.xlu1 %7142, %v1195_v57  }
  0x56   :  { %6864 = vmatprep.mubr.msk.bf16.mxu0 %vm7277_vm0, %v11087_v1 }
  0x57   :  { %1259 = vperm.xlu0 %7141, %v1196_v58  }
  0x58   :  { %16 = vsyncpa [#allocation3], 0  ;;  %v1201_v61 = vld [vmem:[%s11075_s2 + $0x48] sm:$0xff]  ;;  %v7165_v62 = vld [vmem:[%s11074_s1] sm:$0xff]   ;;  %s7279_s2 = smov 32   ;;  %vm3689_vm3 = vcmask 1046528  }
  0x59   :  { %1279 = vperm.xlu1 %7142, %v1200_v60   ;;  %v7167_v63 = vld [vmem:[%s11074_s1 + $0x8] sm:$0xff]   ;;  %v7157_v0 = vld [vmem:[%s11073_s0 + $0x58] sm:$0xff]   ;;  %v7158_v2 = vld [vmem:[%s11073_s0 + $0x60] sm:$0xff]   ;;  %s7281_s13 = smov 64   ;;  %vm3240_vm4 = vsmask.f32 7424 }
  0x5a   :  { %v7159_v3 = vld [vmem:[%s11073_s0 + $0x68] sm:$0xff]   ;;  %v7160_v5 = vld [vmem:[%s11073_s0 + $0x70] sm:$0xff]   ;;  %v7161_v6 = vld [vmem:[%s11073_s0 + $0x78] sm:$0xff]   ;;  %s7282_s20 = smov 96   ;;  %vm4486_vm5 = vcmask 261120   ;;  %vm4551_vm6 = vcmask 523264  }
  0x5b   :  { %1284 = vperm.xlu0 %7141, %v1201_v61   ;;  %v7162_v9 = vld [vmem:[%s11073_s0 + $0x80] sm:$0xff]   ;;  %v7163_v14 = vld [vmem:[%s11073_s0 + $0x88] sm:$0xff]   ;;  %v7164_v19 = vld [vmem:[%s11073_s0 + $0x90] sm:$0xff]   ;;  %v1648_v61 = vlaneseq  ;;  %vm4616_vm7 = vcmask 785408   ;;  %vm6169_vm8 = vcmask 1041409   ;;  %vm6245_vm9 = vcmask 64512  }
  0x5c   :  { %v7166_v24 = vld [vmem:[%s11073_s0 + $0x98] sm:$0xff]   ;;  %v7168_v29 = vld [vmem:[%s11073_s0 + $0xa0] sm:$0xff]   ;;  %v7169_v32 = vld [vmem:[%s11073_s0 + $0xa8] sm:$0xff]  }
  0x5d   :  { %6865 = vmatmul.mubr.msk.bf16.gmra.mrb[40].mxu0 %vm375_vm2, %v7156_v59  ;;  %4422 = vrot.lane.b32.xlu1 %v7165_v62, %s7279_s2  ;;  %v7170_v37 = vld [vmem:[%s11073_s0 + $0xb0] sm:$0xff]   ;;  %v7171_v40 = vld [vmem:[%s11073_s0 + $0xb8] sm:$0xff]   ;;  %v7172_v43 = vld [vmem:[%s11073_s0 + $0xc0] sm:$0xff]   ;;  %v7280_v59 = vmov 1983009808  }
  0x5e   :  { %6868 = vmatprep.mubr.msk.bf16.mxu0 %vm7277_vm0, %v11087_v1  ;;  %v7173_v48 = vld [vmem:[%s11073_s0 + $0xc8] sm:$0xff]   ;;  %v7174_v51 = vld [vmem:[%s11073_s0 + $0xd0] sm:$0xff]   ;;  %v7745_v54 = vld [vmem:[%s11077_s4] ss:$0 sm:$0xff]  ;;  %v1646_v60 = vunpack.c.l.s4 %v7280_v59 }
  0x5f   :  { %4424 = vrot.lane.b32.xlu0 %v7167_v63, %s7279_s2  ;;  %v7752_v56 = vld [vmem:[%s11078_s5] ss:$0 sm:$0xff]  ;;  %v7175_v62 = vld [vmem:[%s11073_s0 + $0xd8] sm:$0xff]  }
  0x65   :  { %6869 = vmatmul.mubr.msk.bf16.gmra.mrb[44].mxu0 %vm375_vm2, %v7157_v0 }
  0x66   :  { %6872 = vmatprep.mubr.msk.bf16.mxu0 %vm7277_vm0, %v11087_v1 }
  0x6d   :  { %6873 = vmatmul.mubr.msk.bf16.gmra.mrb[48].mxu0 %vm375_vm2, %v7158_v2 }
  0x6e   :  { %6876 = vmatprep.mubr.msk.bf16.mxu0 %vm7277_vm0, %v11087_v1 }
  0x75   :  { %6877 = vmatmul.mubr.msk.bf16.gmra.mrb[52].mxu0 %vm375_vm2, %v7159_v3 }
  0x76   :  { %6880 = vmatprep.mubr.msk.bf16.mxu0 %vm7277_vm0, %v11087_v1 }
  0x7d   :  { %6881 = vmatmul.mubr.msk.bf16.gmra.mrb[56].mxu0 %vm375_vm2, %v7160_v5 }
  0x7e   :  { %6884 = vmatprep.mubr.msk.bf16.mxu0 %vm7277_vm0, %v11087_v1 }
  0x82   :  { %v7606_v7 = vpop.permute.xlu0 %1289 }
  0x83   :  { %11233 = vst [vmem:[#allocation5_spill] sm:$0xff] %v7606_v7 }
  0x84   :  { %v7608_v8 = vpop.permute.xlu1 %1314 }
  0x85   :  { %6885 = vmatmul.mubr.msk.bf16.gmra.mrb[60].mxu0 %vm375_vm2, %v7161_v6  ;;  %11234 = vst [vmem:[#allocation6_spill] sm:$0xff] %v7608_v8 }
  0x86   :  { %6888 = vmatprep.mubr.msk.bf16.mxu0 %vm7277_vm0, %v11087_v1  ;;  %v7613_v10 = vpop.permute.xlu0 %1294 }
  0x87   :  { %11235 = vst [vmem:[#allocation7_spill] sm:$0xff] %v7613_v10 }
  0x88   :  { %v7615_v11 = vpop.permute.xlu1 %1319 }
  0x8a   :  { %v7620_v12 = vpop.permute.xlu0 %1324 }
  0x8b   :  { %11236 = vst [vmem:[#allocation8_spill] sm:$0xff] %v7620_v12 }
  0x8c   :  { %v7622_v13 = vpop.permute.xlu1 %1299 }
  0x8d   :  { %6889 = vmatmul.mubr.msk.bf16.gmra.mrb[64].mxu0 %vm375_vm2, %v7162_v9  ;;  %11237 = vst [vmem:[#allocation9_spill] sm:$0xff] %v7622_v13 }
  0x8e   :  { %6892 = vmatprep.mubr.msk.bf16.mxu0 %vm7277_vm0, %v11087_v1  ;;  %v7627_v15 = vpop.permute.xlu0 %1304 }
  0x8f   :  { %11238 = vst [vmem:[#allocation10_spill] sm:$0xff] %v7627_v15 }
  0x90   :  { %v7629_v16 = vpop.permute.xlu1 %1309 }
  0x91   :  { %11239 = vst [vmem:[#allocation11_spill] sm:$0xff] %v7629_v16 }
  0x92   :  { %v7634_v17 = vpop.permute.xlu0 %1329 }
  0x93   :  { %11240 = vst [vmem:[#allocation12_spill] sm:$0xff] %v7634_v17 }
  0x94   :  { %v7636_v18 = vpop.permute.xlu1 %1334 }
  0x95   :  { %6893 = vmatmul.mubr.msk.bf16.gmra.mrb[68].mxu0 %vm375_vm2, %v7163_v14  ;;  %11241 = vst [vmem:[#allocation13_spill] sm:$0xff] %v7636_v18 }
  0x96   :  { %6896 = vmatprep.mubr.msk.bf16.mxu0 %vm7277_vm0, %v11087_v1  ;;  %v7641_v20 = vpop.permute.xlu0 %1339 }
  0x97   :  { %11242 = vst [vmem:[#allocation14_spill] sm:$0xff] %v7641_v20 }
  0x98   :  { %v7643_v21 = vpop.permute.xlu1 %1344 }
  0x99   :  { %11243 = vst [vmem:[#allocation15_spill] sm:$0xff] %v7643_v21 }
  0x9a   :  { %v7648_v22 = vpop.permute.xlu0 %1349 }
  0x9c   :  { %v7650_v23 = vpop.permute.xlu1 %1354 }
  0x9d   :  { %6897 = vmatmul.mubr.msk.bf16.gmra.mrb[72].mxu0 %vm375_vm2, %v7164_v19  ;;  %v1647_v19 = vunpack.c.0.s8 %v1646_v60 }
  0x9e   :  { %6900 = vmatprep.mubr.msk.bf16.mxu0 %vm7277_vm0, %v11087_v1  ;;  %v7655_v25 = vpop.permute.xlu0 %1359 }
  0xa0   :  { %v7657_v26 = vpop.permute.xlu1 %1364 }
  0xa1   :  { %11244 = vst [vmem:[#allocation16_spill] sm:$0xff] %v7657_v26 }
  0xa2   :  { %v7662_v27 = vpop.permute.xlu0 %1369 }
  0xa3   :  { %11245 = vst [vmem:[#allocation17_spill] sm:$0xff] %v7662_v27 }
  0xa4   :  { %v7664_v28 = vpop.permute.xlu1 %1374 }
  0xa5   :  { %6901 = vmatmul.mubr.msk.bf16.gmra.mrb[76].mxu0 %vm375_vm2, %v7166_v24  ;;  %11246 = vst [vmem:[#allocation18_spill] sm:$0xff] %v7664_v28  ;;  %v7765_v24 = vshrl.u32 %v1648_v61, 7 }
  0xa6   :  { %6904 = vmatprep.mubr.msk.bf16.mxu0 %vm7277_vm0, %v11087_v1  ;;  %v7669_v30 = vpop.permute.xlu0 %1379 }
  0xa7   :  { %11264 = vst [vmem:[#allocation36_spill] sm:$0xff] %v7765_v24 }
  0xa8   :  { %v7671_v31 = vpop.permute.xlu1 %1384 }
  0xa9   :  { %11247 = vst [vmem:[#allocation19_spill] sm:$0xff] %v7671_v31 }
  0xaa   :  { %v7679_v33 = vpop.permute.xlu0 %1389 }
  0xab   :  { %11248 = vst [vmem:[#allocation20_spill] sm:$0xff] %v7679_v33 }
  0xac   :  { %v7681_v34 = vpop.permute.xlu1 %1394 }
  0xad   :  { %6905 = vmatmul.mubr.msk.bf16.gmra.mrb[80].mxu0 %vm375_vm2, %v7168_v29  ;;  %11249 = vst [vmem:[#allocation21_spill] sm:$0xff] %v7681_v34 }
  0xae   :  { %6908 = vmatprep.mubr.msk.bf16.mxu0 %vm7277_vm0, %v11087_v1  ;;  %v7686_v35 = vpop.permute.xlu0 %1399 }
  0xaf   :  { %11250 = vst [vmem:[#allocation22_spill] sm:$0xff] %v7686_v35 }
  0xb0   :  { %v7688_v36 = vpop.permute.xlu1 %1404 }
  0xb1   :  { %11251 = vst [vmem:[#allocation23_spill] sm:$0xff] %v7688_v36 }
  0xb2   :  { %v7694_v38 = vpop.permute.xlu0 %1409 }
  0xb3   :  { %11252 = vst [vmem:[#allocation24_spill] sm:$0xff] %v7694_v38 }
  0xb4   :  { %v7698_v39 = vpop.permute.xlu1 %1414 }
  0xb5   :  { %6909 = vmatmul.mubr.msk.bf16.gmra.mrb[84].mxu0 %vm375_vm2, %v7169_v32  ;;  %11253 = vst [vmem:[#allocation25_spill] sm:$0xff] %v7698_v39 }
  0xb6   :  { %6912 = vmatprep.mubr.msk.bf16.mxu0 %vm7277_vm0, %v11087_v1  ;;  %v7703_v41 = vpop.permute.xlu0 %1419 }
  0xb7   :  { %11254 = vst [vmem:[#allocation26_spill] sm:$0xff] %v7703_v41 }
  0xb8   :  { %v7705_v42 = vpop.permute.xlu1 %1424 }
  0xb9   :  { %11255 = vst [vmem:[#allocation27_spill] sm:$0xff] %v7705_v42 }
  0xba   :  { %v7713_v44 = vpop.permute.xlu0 %1429 }
  0xbb   :  { %11256 = vst [vmem:[#allocation28_spill] sm:$0xff] %v7713_v44 }
  0xbc   :  { %v7715_v45 = vpop.permute.xlu1 %1434 }
  0xbd   :  { %6913 = vmatmul.mubr.msk.bf16.gmra.mrb[88].mxu0 %vm375_vm2, %v7170_v37  ;;  %11257 = vst [vmem:[#allocation29_spill] sm:$0xff] %v7715_v45 }
  0xbe   :  { %6916 = vmatprep.mubr.msk.bf16.mxu0 %vm7277_vm0, %v11087_v1  ;;  %v7720_v46 = vpop.permute.xlu0 %1439 }
  0xbf   :  { %11258 = vst [vmem:[#allocation30_spill] sm:$0xff] %v7720_v46 }
  0xc0   :  { %v7722_v47 = vpop.permute.xlu1 %1444 }
  0xc1   :  { %11259 = vst [vmem:[#allocation31_spill] sm:$0xff] %v7722_v47 }
  0xc2   :  { %v7728_v49 = vpop.permute.xlu0 %1449 }
  0xc3   :  { %11260 = vst [vmem:[#allocation32_spill] sm:$0xff] %v7728_v49 }
  0xc4   :  { %v7732_v50 = vpop.permute.xlu1 %1454 }
  0xc5   :  { %6917 = vmatmul.mubr.msk.bf16.gmra.mrb[92].mxu0 %vm375_vm2, %v7171_v40  ;;  %11261 = vst [vmem:[#allocation33_spill] sm:$0xff] %v7732_v50 }
  0xc6   :  { %6920 = vmatprep.mubr.msk.bf16.mxu0 %vm7277_vm0, %v11087_v1  ;;  %v7737_v52 = vpop.permute.xlu0 %1459 }
  0xc7   :  { %11262 = vst [vmem:[#allocation34_spill] sm:$0xff] %v7737_v52 }
  0xc8   :  { %v7739_v53 = vpop.permute.xlu1 %1244 }
  0xca   :  { %v7758_v63 = vpop.permute.xlu0 %1239 }
  0xcc   :  { %v7760_v2 = vpop.permute.xlu1 %1264 }
  0xcd   :  { %6921 = vmatmul.mubr.msk.bf16.gmra.mrb[96].mxu0 %vm375_vm2, %v7172_v43  ;;  %11263 = vst [vmem:[#allocation35_spill] sm:$0xff] %v7760_v2  ;;  %v7775_v43 = vsub.s32 %v1647_v19, %v7765_v24 }
  0xce   :  { %6924 = vmatprep.mubr.msk.bf16.mxu0 %vm7277_vm0, %v11087_v1  ;;  %v7770_v32 = vpop.permute.xlu0 %1269 }
  0xcf   :  { %11265 = vst [vmem:[#allocation37_spill] sm:$0xff] %v7770_v32 }
  0xd0   :  { %v7772_v40 = vpop.permute.xlu1 %1274 }
  0xd1   :  { %11266 = vst [vmem:[#allocation38_spill] sm:$0xff] %v7772_v40 }
  0xd2   :  { %v7789_v19 = vpop.permute.xlu0 %1249 }
  0xd5   :  { %6925 = vmatmul.mubr.msk.bf16.gmra.mrb[100].mxu0 %vm375_vm2, %v7173_v48 }
  0xd6   :  { %6928 = vmatprep.mubr.msk.bf16.mxu0 %vm7277_vm0, %v11087_v1 }
  0xdd   :  { %6929 = vmatmul.mubr.msk.bf16.gmra.mrb[104].mxu0 %vm375_vm2, %v7174_v51 }
  0xde   :  { %6932 = vmatprep.mubr.msk.bf16.mxu0 %vm7277_vm0, %v11087_v1 }
  0xe0   :  { %v549_v55 = vpop.f32.mrb[0].mxu0 }
  0xe1   :  { %v915_v57 = vmul.f32 %v7745_v54, %v549_v55  ;;  %v6826_v58 = vpop.f32.mrb[1].mxu0 }
  0xe2   :  { %v552_v0 = vpop.f32.mrb[2].mxu0  ;;  %v7176_v58 = vld [vmem:[%s11073_s0 + $0xe0] sm:$0xff]  }
  0xe3   :  { %v1012_v3 = vadd.f32 %v7752_v56, %v915_v57  ;;  %v916_v5 = vmul.f32 %v7745_v54, %v552_v0  ;;  %v6827_v6 = vpop.f32.mrb[3].mxu0 }
  0xe5   :  { %v1102_v9 = vmax.f32 %v1012_v3, 0.0  ;;  %v1013_v14 = vadd.f32 %v7752_v56, %v916_v5  ;;  %6933 = vmatmul.mubr.msk.bf16.gmra.mrb[108].mxu0 %vm375_vm2, %v7175_v62 }
  0xe6   :  { %6936 = vmatprep.mubr.msk.bf16.mxu0 %vm7277_vm0, %v11087_v1 }
  0xe7   :  { %v1103_v29 = vmax.f32 %v1013_v14, 0.0  ;;  %v1462_v51 = vmul.f32 %v7758_v63, %v1102_v9 }
  0xe8   :  { %v557_v37 = vpop.f32.mrb[4].mxu0 }
  0xe9   :  { %v1463_v48 = vmul.f32 %v7739_v53, %v1103_v29  ;;  %v917_v55 = vmul.f32 %v7745_v54, %v557_v37  ;;  %v6830_v57 = vpop.f32.mrb[5].mxu0  ;;  %v7791_v29 = vpop.permute.xlu1 %1254 }
  0xea   :  { %v560_v59 = vpop.f32.mrb[6].mxu0 }
  0xeb   :  { %v6597_v60 = vpack.c.bf16 %v1463_v48, %v1463_v48  ;;  %v1552_v61 = vpack.c.bf16 %v1463_v48, %v1462_v51  ;;  %v1014_v62 = vadd.f32 %v7752_v56, %v917_v55  ;;  %v918_v0 = vmul.f32 %v7745_v54, %v560_v59  ;;  %v6831_v3 = vpop.f32.mrb[7].mxu0 }
  0xed   :  { %v1658_v5 = vrot.slane %v6597_v60, %v7775_v43  ;;  %v1651_v6 = vrot.slane %v1552_v61, %v7775_v43  ;;  %v1104_v9 = vmax.f32 %v1014_v62, 0.0  ;;  %v1015_v14 = vadd.f32 %v7752_v56, %v918_v0  ;;  %6937 = vmatmul.mubr.msk.bf16.gmra.mrb[112].mxu0 %vm375_vm2, %v7176_v58  ;;  %v7177_v0 = vld [vmem:[%s11073_s0 + $0xe8] sm:$0xff]  }
  0xee   :  { %6940 = vmatprep.mubr.msk.bf16.mxu0 %vm7277_vm0, %v11087_v1 }
  0xef   :  { %v1660_v37 = vcombine.high %v1658_v5, %v1658_v5  ;;  %v1659_v48 = vcombine.high %v1651_v6, %v1651_v6  ;;  %v1105_v51 = vmax.f32 %v1015_v14, 0.0  ;;  %v1464_v55 = vmul.f32 %v7789_v19, %v1104_v9 }
  0xf0   :  { %v565_v57 = vpop.f32.mrb[8].mxu0 }
  0xf1   :  { %v2473_v59 = vcombine.low %v1658_v5, %v1660_v37  ;;  %v2472_v60 = vcombine.low %v1651_v6, %v1659_v48  ;;  %v1465_v61 = vmul.f32 %v7791_v29, %v1105_v51  ;;  %v919_v62 = vmul.f32 %v7745_v54, %v565_v57  ;;  %v6834_v58 = vpop.f32.mrb[9].mxu0 }
  0xf2   :  { %v568_v3 = vpop.f32.mrb[10].mxu0 }
  0xf3   :  { %v2487_v4 = vrot.slane %v2473_v59, %v7775_v43  ;;  %v2480_v1 = vrot.slane %v2472_v60, %v7775_v43  ;;  %v1553_v14 = vpack.c.bf16 %v1465_v61, %v1464_v55  ;;  %v6598_v24 = vpack.c.bf16 %v1465_v61, %v1465_v61  ;;  %v6835_v9 = vpop.f32.mrb[11].mxu0  ;;  %v7817_v61 = vpop.permute.xlu0 %1259 }
  0xf4   :  { %v1016_v5 = vadd.f32 %v7752_v56, %v919_v62  ;;  %v920_v6 = vmul.f32 %v7745_v54, %v568_v3  ;;  %v11269_v59 = vmov 0.0   ;;  %11270 = vst [vmem:[#allocation41_spill] sm:$0xff] %v7817_v61 }
  0xf5   :  { %v7805_v37 = vcombine.low %v2480_v1, %v2487_v4  ;;  %v7808_v48 = vrot.slane %v1553_v14, %v7775_v43  ;;  %6941 = vmatmul.mubr.msk.bf16.gmra.mrb[116].mxu0 %vm375_vm2, %v7177_v0  ;;  %v1675_v55 = vrot.slane %v6598_v24, %v7775_v43  ;;  %v7178_v0 = vld [vmem:[%s11073_s0 + $0xf0] sm:$0xff]  }
  0xf6   :  { %v1106_v51 = vmax.f32 %v1016_v5, 0.0  ;;  %v1017_v57 = vadd.f32 %v7752_v56, %v920_v6  ;;  %6944 = vmatprep.mubr.msk.bf16.mxu0 %vm7277_vm0, %v11269_v59 }
  0xf7   :  { %11267 = vst [vmem:[#allocation39_spill] sm:$0xff] %v7805_v37  ;;  %11268 = vst [vmem:[#allocation40_spill] sm:$0xff] %v7808_v48  ;;  %v1676_v60 = vcombine.high %v7808_v48, %v7808_v48 }
  0xf8   :  { %v1107_v1 = vmax.f32 %v1017_v57, 0.0  ;;  %v573_v4 = vpop.f32.mrb[12].mxu0  ;;  %v1466_v9 = vmul.f32 %v7817_v61, %v1106_v51 }
  0xf9   :  { %v2489_v62 = vcombine.low %v1676_v60, %v1675_v55  ;;  %v921_v58 = vmul.f32 %v7745_v54, %v573_v4  ;;  %v6838_v3 = vpop.f32.mrb[13].mxu0 }
  0xfa   :  { %v1467_v14 = vmul.f32 %v7760_v2, %v1107_v1  ;;  %v576_v24 = vpop.f32.mrb[14].mxu0  ;;  %v7193_v3 = vld [vmem:[%s11079_s6] sm:$0xff]   ;;  %v1677_v1 = vcombine.high %v1675_v55, %v1675_v55 }
  0xfb   :  { %v1018_v5 = vadd.f32 %v7752_v56, %v921_v58  ;;  %v922_v6 = vmul.f32 %v7745_v54, %v576_v24  ;;  %v6839_v37 = vpop.f32.mrb[15].mxu0  ;;  %7112 = vmatpush1.bf16.msra.mxu1 %v7193_v3  ;;  %5288 = vmatpush1.bf16.msra.mxu0 %v7193_v3 }
  0xfc   :  { %v6599_v57 = vpack.c.bf16 %v1467_v14, %v1467_v14  ;;  %v1554_v48 = vpack.c.bf16 %v1467_v14, %v1466_v9 }
  0xfd   :  { %v1108_v60 = vmax.f32 %v1018_v5, 0.0  ;;  %v1019_v4 = vadd.f32 %v7752_v56, %v922_v6  ;;  %6945 = vmatmul.mubr.msk.bf16.gmra.mrb[120].mxu0 %vm375_vm2, %v7178_v0  ;;  %v11272_v0 = vmov 0   ;;  %v7179_v5 = vld [vmem:[%s11073_s0 + $0xf8] sm:$0xff]   ;;  %v7194_v6 = vld [vmem:[%s11079_s6 + $0x8] sm:$0xff]  }
  0xfe   :  { %v1692_v51 = vrot.slane %v6599_v57, %v7775_v43  ;;  %v7834_v2 = vrot.slane %v1554_v48, %v7775_v43  ;;  %6948 = vmatprep.mubr.msk.bf16.mxu0 %vm7277_vm0, %v11269_v59  ;;  %7097 = vmatprep.subr.bf16.mxu1 %v11272_v0  ;;  %v2497_v57 = vrot.slane %v2489_v62, %v7775_v43 }
  0xff   :  { %v1109_v37 = vmax.f32 %v1019_v4, 0.0  ;;  %5289 = vmatprep.subr.bf16.mxu0 %v11272_v0  ;;  %v1468_v55 = vmul.f32 %v7770_v32, %v1108_v60  ;;  %7113 = vmatpush1.bf16.msra.mxu1 %v7194_v6 }
 0x100   :  { %11271 = vst [vmem:[#allocation42_spill] sm:$0xff] %v7834_v2  ;;  %v2490_v58 = vcombine.low %v1677_v1, %v7834_v2  ;;  %v581_v14 = vpop.f32.mrb[16].mxu0  ;;  %v1694_v4 = vcombine.high %v1692_v51, %v1692_v51  ;;  %7098 = vmatprep.subr.bf16.mxu1 %v11272_v0  ;;  %5290 = vmatpush1.bf16.msra.mxu0 %v7194_v6 }
 0x101   :  { %v1469_v9 = vmul.f32 %v7772_v40, %v1109_v37  ;;  %v923_v48 = vmul.f32 %v7745_v54, %v581_v14  ;;  %v6842_v24 = vpop.f32.mrb[17].mxu0  ;;  %5291 = vmatprep.subr.bf16.mxu0 %v11272_v0 }
 0x102   :  { %v2504_v3 = vrot.slane %v2490_v58, %v7775_v43  ;;  %v584_v1 = vpop.f32.mrb[18].mxu0  ;;  %v7195_v58 = vld [vmem:[%s11079_s6 + $0x10] sm:$0xff]  }
 0x103   :  { %v1555_v60 = vpack.c.bf16 %v1469_v9, %v1468_v55  ;;  %v1020_v37 = vadd.f32 %v7752_v56, %v923_v48  ;;  %v924_v14 = vmul.f32 %v7745_v54, %v584_v1  ;;  %v6843_v24 = vpop.f32.mrb[19].mxu0  ;;  %v6600_v40 = vpack.c.bf16 %v1469_v9, %v1469_v9  ;;  %v7864_v48 = vpop.permute.xlu1 %1279  ;;  %7114 = vmatpush1.bf16.msra.mxu1 %v7195_v58 }
 0x104   :  { %v7854_v2 = vcombine.low %v2497_v57, %v2504_v3  ;;  %v2506_v55 = vcombine.low %v1692_v51, %v1694_v4  ;;  %v7866_v9 = vpop.permute.xlu0 %1284  ;;  %7099 = vmatprep.subr.bf16.mxu1 %v11272_v0  ;;  %5292 = vmatpush1.bf16.msra.mxu0 %v7195_v58 }
 0x105   :  { %v1702_v32 = vrot.slane %v1555_v60, %v7775_v43  ;;  %v1110_v62 = vmax.f32 %v1020_v37, 0.0  ;;  %v1021_v61 = vadd.f32 %v7752_v56, %v924_v14  ;;  %6949 = vmatmul.mubr.msk.bf16.gmra.mrb[124].mxu0 %vm375_vm2, %v7179_v5  ;;  %11274 = vst [vmem:[#allocation44_spill] sm:$0xff] %v7866_v9  ;;  %v7871_v3 = vrot.slane %v6600_v40, %v7775_v43  ;;  %v7196_v40 = vld [vmem:[%s11079_s6 + $0x18] sm:$0xff]  }
 0x106   :  { %11273 = vst [vmem:[#allocation43_spill] sm:$0xff] %v7854_v2  ;;  %6952 = vmatprep.mubr.msk.bf16.mxu0 %vm7277_vm0, %v11269_v59  ;;  %5293 = vmatprep.subr.bf16.mxu0 %v11272_v0  ;;  %v2514_v14 = vrot.slane %v2506_v55, %v7775_v43 }
 0x107   :  { %v1710_v6 = vcombine.high %v1702_v32, %v1702_v32  ;;  %v1111_v57 = vmax.f32 %v1021_v61, 0.0  ;;  %11275 = vst [vmem:[#allocation45_spill] sm:$0xff] %v7871_v3  ;;  %v1470_v51 = vmul.f32 %v7864_v48, %v1110_v62  ;;  %v7180_v61 = vld [vmem:[%s11073_s0 + $0x100] sm:$0xff]   ;;  %7115 = vmatpush1.bf16.msra.mxu1 %v7196_v40 }
 0x108   :  { %v589_v5 = vpop.f32.mrb[20].mxu0  ;;  %7100 = vmatprep.subr.bf16.mxu1 %v11272_v0  ;;  %5294 = vmatpush1.bf16.msra.mxu0 %v7196_v40 }
 0x109   :  { %v2507_v1 = vcombine.low %v1702_v32, %v1710_v6  ;;  %v1471_v4 = vmul.f32 %v7866_v9, %v1111_v57  ;;  %v925_v60 = vmul.f32 %v7745_v54, %v589_v5  ;;  %v6846_v37 = vpop.f32.mrb[21].mxu0  ;;  %5295 = vmatprep.subr.bf16.mxu0 %v11272_v0 }
 0x10a   :  { %v592_v32 = vpop.f32.mrb[22].mxu0  ;;  %v1711_v37 = vcombine.high %v7871_v3, %v7871_v3 }
 0x10b   :  { %v2521_v24 = vrot.slane %v2507_v1, %v7775_v43  ;;  %v1556_v62 = vpack.c.bf16 %v1471_v4, %v1470_v51  ;;  %v6601_v58 = vpack.c.bf16 %v1471_v4, %v1471_v4  ;;  %v1022_v6 = vadd.f32 %v7752_v56, %v925_v60  ;;  %v6847_v57 = vpop.f32.mrb[23].mxu0  ;;  %v7197_v1 = vld [vmem:[%s11079_s6 + $0x20] sm:$0xff]  }
 0x10c   :  { %v926_v5 = vmul.f32 %v7745_v54, %v592_v32  ;;  %7116 = vmatpush1.bf16.msra.mxu1 %v7197_v1  ;;  %5296 = vmatpush1.bf16.msra.mxu0 %v7197_v1  ;;  %v7181_v57 = vld [vmem:[%s11073_s0 + $0x108] sm:$0xff]  }
 0x10d   :  { %v7891_v2 = vcombine.low %v2514_v14, %v2521_v24  ;;  %v1719_v55 = vrot.slane %v1556_v62, %v7775_v43  ;;  %6953 = vmatmul.mubr.msk.bf16.gmra.mrb[128].mxu0 %vm375_vm2, %v7180_v61  ;;  %v1112_v51 = vmax.f32 %v1022_v6, 0.0  ;;  %v7903_v60 = vrot.slane %v6601_v58, %v7775_v43  ;;  %7101 = vmatprep.subr.bf16.mxu1 %v11272_v0  ;;  %v7198_v58 = vld [vmem:[%s11079_s6 + $0x28] sm:$0xff]  }
 0x10e   :  { %v1023_v4 = vadd.f32 %v7752_v56, %v926_v5  ;;  %6956 = vmatprep.mubr.msk.bf16.mxu0 %vm7277_vm0, %v11269_v59  ;;  %5297 = vmatprep.subr.bf16.mxu0 %v11272_v0 }
 0x10f   :  { %11276 = vst [vmem:[#allocation46_spill] sm:$0xff] %v7891_v2  ;;  %11277 = vst [vmem:[#allocation47_spill] sm:$0xff] %v7903_v60  ;;  %v1727_v40 = vcombine.high %v1719_v55, %v1719_v55  ;;  %v2523_v14 = vcombine.low %v1711_v37, %v1719_v55  ;;  %v1472_v5 = vmul.f32 %v7606_v7, %v1112_v51 }
 0x110   :  { %v1113_v32 = vmax.f32 %v1023_v4, 0.0  ;;  %v597_v61 = vpop.f32.mrb[24].mxu0  ;;  %7117 = vmatpush1.bf16.msra.mxu1 %v7198_v58  ;;  %5298 = vmatpush1.bf16.msra.mxu0 %v7198_v58 }
 0x111   :  { %v2524_v24 = vcombine.low %v1727_v40, %v7903_v60  ;;  %v927_v62 = vmul.f32 %v7745_v54, %v597_v61  ;;  %v6850_v6 = vpop.f32.mrb[25].mxu0  ;;  %v2531_v1 = vrot.slane %v2523_v14, %v7775_v43  ;;  %7102 = vmatprep.subr.bf16.mxu1 %v11272_v0  ;;  %v7199_v14 = vld [vmem:[%s11079_s6 + $0x30] sm:$0xff]   ;;  %5299 = vmatprep.subr.bf16.mxu0 %v11272_v0 }
 0x112   :  { %v1473_v37 = vmul.f32 %v7613_v10, %v1113_v32  ;;  %v600_v55 = vpop.f32.mrb[26].mxu0 }
 0x113   :  { %v2538_v4 = vrot.slane %v2524_v24, %v7775_v43  ;;  %v1024_v40 = vadd.f32 %v7752_v56, %v927_v62  ;;  %v928_v61 = vmul.f32 %v7745_v54, %v600_v55  ;;  %v6851_v6 = vpop.f32.mrb[27].mxu0 }
 0x114   :  { %v1557_v60 = vpack.c.bf16 %v1473_v37, %v1472_v5  ;;  %v6602_v3 = vpack.c.bf16 %v1473_v37, %v1473_v37  ;;  %7118 = vmatpush1.bf16.msra.mxu1 %v7199_v14  ;;  %5300 = vmatpush1.bf16.msra.mxu0 %v7199_v14 }
 0x115   :  { %v7922_v2 = vcombine.low %v2531_v1, %v2538_v4  ;;  %v1114_v51 = vmax.f32 %v1024_v40, 0.0  ;;  %v1025_v32 = vadd.f32 %v7752_v56, %v928_v61  ;;  %6957 = vmatmul.mubr.msk.bf16.gmra.mrb[132].mxu0 %vm375_vm2, %v7181_v57  ;;  %7103 = vmatprep.subr.bf16.mxu1 %v11272_v0  ;;  %v7200_v40 = vld [vmem:[%s11079_s6 + $0x38] sm:$0xff]  }
 0x116   :  { %v1736_v24 = vrot.slane %v1557_v60, %v7775_v43  ;;  %v1743_v62 = vrot.slane %v6602_v3, %v7775_v43  ;;  %6960 = vmatprep.mubr.msk.bf16.mxu0 %vm7277_vm0, %v11269_v59  ;;  %v7182_v3 = vld [vmem:[%s11073_s0 + $0x110] sm:$0xff]   ;;  %5301 = vmatprep.subr.bf16.mxu0 %v11272_v0 }
 0x117   :  { %11278 = vst [vmem:[#allocation48_spill] sm:$0xff] %v7922_v2  ;;  %v1115_v58 = vmax.f32 %v1025_v32, 0.0  ;;  %v1474_v57 = vmul.f32 %v7622_v13, %v1114_v51 }
 0x118   :  { %v1744_v5 = vcombine.high %v1736_v24, %v1736_v24  ;;  %v1745_v37 = vcombine.high %v1743_v62, %v1743_v62  ;;  %v605_v55 = vpop.f32.mrb[28].mxu0  ;;  %7119 = vmatpush1.bf16.msra.mxu1 %v7200_v40  ;;  %5302 = vmatpush1.bf16.msra.mxu0 %v7200_v40 }
 0x119   :  { %v1475_v1 = vmul.f32 %v7627_v15, %v1115_v58  ;;  %v929_v4 = vmul.f32 %v7745_v54, %v605_v55  ;;  %v6854_v60 = vpop.f32.mrb[29].mxu0  ;;  %7104 = vmatprep.subr.bf16.mxu1 %v11272_v0  ;;  %5303 = vmatprep.subr.bf16.mxu0 %v11272_v0 }
 0x11a   :  { %v2540_v61 = vcombine.low %v1736_v24, %v1744_v5  ;;  %v2541_v6 = vcombine.low %v1743_v62, %v1745_v37  ;;  %v608_v32 = vpop.f32.mrb[30].mxu0  ;;  %v7201_v5 = vld [vmem:[%s11079_s6 + $0x40] sm:$0xff]  }
 0x11b   :  { %v1558_v14 = vpack.c.bf16 %v1475_v1, %v1474_v57  ;;  %v6603_v51 = vpack.c.bf16 %v1475_v1, %v1475_v1  ;;  %v1026_v58 = vadd.f32 %v7752_v56, %v929_v4  ;;  %v930_v55 = vmul.f32 %v7745_v54, %v608_v32  ;;  %v6855_v60 = vpop.f32.mrb[31].mxu0 }
 0x11c   :  { %v2548_v2 = vrot.slane %v2540_v61, %v7775_v43  ;;  %v2555_v15 = vrot.slane %v2541_v6, %v7775_v43  ;;  %7120 = vmatpush1.bf16.msra.mxu1 %v7201_v5  ;;  %5304 = vmatpush1.bf16.msra.mxu0 %v7201_v5 }
 0x11d   :  { %v1753_v13 = vrot.slane %v1558_v14, %v7775_v43  ;;  %v1116_v24 = vmax.f32 %v1026_v58, 0.0  ;;  %v1027_v62 = vadd.f32 %v7752_v56, %v930_v55  ;;  %6961 = vmatmul.mubr.msk.bf16.gmra.mrb[136].mxu0 %vm375_vm2, %v7182_v3  ;;  %v1760_v57 = vrot.slane %v6603_v51, %v7775_v43  ;;  %7105 = vmatprep.subr.bf16.mxu1 %v11272_v0  ;;  %v7183_v58 = vld [vmem:[%s11073_s0 + $0x118] sm:$0xff]  }
 0x11e   :  { %v7957_v37 = vcombine.low %v2548_v2, %v2555_v15  ;;  %6964 = vmatprep.mubr.msk.bf16.mxu0 %vm7277_vm0, %v11269_v59  ;;  %5305 = vmatprep.subr.bf16.mxu0 %v11272_v0 }
 0x11f   :  { %v1761_v1 = vcombine.high %v1753_v13, %v1753_v13  ;;  %v1117_v4 = vmax.f32 %v1027_v62, 0.0  ;;  %v1476_v40 = vmul.f32 %v7629_v16, %v1116_v24  ;;  %v3050_v3 = vrot.slane %v1753_v13, %v7775_v43  ;;  %v7202_v13 = vld [vmem:[%s11079_s6 + $0x48] sm:$0xff]  }
 0x120   :  { %11279 = vst [vmem:[#allocation49_spill] sm:$0xff] %v7957_v37  ;;  %v613_v61 = vpop.f32.mrb[32].mxu0  ;;  %v3292_v6 = vshll.u32 %v7957_v37, 16  ;;  %v3702_v51 = vrot.slane %v7957_v37, 1  ;;  %v3290_v24 = vshrl.u32 %v7957_v37, 16  ;;  %7121 = vmatpush1.bf16.msra.mxu1 %v7202_v13  ;;  %5306 = vmatpush1.bf16.msra.mxu0 %v7202_v13  ;;  %v1762_v9 = vcombine.high %v1760_v57, %v1760_v57 }
 0x121   :  { %v2557_v15 = vcombine.low %v1761_v1, %v1760_v57  ;;  %v1477_v2 = vmul.f32 %v7608_v8, %v1117_v4  ;;  %v931_v32 = vmul.f32 %v7745_v54, %v613_v61  ;;  %v6858_v14 = vpop.f32.mrb[33].mxu0  ;;  %v3703_v60 = vrot.slane %v3050_v3, 1  ;;  %7106 = vmatprep.subr.bf16.mxu1 %v11272_v0  ;;  %5307 = vmatprep.subr.bf16.mxu0 %v11272_v0 }
 0x122   :  { %v616_v55 = vpop.f32.mrb[34].mxu0  ;;  %v3294_v62 = vrot.slane %v3292_v6, 1  ;;  %v3297_v5 = vshll.u32 %v3050_v3, 16 }
 0x123   :  { %v1559_v1 = vpack.c.bf16 %v1477_v2, %v1476_v40  ;;  %v6604_v4 = vpack.c.bf16 %v1477_v2, %v1477_v2  ;;  %v1028_v61 = vadd.f32 %v7752_v56, %v931_v32  ;;  %v6859_v14 = vpop.f32.mrb[35].mxu0  ;;  %v932_v8 = vmul.f32 %v7745_v54, %v616_v55  ;;  %v7203_v40 = vld [vmem:[%s11079_s6 + $0x50] sm:$0xff]  }
 0x124   :  { %v7980_v16 = vsel %vm3689_vm3, %v3702_v51, %v3703_v60  ;;  %v3295_v10 = vor.u32 %v3294_v62, %v3290_v24  ;;  %v3299_v7 = vrot.slane %v3297_v5, 1  ;;  %7122 = vmatpush1.bf16.msra.mxu1 %v7203_v40  ;;  %5308 = vmatpush1.bf16.msra.mxu0 %v7203_v40  ;;  %v2565_v60 = vrot.slane %v2557_v15, %v7775_v43  ;;  %v7184_v62 = vld [vmem:[%s11073_s0 + $0x120] sm:$0xff]  }
 0x125   :  { %11280 = vst [vmem:[#allocation50_spill] sm:$0xff] %v7980_v16  ;;  %v1770_v3 = vrot.slane %v1559_v1, %v7775_v43  ;;  %3794 = vrot.lane.b32.xlu1 %v7980_v16, %s7281_s13  ;;  %6965 = vmatmul.mubr.msk.bf16.gmra.mrb[140].mxu0 %vm375_vm2, %v7183_v58  ;;  %v1777_v6 = vrot.slane %v6604_v4, %v7775_v43  ;;  %v1118_v2 = vmax.f32 %v1028_v61, 0.0 }
 0x126   :  { %v1029_v32 = vadd.f32 %v7752_v56, %v932_v8  ;;  %6968 = vmatprep.mubr.msk.bf16.mxu0 %vm7277_vm0, %v11269_v59  ;;  %v7996_v58 = vsel %vm3240_vm4, %v3295_v10, %v3299_v7  ;;  %7107 = vmatprep.subr.bf16.mxu1 %v11272_v0  ;;  %v7204_v10 = vld [vmem:[%s11079_s6 + $0x58] sm:$0xff]  }
 0x127   :  { %v2558_v57 = vcombine.low %v1762_v9, %v1770_v3  ;;  %v1778_v51 = vcombine.high %v1770_v3, %v1770_v3  ;;  %11281 = vst [vmem:[#allocation51_spill] sm:$0xff] %v7996_v58  ;;  %v1779_v5 = vcombine.high %v1777_v6, %v1777_v6  ;;  %v1478_v15 = vmul.f32 %v7615_v11, %v1118_v2 }
 0x128   :  { %v1119_v13 = vmax.f32 %v1029_v32, 0.0  ;;  %v621_v55 = vpop.f32.mrb[36].mxu0  ;;  %5309 = vmatprep.subr.bf16.mxu0 %v11272_v0  ;;  %7123 = vmatpush1.bf16.msra.mxu1 %v7204_v10 }
 0x129   :  { %v2572_v8 = vrot.slane %v2558_v57, %v7775_v43  ;;  %3633 = vrot.lane.b32.xlu1 %v7996_v58, %s7279_s2  ;;  %v933_v9 = vmul.f32 %v7745_v54, %v621_v55  ;;  %v6862_v24 = vpop.f32.mrb[37].mxu0  ;;  %v3057_v7 = vrot.slane %v1778_v51, %v7775_v43  ;;  %7108 = vmatprep.subr.bf16.mxu1 %v11272_v0 }
 0x12a   :  { %v1479_v1 = vmul.f32 %v7620_v12, %v1119_v13  ;;  %v624_v4 = vpop.f32.mrb[38].mxu0  ;;  %5310 = vmatpush1.bf16.msra.mxu0 %v7204_v10 }
 0x12b   :  { %v8014_v61 = vcombine.low %v2565_v60, %v2572_v8  ;;  %v1030_v14 = vadd.f32 %v7752_v56, %v933_v9  ;;  %v934_v3 = vmul.f32 %v7745_v54, %v624_v4  ;;  %v6863_v40 = vpop.f32.mrb[39].mxu0  ;;  %v3706_v55 = vrot.slane %v3057_v7, 1  ;;  %v7205_v60 = vld [vmem:[%s11079_s6 + $0x60] sm:$0xff]   ;;  %5311 = vmatprep.subr.bf16.mxu0 %v11272_v0 }
 0x12c   :  { %v1560_v32 = vpack.c.bf16 %v1479_v1, %v1478_v15  ;;  %v6605_v57 = vpack.c.bf16 %v1479_v1, %v1479_v1  ;;  %v2574_v8 = vcombine.low %v1777_v6, %v1779_v5  ;;  %v3309_v15 = vshll.u32 %v3057_v7, 16  ;;  %7124 = vmatpush1.bf16.msra.mxu1 %v7205_v60 }
 0x12d   :  { %11282 = vst [vmem:[#allocation52_spill] sm:$0xff] %v8014_v61  ;;  %v1120_v51 = vmax.f32 %v1030_v14, 0.0  ;;  %v1031_v2 = vadd.f32 %v7752_v56, %v934_v3  ;;  %6969 = vmatmul.mubr.msk.bf16.gmra.mrb[144].mxu0 %vm375_vm2, %v7184_v62  ;;  %3892 = vrot.lane.b32.xlu1 %v8014_v61, %s7282_s20  ;;  %v3705_v13 = vrot.slane %v8014_v61, 1  ;;  %v3304_v24 = vshll.u32 %v8014_v61, 16 }
 0x12e   :  { %v1787_v9 = vrot.slane %v1560_v32, %v7775_v43  ;;  %6972 = vmatprep.mubr.msk.bf16.mxu0 %vm7277_vm0, %v11269_v59  ;;  %v1794_v1 = vrot.slane %v6605_v57, %v7775_v43  ;;  %v3302_v5 = vshrl.u32 %v8014_v61, 16  ;;  %7109 = vmatprep.subr.bf16.mxu1 %v11272_v0  ;;  %v7185_v57 = vld [vmem:[%s11073_s0 + $0x128] sm:$0xff]  }
 0x12f   :  { %v1121_v62 = vmax.f32 %v1031_v2, 0.0  ;;  %v8033_v10 = vsel %vm3689_vm3, %v3705_v13, %v3706_v55  ;;  %v3306_v14 = vrot.slane %v3304_v24, 1  ;;  %v1480_v3 = vmul.f32 %v7634_v17, %v1120_v51  ;;  %v7206_v2 = vld [vmem:[%s11079_s6 + $0x68] sm:$0xff]   ;;  %5312 = vmatpush1.bf16.msra.mxu0 %v7205_v60 }
 0x130   :  { %11283 = vst [vmem:[#allocation53_spill] sm:$0xff] %v8033_v10  ;;  %v1795_v4 = vcombine.high %v1787_v9, %v1787_v9  ;;  %4000 = vrot.lane.b32.xlu0 %v8033_v10, %s7279_s2  ;;  %v629_v6 = vpop.f32.mrb[40].mxu0  ;;  %v2582_v13 = vrot.slane %v2574_v8, %v7775_v43  ;;  %5313 = vmatprep.subr.bf16.mxu0 %v11272_v0  ;;  %v3311_v60 = vrot.slane %v3309_v15, 1 }
 0x131   :  { %v1481_v40 = vmul.f32 %v7636_v18, %v1121_v62  ;;  %v935_v32 = vmul.f32 %v7745_v54, %v629_v6  ;;  %v6866_v7 = vpop.f32.mrb[41].mxu0  ;;  %v3307_v16 = vor.u32 %v3306_v14, %v3302_v5  ;;  %7125 = vmatpush1.bf16.msra.mxu1 %v7206_v2  ;;  %v1796_v18 = vcombine.high %v1794_v1, %v1794_v1  ;;  %v7207_v14 = vld [vmem:[%s11079_s6 + $0x70] sm:$0xff]  }
 0x132   :  { %v2575_v55 = vcombine.low %v1787_v9, %v1795_v4  ;;  %v632_v24 = vpop.f32.mrb[42].mxu0  ;;  %v8057_v8 = vrot.slane %v1794_v1, %v7775_v43  ;;  %7110 = vmatprep.subr.bf16.mxu1 %v11272_v0 }
 0x133   :  { %v1561_v51 = vpack.c.bf16 %v1481_v40, %v1480_v3  ;;  %v6606_v62 = vpack.c.bf16 %v1481_v40, %v1481_v40  ;;  %v1032_v6 = vadd.f32 %v7752_v56, %v935_v32  ;;  %v936_v7 = vmul.f32 %v7745_v54, %v632_v24  ;;  %v6867_v58 = vpop.f32.mrb[43].mxu0  ;;  %5314 = vmatpush1.bf16.msra.mxu0 %v7206_v2 }
 0x134   :  { %v2589_v17 = vrot.slane %v2575_v55, %v7775_v43  ;;  %3796 = vrot.lane.b32.xlu0 %v8033_v10, %s7281_s13  ;;  %v8072_v32 = vsel %vm3240_vm4, %v3307_v16, %v3311_v60  ;;  %5315 = vmatprep.subr.bf16.mxu0 %v11272_v0 }
 0x135   :  { %v1804_v9 = vrot.slane %v1561_v51, %v7775_v43  ;;  %v1811_v4 = vrot.slane %v6606_v62, %v7775_v43  ;;  %v1122_v5 = vmax.f32 %v1032_v6, 0.0  ;;  %v1033_v58 = vadd.f32 %v7752_v56, %v936_v7  ;;  %6973 = vmatmul.mubr.msk.bf16.gmra.mrb[148].mxu0 %vm375_vm2, %v7185_v57  ;;  %11284 = vst [vmem:[#allocation54_spill] sm:$0xff] %v8072_v32  ;;  %v7186_v6 = vld [vmem:[%s11073_s0 + $0x130] sm:$0xff]   ;;  %v7208_v7 = vld [vmem:[%s11079_s6 + $0x78] sm:$0xff]  }
 0x136   :  { %v8067_v3 = vcombine.low %v2582_v13, %v2589_v17  ;;  %6976 = vmatprep.mubr.msk.bf16.mxu0 %vm7277_vm0, %v11269_v59  ;;  %7126 = vmatpush1.bf16.msra.mxu1 %v7207_v14  ;;  %v3709_v13 = vrot.slane %v8057_v8, 1 }
 0x137   :  { %v1812_v15 = vcombine.high %v1804_v9, %v1804_v9  ;;  %v2591_v1 = vcombine.low %v1796_v18, %v1804_v9  ;;  %v1123_v40 = vmax.f32 %v1033_v58, 0.0  ;;  %v1813_v55 = vcombine.high %v1811_v4, %v1811_v4  ;;  %7111 = vmatprep.subr.bf16.mxu1 %v11272_v0  ;;  %5316 = vmatpush1.bf16.msra.mxu0 %v7207_v14 }
 0x138   :  { %3635 = vrot.lane.b32.xlu0 %v8072_v32, %s7279_s2  ;;  %v637_v57 = vpop.f32.mrb[44].mxu0  ;;  %v3708_v17 = vrot.slane %v8067_v3, 1  ;;  %v3316_v2 = vshll.u32 %v8067_v3, 16  ;;  %v1482_v16 = vmul.f32 %v7641_v20, %v1122_v5  ;;  %5317 = vmatprep.subr.bf16.mxu0 %v11272_v0 }
 0x139   :  { %v2592_v18 = vcombine.low %v1812_v15, %v1811_v4  ;;  %v1483_v24 = vmul.f32 %v7643_v21, %v1123_v40  ;;  %v937_v51 = vmul.f32 %v7745_v54, %v637_v57  ;;  %v6870_v62 = vpop.f32.mrb[45].mxu0  ;;  %v2599_v60 = vrot.slane %v2591_v1, %v7775_v43 }
 0x13a   :  { %v8092_v9 = vsel %vm3689_vm3, %v3708_v17, %v3709_v13  ;;  %v640_v4 = vpop.f32.mrb[46].mxu0  ;;  %v3071_v5 = vrot.slane %v1813_v55, %v7775_v43  ;;  %v3318_v1 = vrot.slane %v3316_v2, 1  ;;  %7127 = vmatpush1.bf16.msra.mxu1 %v7208_v7  ;;  %v3321_v2 = vshll.u32 %v8057_v8, 16 }
 0x13b   :  { %11285 = vst [vmem:[#allocation55_spill] sm:$0xff] %v8092_v9  ;;  %v2606_v58 = vrot.slane %v2592_v18, %v7775_v43  ;;  %v1562_v15 = vpack.c.bf16 %v1483_v24, %v1482_v16  ;;  %v6607_v40 = vpack.c.bf16 %v1483_v24, %v1483_v24  ;;  %v1034_v57 = vadd.f32 %v7752_v56, %v937_v51  ;;  %v6871_v62 = vpop.f32.mrb[47].mxu0 }
 0x13c   :  { %4002 = vrot.lane.b32.xlu1 %v8092_v9, %s7279_s2  ;;  %v938_v10 = vmul.f32 %v7745_v54, %v640_v4  ;;  %4098 = vrot.lane.b32.xlu0 %v8067_v3, %s7281_s13  ;;  %v3314_v16 = vshrl.u32 %v8067_v3, 16 }
 0x13d   :  { %v8102_v17 = vcombine.low %v2599_v60, %v2606_v58  ;;  %v1821_v14 = vrot.slane %v1562_v15, %v7775_v43  ;;  %v1828_v13 = vrot.slane %v6607_v40, %v7775_v43  ;;  %6977 = vmatmul.mubr.msk.bf16.gmra.mrb[152].mxu0 %vm375_vm2, %v7186_v6  ;;  %v1124_v55 = vmax.f32 %v1034_v57, 0.0 }
 0x13e   :  { %v1035_v18 = vadd.f32 %v7752_v56, %v938_v10  ;;  %6980 = vmatprep.mubr.msk.bf16.mxu0 %vm7277_vm0, %v11269_v59  ;;  %5318 = vmatpush1.bf16.msra.mxu0 %v7208_v7  ;;  %v3712_v60 = vrot.slane %v3071_v5, 1  ;;  %v3333_v58 = vshll.u32 %v3071_v5, 16  ;;  %v3319_v15 = vor.u32 %v3318_v1, %v3314_v16 }
 0x13f   :  { %v1829_v24 = vcombine.high %v1821_v14, %v1821_v14  ;;  %v1830_v51 = vcombine.high %v1828_v13, %v1828_v13  ;;  %v3711_v6 = vrot.slane %v8102_v17, 1  ;;  %v3328_v4 = vshll.u32 %v8102_v17, 16 }
 0x140   :  { %4100 = vrot.lane.b32.xlu1 %v8102_v17, %s7281_s13  ;;  %v1125_v0 = vmax.f32 %v1035_v18, 0.0  ;;  %3894 = vrot.lane.b32.xlu0 %v8067_v3, %s7282_s20  ;;  %v645_v10 = vpop.f32.mrb[48].mxu0  ;;  %v7187_v18 = vld [vmem:[%s11073_s0 + $0x138] sm:$0xff]   ;;  %v1484_v21 = vmul.f32 %v7648_v22, %v1124_v55  ;;  %v3326_v5 = vshrl.u32 %v8102_v17, 16 }
 0x141   :  { %v2608_v40 = vcombine.low %v1821_v14, %v1829_v24  ;;  %v2609_v8 = vcombine.low %v1828_v13, %v1830_v51  ;;  %v939_v7 = vmul.f32 %v7745_v54, %v645_v10  ;;  %v6874_v57 = vpop.f32.mrb[49].mxu0  ;;  %v8121_v62 = vsel %vm3689_vm3, %v3711_v6, %v3712_v60 }
 0x142   :  { %11286 = vst [vmem:[#allocation56_spill] sm:$0xff] %v8121_v62  ;;  %v1485_v20 = vmul.f32 %v7650_v23, %v1125_v0  ;;  %v648_v12 = vpop.f32.mrb[50].mxu0  ;;  %v3330_v1 = vrot.slane %v3328_v4, 1  ;;  %v3335_v0 = vrot.slane %v3333_v58, 1 }
 0x143   :  { %v2616_v14 = vrot.slane %v2608_v40, %v7775_v43  ;;  %v2623_v13 = vrot.slane %v2609_v8, %v7775_v43  ;;  %v1036_v16 = vadd.f32 %v7752_v56, %v939_v7  ;;  %v940_v24 = vmul.f32 %v7745_v54, %v648_v12  ;;  %v6875_v51 = vpop.f32.mrb[51].mxu0 }
 0x144   :  { %4004 = vrot.lane.b32.xlu1 %v8121_v62, %s7279_s2  ;;  %v1563_v6 = vpack.c.bf16 %v1485_v20, %v1484_v21  ;;  %v6608_v55 = vpack.c.bf16 %v1485_v20, %v1485_v20  ;;  %3798 = vrot.lane.b32.xlu0 %v8092_v9, %s7281_s13  ;;  %v3331_v60 = vor.u32 %v3330_v1, %v3326_v5  ;;  %v3323_v8 = vrot.slane %v3321_v2, 1 }
 0x145   :  { %v8137_v10 = vcombine.low %v2616_v14, %v2623_v13  ;;  %v1126_v4 = vmax.f32 %v1036_v16, 0.0  ;;  %v1037_v40 = vadd.f32 %v7752_v56, %v940_v24  ;;  %6981 = vmatmul.mubr.msk.bf16.gmra.mrb[156].mxu0 %vm375_vm2, %v7187_v18 }
 0x146   :  { %v1838_v12 = vrot.slane %v1563_v6, %v7775_v43  ;;  %v8143_v7 = vsel %vm3240_vm4, %v3331_v60, %v3335_v0  ;;  %6984 = vmatprep.mubr.msk.bf16.mxu0 %vm7277_vm0, %v11269_v59  ;;  %v8150_v21 = vsel %vm3240_vm4, %v3319_v15, %v3323_v8  ;;  %v1845_v58 = vrot.slane %v6608_v55, %v7775_v43  ;;  %v7188_v15 = vld [vmem:[%s11073_s0 + $0x140] sm:$0xff]  }
 0x147   :  { %v1127_v20 = vmax.f32 %v1037_v40, 0.0  ;;  %v3340_v5 = vshll.u32 %v8137_v10, 16  ;;  %v1486_v1 = vmul.f32 %v7655_v25, %v1126_v4 }
 0x148   :  { %4202 = vrot.lane.b32.xlu1 %v8143_v7, %s7282_s20  ;;  %v1846_v57 = vcombine.high %v1838_v12, %v1838_v12  ;;  %4200 = vrot.lane.b32.xlu0 %v8150_v21, %s7282_s20  ;;  %v653_v2 = vpop.f32.mrb[52].mxu0  ;;  %v3078_v18 = vrot.slane %v1838_v12, %v7775_v43 }
 0x149   :  { %v1487_v14 = vmul.f32 %v7657_v26, %v1127_v20  ;;  %v941_v13 = vmul.f32 %v7745_v54, %v653_v2  ;;  %v6878_v16 = vpop.f32.mrb[53].mxu0  ;;  %v3342_v55 = vrot.slane %v3340_v5, 1  ;;  %v3714_v20 = vrot.slane %v8137_v10, 1 }
 0x14a   :  { %v2625_v24 = vcombine.low %v1846_v57, %v1845_v58  ;;  %v656_v51 = vpop.f32.mrb[54].mxu0  ;;  %v3715_v6 = vrot.slane %v3078_v18, 1  ;;  %v3345_v60 = vshll.u32 %v3078_v18, 16  ;;  %v3338_v57 = vshrl.u32 %v8137_v10, 16 }
 0x14b   :  { %v1564_v0 = vpack.c.bf16 %v1487_v14, %v1486_v1  ;;  %v6609_v40 = vpack.c.bf16 %v1487_v14, %v1487_v14  ;;  %v1038_v8 = vadd.f32 %v7752_v56, %v941_v13  ;;  %v942_v4 = vmul.f32 %v7745_v54, %v656_v51  ;;  %v6879_v12 = vpop.f32.mrb[55].mxu0 }
 0x14c   :  { %4102 = vrot.lane.b32.xlu1 %v8137_v10, %s7281_s13  ;;  %3637 = vrot.lane.b32.xlu0 %v8150_v21, %s7279_s2  ;;  %v1847_v2 = vcombine.high %v1845_v58, %v1845_v58  ;;  %v8175_v14 = vsel %vm3689_vm3, %v3714_v20, %v3715_v6  ;;  %v3343_v13 = vor.u32 %v3342_v55, %v3338_v57  ;;  %v3347_v16 = vrot.slane %v3345_v60, 1 }
 0x14d   :  { %v1855_v18 = vrot.slane %v1564_v0, %v7775_v43  ;;  %v1128_v5 = vmax.f32 %v1038_v8, 0.0  ;;  %v1039_v1 = vadd.f32 %v7752_v56, %v942_v4  ;;  %6985 = vmatmul.mubr.msk.bf16.gmra.mrb[160].mxu0 %vm375_vm2, %v7188_v15  ;;  %11287 = vst [vmem:[#allocation57_spill] sm:$0xff] %v8175_v14  ;;  %v1862_v51 = vrot.slane %v6609_v40, %v7775_v43  ;;  %v7189_v8 = vld [vmem:[%s11073_s0 + $0x148] sm:$0xff]  }
 0x14e   :  { %6988 = vmatprep.mubr.msk.bf16.mxu0 %vm7277_vm0, %v11269_v59  ;;  %v2633_v58 = vrot.slane %v2625_v24, %v7775_v43  ;;  %v8193_v24 = vsel %vm3240_vm4, %v3343_v13, %v3347_v16 }
 0x14f   :  { %v2626_v12 = vcombine.low %v1847_v2, %v1855_v18  ;;  %v1129_v9 = vmax.f32 %v1039_v1, 0.0  ;;  %v1863_v15 = vcombine.high %v1855_v18, %v1855_v18  ;;  %v1488_v55 = vmul.f32 %v7662_v27, %v1128_v5  ;;  %v8209_v1 = vld [vmem:[%s11077_s4] ss:$0 sm:$0xff] }
 0x150   :  { %4006 = vrot.lane.b32.xlu1 %v8175_v14, %s7279_s2  ;;  %3896 = vrot.lane.b32.xlu0 %v8102_v17, %s7282_s20  ;;  %v661_v56 = vpop.f32.mrb[56].mxu0  ;;  %v1864_v20 = vcombine.high %v1862_v51, %v1862_v51 }
 0x151   :  { %v2640_v6 = vrot.slane %v2626_v12, %v7775_v43  ;;  %v1489_v60 = vmul.f32 %v7664_v28, %v1129_v9  ;;  %v943_v0 = vmul.f32 %v7745_v54, %v661_v56  ;;  %v6882_v40 = vpop.f32.mrb[57].mxu0  ;;  %v3085_v9 = vrot.slane %v1863_v15, %v7775_v43  ;;  %v8203_v54 = vld [vmem:[%s11078_s5] ss:$0 sm:$0xff] }
 0x152   :  { %v664_v4 = vpop.f32.mrb[58].mxu0 }
 0x153   :  { %v8195_v57 = vcombine.low %v2633_v58, %v2640_v6  ;;  %v1565_v2 = vpack.c.bf16 %v1489_v60, %v1488_v55  ;;  %v6883_v18 = vpop.f32.mrb[59].mxu0  ;;  %v1040_v5 = vadd.f32 %v8203_v54, %v943_v0  ;;  %v944_v13 = vmul.f32 %v8209_v1, %v664_v4 }
 0x154   :  { %4204 = vrot.lane.b32.xlu1 %v8193_v24, %s7282_s20  ;;  %3800 = vrot.lane.b32.xlu0 %v8121_v62, %s7281_s13  ;;  %v6610_v16 = vpack.c.bf16 %v1489_v60, %v1489_v60  ;;  %v2642_v55 = vcombine.low %v1862_v51, %v1864_v20  ;;  %v3718_v60 = vrot.slane %v3085_v9, 1  ;;  %v3357_v18 = vshll.u32 %v3085_v9, 16  ;;  %v7190_v20 = vld [vmem:[%s11073_s0 + $0x150] sm:$0xff]  }
 0x155   :  { %v1872_v12 = vrot.slane %v1565_v2, %v7775_v43  ;;  %6989 = vmatmul.mubr.msk.bf16.gmra.mrb[164].mxu0 %vm375_vm2, %v7189_v8  ;;  %v1130_v58 = vmax.f32 %v1040_v5, 0.0  ;;  %v1041_v56 = vadd.f32 %v8203_v54, %v944_v13  ;;  %v3717_v15 = vrot.slane %v8195_v57, 1 }
 0x156   :  { %6992 = vmatprep.mubr.msk.bf16.mxu0 %vm7277_vm0, %v11269_v59  ;;  %v3352_v6 = vshll.u32 %v8195_v57, 16  ;;  %v3350_v4 = vshrl.u32 %v8195_v57, 16  ;;  %v1879_v5 = vrot.slane %v6610_v16, %v7775_v43  ;;  %v2650_v9 = vrot.slane %v2642_v55, %v7775_v43 }
 0x157   :  { %v1880_v0 = vcombine.high %v1872_v12, %v1872_v12  ;;  %v1131_v40 = vmax.f32 %v1041_v56, 0.0  ;;  %v1490_v56 = vmul.f32 %v7669_v30, %v1130_v58  ;;  %v8234_v26 = vsel %vm3689_vm3, %v3717_v15, %v3718_v60 }
 0x158   :  { %4104 = vrot.lane.b32.xlu1 %v8195_v57, %s7281_s13  ;;  %3639 = vrot.lane.b32.xlu0 %v8143_v7, %s7279_s2  ;;  %v669_v8 = vpop.f32.mrb[60].mxu0  ;;  %v3354_v2 = vrot.slane %v3352_v6, 1  ;;  %11288 = vst [vmem:[#allocation58_spill] sm:$0xff] %v8234_v26  ;;  %v3359_v15 = vrot.slane %v3357_v18, 1 }
 0x159   :  { %v2643_v13 = vcombine.low %v1872_v12, %v1880_v0  ;;  %v945_v62 = vmul.f32 %v8209_v1, %v669_v8  ;;  %v6886_v51 = vpop.f32.mrb[61].mxu0  ;;  %v1491_v28 = vmul.f32 %v7671_v31, %v1131_v40 }
 0x15a   :  { %v672_v27 = vpop.f32.mrb[62].mxu0  ;;  %v3355_v6 = vor.u32 %v3354_v2, %v3350_v4 }
 0x15b   :  { %v2657_v16 = vrot.slane %v2643_v13, %v7775_v43  ;;  %v1042_v12 = vadd.f32 %v8203_v54, %v945_v62  ;;  %v946_v0 = vmul.f32 %v8209_v1, %v672_v27  ;;  %v6887_v8 = vpop.f32.mrb[63].mxu0  ;;  %v1566_v58 = vpack.c.bf16 %v1491_v28, %v1490_v56 }
 0x15c   :  { %4008 = vrot.lane.b32.xlu1 %v8234_v26, %s7279_s2  ;;  %v6611_v51 = vpack.c.bf16 %v1491_v28, %v1491_v28  ;;  %3898 = vrot.lane.b32.xlu0 %v8137_v10, %s7282_s20  ;;  %v1881_v62 = vcombine.high %v1879_v5, %v1879_v5  ;;  %v8250_v4 = vsel %vm3240_vm4, %v3355_v6, %v3359_v15 }
 0x15d   :  { %v8244_v60 = vcombine.low %v2650_v9, %v2657_v16  ;;  %v1132_v40 = vmax.f32 %v1042_v12, 0.0  ;;  %v1043_v55 = vadd.f32 %v8203_v54, %v946_v0  ;;  %6993 = vmatmul.mubr.msk.bf16.gmra.mrb[168].mxu0 %vm375_vm2, %v7190_v20  ;;  %v1889_v27 = vrot.slane %v1566_v58, %v7775_v43  ;;  %v7191_v0 = vld [vmem:[%s11073_s0 + $0x158] sm:$0xff]  }
 0x15e   :  { %6996 = vmatprep.mubr.msk.bf16.mxu0 %vm7277_vm0, %v11269_v59  ;;  %v3092_v28 = vrot.slane %v1879_v5, %v7775_v43  ;;  %v1896_v18 = vrot.slane %v6611_v51, %v7775_v43 }
 0x15f   :  { %v1133_v2 = vmax.f32 %v1043_v55, 0.0  ;;  %v1897_v13 = vcombine.high %v1889_v27, %v1889_v27  ;;  %v2659_v56 = vcombine.low %v1881_v62, %v1889_v27  ;;  %v3364_v6 = vshll.u32 %v8244_v60, 16 }
 0x160   :  { %4206 = vrot.lane.b32.xlu1 %v8250_v4, %s7282_s20  ;;  %3802 = vrot.lane.b32.xlu0 %v8175_v14, %s7281_s13  ;;  %v677_v20 = vpop.f32.mrb[64].mxu0  ;;  %v1492_v9 = vmul.f32 %v7679_v33, %v1132_v40  ;;  %v3720_v51 = vrot.slane %v8244_v60, 1  ;;  %v3721_v15 = vrot.slane %v3092_v28, 1 }
 0x161   :  { %v1493_v16 = vmul.f32 %v7681_v34, %v1133_v2  ;;  %v947_v5 = vmul.f32 %v8209_v1, %v677_v20  ;;  %v6890_v12 = vpop.f32.mrb[65].mxu0  ;;  %v2660_v8 = vcombine.low %v1897_v13, %v1896_v18  ;;  %v3366_v55 = vrot.slane %v3364_v6, 1 }
 0x162   :  { %v680_v58 = vpop.f32.mrb[66].mxu0  ;;  %v2667_v20 = vrot.slane %v2659_v56, %v7775_v43  ;;  %v3362_v13 = vshrl.u32 %v8244_v60, 16  ;;  %v3369_v6 = vshll.u32 %v3092_v28, 16  ;;  %v8284_v56 = vsel %vm3689_vm3, %v3720_v51, %v3721_v15 }
 0x163   :  { %v1567_v62 = vpack.c.bf16 %v1493_v16, %v1492_v9  ;;  %v6612_v27 = vpack.c.bf16 %v1493_v16, %v1493_v16  ;;  %v1044_v14 = vadd.f32 %v8203_v54, %v947_v5  ;;  %v948_v40 = vmul.f32 %v8209_v1, %v680_v58  ;;  %v6891_v2 = vpop.f32.mrb[67].mxu0  ;;  %11289 = vst [vmem:[#allocation59_spill] sm:$0xff] %v8284_v56 }
 0x164   :  { %4106 = vrot.lane.b32.xlu1 %v8244_v60, %s7281_s13  ;;  %v2674_v12 = vrot.slane %v2660_v8, %v7775_v43  ;;  %3641 = vrot.lane.b32.xlu0 %v8193_v24, %s7279_s2  ;;  %v3367_v8 = vor.u32 %v3366_v55, %v3362_v13  ;;  %v1898_v34 = vcombine.high %v1896_v18, %v1896_v18 }
 0x165   :  { %v1906_v9 = vrot.slane %v1567_v62, %v7775_v43  ;;  %v1913_v16 = vrot.slane %v6612_v27, %v7775_v43  ;;  %v1134_v5 = vmax.f32 %v1044_v14, 0.0  ;;  %v1045_v58 = vadd.f32 %v8203_v54, %v948_v40  ;;  %6997 = vmatmul.mubr.msk.bf16.gmra.mrb[172].mxu0 %vm375_vm2, %v7191_v0 }
 0x166   :  { %v8281_v2 = vcombine.low %v2667_v20, %v2674_v12  ;;  %7000 = vmatprep.mubr.msk.bf16.mxu0 %vm7277_vm0, %v11269_v59  ;;  %v3371_v27 = vrot.slane %v3369_v6, 1  ;;  %v7192_v12 = vld [vmem:[%s11073_s0 + $0x160] sm:$0xff]  }
 0x167   :  { %v1914_v28 = vcombine.high %v1906_v9, %v1906_v9  ;;  %v1915_v33 = vcombine.high %v1913_v16, %v1913_v16  ;;  %v1135_v62 = vmax.f32 %v1045_v58, 0.0  ;;  %v1494_v14 = vmul.f32 %v7686_v35, %v1134_v5 }
 0x168   :  { %4010 = vrot.lane.b32.xlu1 %v8284_v56, %s7279_s2  ;;  %3900 = vrot.lane.b32.xlu0 %v8195_v57, %s7282_s20  ;;  %v685_v0 = vpop.f32.mrb[68].mxu0  ;;  %v3376_v51 = vshll.u32 %v8281_v2, 16  ;;  %v8300_v5 = vsel %vm3240_vm4, %v3367_v8, %v3371_v27  ;;  %v3099_v58 = vrot.slane %v1898_v34, %v7775_v43 }
 0x169   :  { %v2676_v15 = vcombine.low %v1906_v9, %v1914_v28  ;;  %v2677_v55 = vcombine.low %v1913_v16, %v1915_v33  ;;  %v1495_v40 = vmul.f32 %v7688_v36, %v1135_v62  ;;  %v949_v18 = vmul.f32 %v8209_v1, %v685_v0  ;;  %v6894_v20 = vpop.f32.mrb[69].mxu0 }
 0x16a   :  { %v688_v13 = vpop.f32.mrb[70].mxu0  ;;  %v3378_v27 = vrot.slane %v3376_v51, 1  ;;  %v3374_v20 = vshrl.u32 %v8281_v2, 16  ;;  %v3724_v51 = vrot.slane %v3099_v58, 1 }
 0x16b   :  { %v2684_v6 = vrot.slane %v2676_v15, %v7775_v43  ;;  %v2691_v9 = vrot.slane %v2677_v55, %v7775_v43  ;;  %v1568_v33 = vpack.c.bf16 %v1495_v40, %v1494_v14  ;;  %v6613_v16 = vpack.c.bf16 %v1495_v40, %v1495_v40  ;;  %v6895_v28 = vpop.f32.mrb[71].mxu0 }
 0x16c   :  { %4208 = vrot.lane.b32.xlu1 %v8300_v5, %s7282_s20  ;;  %v1046_v62 = vadd.f32 %v8203_v54, %v949_v18  ;;  %v950_v0 = vmul.f32 %v8209_v1, %v688_v13  ;;  %3804 = vrot.lane.b32.xlu0 %v8234_v26, %s7281_s13  ;;  %v3723_v55 = vrot.slane %v8281_v2, 1  ;;  %v3381_v13 = vshll.u32 %v3099_v58, 16 }
 0x16d   :  { %v8311_v8 = vcombine.low %v2684_v6, %v2691_v9  ;;  %v1923_v34 = vrot.slane %v1568_v33, %v7775_v43  ;;  %7001 = vmatmul.mubr.msk.bf16.gmra.mrb[176].mxu0 %vm375_vm2, %v7192_v12  ;;  %v1930_v40 = vrot.slane %v6613_v16, %v7775_v43 }
 0x16e   :  { %v1136_v14 = vmax.f32 %v1046_v62, 0.0  ;;  %v1047_v15 = vadd.f32 %v8203_v54, %v950_v0  ;;  %v3379_v62 = vor.u32 %v3378_v27, %v3374_v20  ;;  %v8327_v26 = vsel %vm3689_vm3, %v3723_v55, %v3724_v51 }
 0x16f   :  { %v1931_v18 = vcombine.high %v1923_v34, %v1923_v34  ;;  %11290 = vst [vmem:[#allocation60_spill] sm:$0xff] %v8327_v26  ;;  %v3106_v27 = vrot.slane %v1923_v34, %v7775_v43 }
 0x170   :  { %4108 = vrot.lane.b32.xlu1 %v8281_v2, %s7281_s13  ;;  %v1137_v6 = vmax.f32 %v1047_v15, 0.0  ;;  %3643 = vrot.lane.b32.xlu0 %v8250_v4, %s7279_s2  ;;  %v693_v12 = vpop.f32.mrb[72].mxu0  ;;  %v1496_v16 = vmul.f32 %v7694_v38, %v1136_v14 }
 0x171   :  { %v2693_v9 = vcombine.low %v1931_v18, %v1930_v40  ;;  %v951_v33 = vmul.f32 %v8209_v1, %v693_v12  ;;  %v6898_v28 = vpop.f32.mrb[73].mxu0  ;;  %v3383_v18 = vrot.slane %v3381_v13, 1  ;;  %v3388_v13 = vshll.u32 %v8311_v8, 16 }
 0x172   :  { %v1497_v0 = vmul.f32 %v7698_v39, %v1137_v6  ;;  %v696_v59 = vpop.f32.mrb[74].mxu0  ;;  %v1932_v6 = vcombine.high %v1930_v40, %v1930_v40 }
 0x173   :  { %v1048_v15 = vadd.f32 %v8203_v54, %v951_v33  ;;  %v952_v36 = vmul.f32 %v8209_v1, %v696_v59  ;;  %v6899_v58 = vpop.f32.mrb[75].mxu0  ;;  %v8338_v20 = vsel %vm3240_vm4, %v3379_v62, %v3383_v18  ;;  %v2701_v18 = vrot.slane %v2693_v9, %v7775_v43 }
 0x174   :  { %4012 = vrot.lane.b32.xlu1 %v8327_v26, %s7279_s2  ;;  %v1569_v12 = vpack.c.bf16 %v1497_v0, %v1496_v16  ;;  %v6614_v28 = vpack.c.bf16 %v1497_v0, %v1497_v0  ;;  %3902 = vrot.lane.b32.xlu0 %v8244_v60, %s7282_s20  ;;  %v3393_v58 = vshll.u32 %v3106_v27, 16  ;;  %v3386_v9 = vshrl.u32 %v8311_v8, 16 }
 0x175   :  { %v1138_v14 = vmax.f32 %v1048_v15, 0.0  ;;  %v1049_v55 = vadd.f32 %v8203_v54, %v952_v36  ;;  %v3727_v36 = vrot.slane %v3106_v27, 1 }
 0x176   :  { %v1940_v59 = vrot.slane %v1569_v12, %v7775_v43  ;;  %v1947_v51 = vrot.slane %v6614_v28, %v7775_v43 }
 0x177   :  { %v1139_v33 = vmax.f32 %v1049_v55, 0.0  ;;  %v1498_v62 = vmul.f32 %v7703_v41, %v1138_v14 }
 0x178   :  { %4210 = vrot.lane.b32.xlu1 %v8338_v20, %s7282_s20  ;;  %v2694_v16 = vcombine.low %v1932_v6, %v1940_v59  ;;  %3806 = vrot.lane.b32.xlu0 %v8284_v56, %s7281_s13  ;;  %v701_v34 = vpop.f32.mrb[76].mxu0  ;;  %v1949_v12 = vcombine.high %v1947_v51, %v1947_v51  ;;  %v3390_v6 = vrot.slane %v3388_v13, 1 }
 0x179   :  { %v1499_v40 = vmul.f32 %v7705_v42, %v1139_v33  ;;  %v953_v0 = vmul.f32 %v8209_v1, %v701_v34  ;;  %v6902_v15 = vpop.f32.mrb[77].mxu0  ;;  %v3726_v33 = vrot.slane %v8311_v8, 1  ;;  %v1948_v42 = vcombine.high %v1940_v59, %v1940_v59 }
 0x17a   :  { %v2708_v28 = vrot.slane %v2694_v16, %v7775_v43  ;;  %v704_v55 = vpop.f32.mrb[78].mxu0  ;;  %v2710_v15 = vcombine.low %v1947_v51, %v1949_v12 }
 0x17b   :  { %v1570_v39 = vpack.c.bf16 %v1499_v40, %v1498_v62  ;;  %v1050_v56 = vadd.f32 %v8203_v54, %v953_v0  ;;  %v954_v38 = vmul.f32 %v8209_v1, %v704_v55  ;;  %v6903_v14 = vpop.f32.mrb[79].mxu0  ;;  %v6615_v27 = vpack.c.bf16 %v1499_v40, %v1499_v40 }
 0x17c   :  { %4110 = vrot.lane.b32.xlu1 %v8311_v8, %s7281_s13  ;;  %v8357_v34 = vcombine.low %v2701_v18, %v2708_v28  ;;  %3645 = vrot.lane.b32.xlu0 %v8300_v5, %s7279_s2  ;;  %v8365_v0 = vsel %vm3689_vm3, %v3726_v33, %v3727_v36  ;;  %v3391_v55 = vor.u32 %v3390_v6, %v3386_v9  ;;  %v3395_v14 = vrot.slane %v3393_v58, 1 }
 0x17d   :  { %v1957_v13 = vrot.slane %v1570_v39, %v7775_v43  ;;  %v1140_v16 = vmax.f32 %v1050_v56, 0.0  ;;  %v1051_v62 = vadd.f32 %v8203_v54, %v954_v38  ;;  %11292 = vst [vmem:[#allocation62_spill] sm:$0xff] %v8365_v0  ;;  %v1964_v40 = vrot.slane %v6615_v27, %v7775_v43 }
 0x17e   :  { %11291 = vst [vmem:[#allocation61_spill] sm:$0xff] %v8357_v34  ;;  %v2718_v59 = vrot.slane %v2710_v15, %v7775_v43  ;;  %v8377_v6 = vsel %vm3240_vm4, %v3391_v55, %v3395_v14  ;;  %v3113_v33 = vrot.slane %v1948_v42, %v7775_v43  ;;  %v3400_v27 = vshll.u32 %v8357_v34, 16 }
 0x17f   :  { %v1965_v18 = vcombine.high %v1957_v13, %v1957_v13  ;;  %v1141_v28 = vmax.f32 %v1051_v62, 0.0  ;;  %v1500_v38 = vmul.f32 %v7713_v44, %v1140_v16  ;;  %v1966_v55 = vcombine.high %v1964_v40, %v1964_v40 }
 0x180   :  { %4014 = vrot.lane.b32.xlu1 %v8365_v0, %s7279_s2  ;;  %3904 = vrot.lane.b32.xlu0 %v8281_v2, %s7282_s20  ;;  %v709_v39 = vpop.f32.mrb[80].mxu0 }
 0x181   :  { %v2711_v56 = vcombine.low %v1957_v13, %v1965_v18  ;;  %v1501_v36 = vmul.f32 %v7715_v45, %v1141_v28  ;;  %v955_v51 = vmul.f32 %v8209_v1, %v709_v39  ;;  %v6906_v58 = vpop.f32.mrb[81].mxu0  ;;  %v3729_v28 = vrot.slane %v8357_v34, 1 }
 0x182   :  { %v712_v12 = vpop.f32.mrb[82].mxu0 }
 0x183   :  { %v2725_v9 = vrot.slane %v2711_v56, %v7775_v43  ;;  %v1571_v13 = vpack.c.bf16 %v1501_v36, %v1500_v38  ;;  %v6616_v62 = vpack.c.bf16 %v1501_v36, %v1501_v36  ;;  %v1052_v16 = vadd.f32 %v8203_v54, %v955_v51  ;;  %v6907_v18 = vpop.f32.mrb[83].mxu0 }
 0x184   :  { %4212 = vrot.lane.b32.xlu1 %v8377_v6, %s7282_s20  ;;  %v956_v15 = vmul.f32 %v8209_v1, %v712_v12  ;;  %3808 = vrot.lane.b32.xlu0 %v8327_v26, %s7281_s13  ;;  %v3402_v38 = vrot.slane %v3400_v27, 1  ;;  %v3730_v12 = vrot.slane %v3113_v33, 1 }
 0x185   :  { %v8388_v14 = vcombine.low %v2718_v59, %v2725_v9  ;;  %v1974_v42 = vrot.slane %v1571_v13, %v7775_v43  ;;  %v1142_v39 = vmax.f32 %v1052_v16, 0.0  ;;  %v8394_v36 = vrot.slane %v6616_v62, %v7775_v43 }
 0x186   :  { %v1053_v56 = vadd.f32 %v8203_v54, %v956_v15  ;;  %v3398_v9 = vshrl.u32 %v8357_v34, 16  ;;  %v3405_v13 = vshll.u32 %v3113_v33, 16  ;;  %v8404_v15 = vsel %vm3689_vm3, %v3729_v28, %v3730_v12 }
 0x187   :  { %11293 = vst [vmem:[#allocation63_spill] sm:$0xff] %v8388_v14  ;;  %v1982_v51 = vcombine.high %v1974_v42, %v1974_v42  ;;  %v2727_v58 = vcombine.low %v1966_v55, %v1974_v42  ;;  %11294 = vst [vmem:[#allocation64_spill] sm:$0xff] %v8404_v15  ;;  %v1502_v55 = vmul.f32 %v7720_v46, %v1142_v39  ;;  %v3412_v45 = vshll.u32 %v8388_v14, 16 }
 0x188   :  { %4112 = vrot.lane.b32.xlu1 %v8357_v34, %s7281_s13  ;;  %v1143_v18 = vmax.f32 %v1053_v56, 0.0  ;;  %3647 = vrot.lane.b32.xlu0 %v8338_v20, %s7279_s2  ;;  %v717_v59 = vpop.f32.mrb[84].mxu0  ;;  %v3403_v26 = vor.u32 %v3402_v38, %v3398_v9  ;;  %v3407_v38 = vrot.slane %v3405_v13, 1 }
 0x189   :  { %v2728_v16 = vcombine.low %v1982_v51, %v8394_v36  ;;  %v957_v27 = vmul.f32 %v8209_v1, %v717_v59  ;;  %v6910_v62 = vpop.f32.mrb[85].mxu0  ;;  %v2735_v44 = vrot.slane %v2727_v58, %v7775_v43 }
 0x18a   :  { %v1503_v42 = vmul.f32 %v7722_v47, %v1143_v18  ;;  %v720_v56 = vpop.f32.mrb[86].mxu0  ;;  %v3120_v18 = vrot.slane %v1964_v40, %v7775_v43  ;;  %v3410_v40 = vshrl.u32 %v8388_v14, 16  ;;  %v3732_v47 = vrot.slane %v8388_v14, 1 }
 0x18b   :  { %v2742_v33 = vrot.slane %v2728_v16, %v7775_v43  ;;  %v1054_v51 = vadd.f32 %v8203_v54, %v957_v27  ;;  %v958_v59 = vmul.f32 %v8209_v1, %v720_v56  ;;  %v6911_v28 = vpop.f32.mrb[87].mxu0  ;;  %v8424_v56 = vsel %vm3240_vm4, %v3403_v26, %v3407_v38 }
 0x18c   :  { %4016 = vrot.lane.b32.xlu1 %v8404_v15, %s7279_s2  ;;  %v1572_v12 = vpack.c.bf16 %v1503_v42, %v1502_v55  ;;  %v6617_v39 = vpack.c.bf16 %v1503_v42, %v1503_v42  ;;  %3906 = vrot.lane.b32.xlu0 %v8311_v8, %s7282_s20  ;;  %v3414_v55 = vrot.slane %v3412_v45, 1 }
 0x18d   :  { %v8418_v9 = vcombine.low %v2735_v44, %v2742_v33  ;;  %v1144_v58 = vmax.f32 %v1054_v51, 0.0  ;;  %v1055_v16 = vadd.f32 %v8203_v54, %v958_v59  ;;  %v3417_v33 = vshll.u32 %v3120_v18, 16 }
 0x18e   :  { %v1991_v27 = vrot.slane %v1572_v12, %v7775_v43  ;;  %v1998_v62 = vrot.slane %v6617_v39, %v7775_v43  ;;  %v1983_v51 = vcombine.high %v8394_v36, %v8394_v36 }
 0x18f   :  { %11295 = vst [vmem:[#allocation65_spill] sm:$0xff] %v8418_v9  ;;  %v1145_v42 = vmax.f32 %v1055_v16, 0.0  ;;  %v1504_v26 = vmul.f32 %v7728_v49, %v1144_v58 }
 0x190   :  { %4214 = vrot.lane.b32.xlu1 %v8424_v56, %s7282_s20  ;;  %v1999_v13 = vcombine.high %v1991_v27, %v1991_v27  ;;  %v2000_v28 = vcombine.high %v1998_v62, %v1998_v62  ;;  %3810 = vrot.lane.b32.xlu0 %v8365_v0, %s7281_s13  ;;  %v725_v44 = vpop.f32.mrb[88].mxu0  ;;  %v3415_v0 = vor.u32 %v3414_v55, %v3410_v40 }
 0x191   :  { %v1505_v45 = vmul.f32 %v7732_v50, %v1145_v42  ;;  %v959_v59 = vmul.f32 %v8209_v1, %v725_v44  ;;  %v6914_v12 = vpop.f32.mrb[89].mxu0  ;;  %v8451_v40 = vrot.slane %v1983_v51, %v7775_v43  ;;  %v8467_v51 = vpop.permute.xlu1 %4422 }
 0x192   :  { %v3850_v39 = vcombine.low %v1991_v27, %v1999_v13  ;;  %v3851_v38 = vcombine.low %v1998_v62, %v2000_v28  ;;  %v728_v16 = vpop.f32.mrb[90].mxu0  ;;  %v3733_v27 = vrot.slane %v3120_v18, 1  ;;  %v3419_v28 = vrot.slane %v3417_v33, 1  ;;  %11297 = vst [vmem:[#allocation67_spill] sm:$0xff] %v8467_v51 }
 0x193   :  { %v1573_v46 = vpack.c.bf16 %v1505_v45, %v1504_v26  ;;  %v6618_v41 = vpack.c.bf16 %v1505_v45, %v1505_v45  ;;  %v1056_v35 = vadd.f32 %v8203_v54, %v959_v59  ;;  %v960_v31 = vmul.f32 %v8209_v1, %v728_v16  ;;  %v6915_v36 = vpop.f32.mrb[91].mxu0 }
 0x194   :  { %4114 = vrot.lane.b32.xlu1 %v8388_v14, %s7281_s13  ;;  %v3858_v58 = vrot.slane %v3850_v39, %v7775_v43  ;;  %v3865_v42 = vrot.slane %v3851_v38, %v7775_v43  ;;  %3649 = vrot.lane.b32.xlu0 %v8377_v6, %s7279_s2  ;;  %v8448_v44 = vsel %vm3689_vm3, %v3732_v47, %v3733_v27  ;;  %v3424_v47 = vshll.u32 %v8418_v9, 16 }
 0x195   :  { %v2008_v62 = vrot.slane %v1573_v46, %v7775_v43  ;;  %v2015_v55 = vrot.slane %v6618_v41, %v7775_v43  ;;  %v1146_v13 = vmax.f32 %v1056_v35, 0.0  ;;  %11296 = vst [vmem:[#allocation66_spill] sm:$0xff] %v8448_v44  ;;  %v1057_v12 = vadd.f32 %v8203_v54, %v960_v31 }
 0x196   :  { %v8453_v26 = vcombine.low %v3858_v58, %v3865_v42  ;;  %v8460_v41 = vsel %vm3240_vm4, %v3415_v0, %v3419_v28 }
 0x197   :  { %v2016_v45 = vcombine.high %v2008_v62, %v2008_v62  ;;  %v1506_v59 = vmul.f32 %v7737_v52, %v1146_v13  ;;  %v2017_v35 = vcombine.high %v2015_v55, %v2015_v55  ;;  %v3954_v18 = vrot.slane %v2008_v62, %v7775_v43 }
 0x198   :  { %4018 = vrot.lane.b32.xlu1 %v8448_v44, %s7279_s2  ;;  %3908 = vrot.lane.b32.xlu0 %v8357_v34, %s7282_s20  ;;  %v733_v46 = vpop.f32.mrb[92].mxu0  ;;  %v3965_v33 = vshll.u32 %v8453_v26, 16  ;;  %v3986_v0 = vrot.slane %v8453_v26, 1  ;;  %v3963_v42 = vshrl.u32 %v8453_v26, 16  ;;  %v1147_v62 = vmax.f32 %v1057_v12, 0.0 }
 0x199   :  { %v4056_v31 = vcombine.low %v2016_v45, %v2015_v55  ;;  %v1574_v39 = vpack.c.bf16 %v1506_v59, %v1506_v59  ;;  %v961_v38 = vmul.f32 %v8209_v1, %v733_v46  ;;  %v6918_v16 = vpop.f32.mrb[93].mxu0  ;;  %v3987_v58 = vrot.slane %v3954_v18, 1 }
 0x19a   :  { %v736_v36 = vpop.f32.mrb[94].mxu0  ;;  %v3967_v27 = vrot.slane %v3965_v33, 1  ;;  %v3970_v13 = vshll.u32 %v3954_v18, 16 }
 0x19b   :  { %v2024_v28 = vrot.slane %v1574_v39, %v7775_v43  ;;  %v1058_v52 = vadd.f32 %v8203_v54, %v961_v38  ;;  %v962_v51 = vmul.f32 %v8209_v1, %v736_v36  ;;  %v6919_v55 = vpop.f32.mrb[95].mxu0  ;;  %v8480_v45 = vsel %vm3689_vm3, %v3986_v0, %v3987_v58  ;;  %v8482_v39 = vpop.permute.xlu1 %3794 }
 0x19c   :  { %4216 = vrot.lane.b32.xlu1 %v8460_v41, %s7282_s20  ;;  %3812 = vrot.lane.b32.xlu0 %v8404_v15, %s7281_s13  ;;  %11298 = vst [vmem:[#allocation68_spill] sm:$0xff] %v8480_v45  ;;  %v3968_v59 = vor.u32 %v3967_v27, %v3963_v42  ;;  %v3972_v46 = vrot.slane %v3970_v13, 1  ;;  %v8484_v38 = vpop.permute.xlu0 %4424  ;;  %v3735_v36 = vrot.slane %v8418_v9, 1  ;;  %v3426_v55 = vrot.slane %v3424_v47, 1 }
 0x19d   :  { %v2025_v18 = vcombine.high %v2024_v28, %v2024_v28  ;;  %v4057_v33 = vcombine.low %v2017_v35, %v2024_v28  ;;  %v1148_v12 = vmax.f32 %v1058_v52, 0.0  ;;  %11299 = vst [vmem:[#allocation69_spill] sm:$0xff] %v8484_v38  ;;  %v1059_v16 = vadd.f32 %v8203_v54, %v962_v51 }
 0x19e   :  { %v8489_v50 = vsel %vm3240_vm4, %v3968_v59, %v3972_v46  ;;  %v1507_v0 = vmul.f32 %v7758_v63, %v1147_v62  ;;  %v3429_v35 = vshll.u32 %v8451_v40, 16  ;;  %v3736_v47 = vrot.slane %v8451_v40, 1 }
 0x19f   :  { %11300 = vst [vmem:[#allocation70_spill] sm:$0xff] %v8489_v50  ;;  %v1508_v58 = vmul.f32 %v7739_v53, %v1148_v12  ;;  %v4071_v52 = vrot.slane %v4057_v33, %v7775_v43  ;;  %v3422_v42 = vshrl.u32 %v8418_v9, 16  ;;  %v4064_v27 = vrot.slane %v4056_v31, %v7775_v43 }
 0x1a0   :  { %4116 = vrot.lane.b32.xlu1 %v8418_v9, %s7281_s13  ;;  %3651 = vrot.lane.b32.xlu0 %v8424_v56, %s7279_s2  ;;  %v741_v51 = vpop.f32.mrb[96].mxu0  ;;  %v4160_v63 = vrot.slane %v2025_v18, %v7775_v43  ;;  %v1149_v59 = vmax.f32 %v1059_v16, 0.0  ;;  %v8507_v12 = vsel %vm3689_vm3, %v3735_v36, %v3736_v47  ;;  %v3634_v18 = vpop.permute.xlu1 %3633 }
 0x1a1   :  { %v1575_v53 = vpack.c.bf16 %v1508_v58, %v1507_v0  ;;  %v6619_v13 = vpack.c.bf16 %v1508_v58, %v1508_v58  ;;  %v963_v28 = vmul.f32 %v8209_v1, %v741_v51  ;;  %v6922_v62 = vpop.f32.mrb[97].mxu0  ;;  %11301 = vst [vmem:[#allocation71_spill] sm:$0xff] %v8507_v12  ;;  %v3427_v15 = vor.u32 %v3426_v55, %v3422_v42 }
 0x1a2   :  { %v8504_v46 = vpop.permute.xlu0 %4000  ;;  %v744_v33 = vpop.f32.mrb[98].mxu0  ;;  %v8509_v40 = vcombine.low %v4064_v27, %v4071_v52  ;;  %v3431_v58 = vrot.slane %v3429_v35, 1  ;;  %v4176_v55 = vshll.u32 %v4160_v63, 16  ;;  %v4257_v52 = vrot.slane %v4160_v63, 1 }
 0x1a3   :  { %v2033_v38 = vrot.slane %v1575_v53, %v7775_v43  ;;  %v2040_v31 = vrot.slane %v6619_v13, %v7775_v43  ;;  %v1060_v0 = vadd.f32 %v8203_v54, %v963_v28  ;;  %v6923_v16 = vpop.f32.mrb[99].mxu0  ;;  %v964_v51 = vmul.f32 %v8209_v1, %v744_v33 }
 0x1a4   :  { %4020 = vrot.lane.b32.xlu1 %v8507_v12, %s7279_s2  ;;  %3910 = vrot.lane.b32.xlu0 %v8388_v14, %s7282_s20  ;;  %v4171_v36 = vshll.u32 %v8509_v40, 16  ;;  %v4256_v53 = vrot.slane %v8509_v40, 1  ;;  %v1509_v13 = vmul.f32 %v7789_v19, %v1149_v59  ;;  %v8525_v35 = vsel %vm3240_vm4, %v3427_v15, %v3431_v58 }
 0x1a5   :  { %v2041_v47 = vcombine.high %v2033_v38, %v2033_v38  ;;  %v2042_v42 = vcombine.high %v2040_v31, %v2040_v31  ;;  %v1150_v27 = vmax.f32 %v1060_v0, 0.0  ;;  %11302 = vst [vmem:[#allocation72_spill] sm:$0xff] %v8525_v35  ;;  %v4169_v62 = vshrl.u32 %v8509_v40, 16 }
 0x1a6   :  { %v8522_v28 = vpop.permute.xlu0 %3796  ;;  %v4173_v33 = vrot.slane %v4171_v36, 1  ;;  %v8532_v63 = vsel %vm3689_vm3, %v4256_v53, %v4257_v52  ;;  %v1061_v19 = vadd.f32 %v8203_v54, %v964_v51  ;;  %v4178_v0 = vrot.slane %v4176_v55, 1  ;;  %v8542_v52 = vld [vmem:[%s11079_s6 + $0x80] sm:$0xff]  }
 0x1a7   :  { %v2744_v16 = vcombine.low %v2033_v38, %v2041_v47  ;;  %v2745_v49 = vcombine.low %v2040_v31, %v2042_v42  ;;  %v1510_v14 = vmul.f32 %v7791_v29, %v1150_v27  ;;  %11303 = vst [vmem:[#allocation73_spill] sm:$0xff] %v8532_v63  ;;  %v3893_v31 = vpop.permute.xlu1 %3892  ;;  %7004 = vmatprep.subr.bf16.mxu1 %v8542_v52 }
 0x1a8   :  { %4218 = vrot.lane.b32.xlu1 %v8525_v35, %s7282_s20  ;;  %3814 = vrot.lane.b32.xlu0 %v8448_v44, %s7281_s13  ;;  %v749_v15 = vpop.f32.mrb[100].mxu0  ;;  %v4174_v59 = vor.u32 %v4173_v33, %v4169_v62 }
 0x1a9   :  { %v2752_v58 = vrot.slane %v2744_v16, %v7775_v43  ;;  %v2759_v38 = vrot.slane %v2745_v49, %v7775_v43  ;;  %v1576_v29 = vpack.c.bf16 %v1510_v14, %v1509_v13  ;;  %v6620_v36 = vpack.c.bf16 %v1510_v14, %v1510_v14  ;;  %v6926_v47 = vpop.f32.mrb[101].mxu0 }
 0x1aa   :  { %v965_v51 = vmul.f32 %v8209_v1, %v749_v15  ;;  %v3636_v42 = vpop.permute.xlu0 %3635  ;;  %v752_v27 = vpop.f32.mrb[102].mxu0  ;;  %v8546_v53 = vsel %vm3240_vm4, %v4174_v59, %v4178_v0  ;;  %v1151_v13 = vmax.f32 %v1061_v19, 0.0  ;;  %v4496_v16 = vsel %vm4486_vm5, %v7957_v37, %v3634_v18  ;;  %v11306_v18 = vld [vmem:[#allocation35_spill] sm:$0xff] }
 0x1ab   :  { %v8548_v55 = vcombine.low %v2752_v58, %v2759_v38  ;;  %v2050_v49 = vrot.slane %v1576_v29, %v7775_v43  ;;  %v6927_v14 = vpop.f32.mrb[103].mxu0  ;;  %v966_v33 = vmul.f32 %v8209_v1, %v752_v27  ;;  %v2057_v15 = vrot.slane %v6620_v36, %v7775_v43 }
 0x1ac   :  { %4118 = vrot.lane.b32.xlu1 %v8453_v26, %s7281_s13  ;;  %v1062_v62 = vadd.f32 %v8203_v54, %v965_v51  ;;  %3653 = vrot.lane.b32.xlu0 %v8460_v41, %s7279_s2  ;;  %v4498_v29 = vsel %vm4486_vm5, %v8014_v61, %v3636_v42  ;;  %v11305_v51 = vld [vmem:[#allocation41_spill] sm:$0xff] }
 0x1ad   :  { %11304 = vst [vmem:[#allocation74_spill] sm:$0xff] %v8548_v55  ;;  %v2058_v59 = vcombine.high %v2050_v49, %v2050_v49  ;;  %v1063_v47 = vadd.f32 %v8203_v54, %v966_v33  ;;  %v1511_v27 = vmul.f32 %v11305_v51, %v1151_v13  ;;  %v3134_v13 = vrot.slane %v2050_v49, %v7775_v43 }
 0x1ae   :  { %v4003_v0 = vpop.permute.xlu1 %4002  ;;  %v1152_v58 = vmax.f32 %v1062_v62, 0.0  ;;  %v4099_v38 = vpop.permute.xlu0 %4098  ;;  %v4561_v62 = vsel %vm4551_vm6, %v4496_v16, %v8482_v39  ;;  %v4563_v16 = vsel %vm4551_vm6, %v4498_v29, %v8522_v28 }
 0x1af   :  { %v2761_v19 = vcombine.low %v2058_v59, %v2057_v15  ;;  %v3436_v59 = vshll.u32 %v8548_v55, 16  ;;  %v8575_v44 = vsel %vm4616_vm7, %v4561_v62, %v3893_v31  ;;  %v1153_v61 = vmax.f32 %v1063_v47, 0.0 }
 0x1b0   :  { %4022 = vrot.lane.b32.xlu1 %v8480_v45, %s7279_s2  ;;  %v1512_v14 = vmul.f32 %v11306_v18, %v1152_v58  ;;  %3912 = vrot.lane.b32.xlu0 %v8418_v9, %s7282_s20  ;;  %v757_v36 = vpop.f32.mrb[104].mxu0  ;;  %v4727_v58 = vsel %vm4486_vm5, %v8072_v32, %v8504_v46  ;;  %v3434_v62 = vshrl.u32 %v8548_v55, 16  ;;  %v11308_v9 = vld [vmem:[#allocation38_spill] sm:$0xff] }
 0x1b1   :  { %v967_v42 = vmul.f32 %v8209_v1, %v757_v36  ;;  %v6930_v33 = vpop.f32.mrb[105].mxu0  ;;  %v2059_v36 = vcombine.high %v2057_v15, %v2057_v15  ;;  %v3438_v28 = vrot.slane %v3436_v59, 1  ;;  %v4730_v15 = vsel %vm4486_vm5, %v8150_v21, %v4003_v0 }
 0x1b2   :  { %v4101_v63 = vpop.permute.xlu1 %4100  ;;  %v1577_v51 = vpack.c.bf16 %v1512_v14, %v1511_v27  ;;  %v6621_v18 = vpack.c.bf16 %v1512_v14, %v1512_v14  ;;  %v8581_v45 = vpop.permute.xlu0 %3894  ;;  %v3738_v14 = vrot.slane %v8548_v55, 1  ;;  %v4818_v59 = vsel %vm4551_vm6, %v4727_v58, %v4099_v38 }
 0x1b3   :  { %v760_v39 = vpop.f32.mrb[106].mxu0  ;;  %v1064_v33 = vadd.f32 %v8203_v54, %v967_v42  ;;  %v3441_v42 = vshll.u32 %v3134_v13, 16  ;;  %v2769_v21 = vrot.slane %v2761_v19, %v7775_v43  ;;  %v4820_v19 = vsel %vm4551_vm6, %v4730_v15, %v4101_v63 }
 0x1b4   :  { %v968_v31 = vmul.f32 %v8209_v1, %v760_v39  ;;  %4220 = vrot.lane.b32.xlu1 %v8489_v50, %s7282_s20  ;;  %v6931_v49 = vpop.f32.mrb[107].mxu0  ;;  %v2067_v46 = vrot.slane %v1577_v51, %v7775_v43  ;;  %v2074_v27 = vrot.slane %v6621_v18, %v7775_v43  ;;  %3816 = vrot.lane.b32.xlu0 %v8507_v12, %s7281_s13  ;;  %v3739_v18 = vrot.slane %v3134_v13, 1  ;;  %v11307_v12 = vld [vmem:[#allocation37_spill] sm:$0xff] }
 0x1b5   :  { %v1154_v29 = vmax.f32 %v1064_v33, 0.0  ;;  %v1513_v50 = vmul.f32 %v11307_v12, %v1153_v61  ;;  %v3439_v33 = vor.u32 %v3438_v28, %v3434_v62 }
 0x1b6   :  { %v4005_v47 = vpop.permute.xlu1 %4004  ;;  %v2075_v39 = vcombine.high %v2067_v46, %v2067_v46  ;;  %v2762_v49 = vcombine.low %v2059_v36, %v2067_v46  ;;  %v1065_v51 = vadd.f32 %v8203_v54, %v968_v31  ;;  %v8598_v32 = vpop.permute.xlu0 %3798  ;;  %v2076_v37 = vcombine.high %v2074_v27, %v2074_v27 }
 0x1b7   :  { %v1514_v34 = vmul.f32 %v11308_v9, %v1154_v29  ;;  %v3443_v31 = vrot.slane %v3441_v42, 1  ;;  %v3740_v55 = vsel %vm3689_vm3, %v3738_v14, %v3739_v18  ;;  %v4733_v18 = vsel %vm4486_vm5, %v8143_v7, %v4005_v47 }
 0x1b8   :  { %4120 = vrot.lane.b32.xlu1 %v8509_v40, %s7281_s13  ;;  %v2776_v0 = vrot.slane %v2762_v49, %v7775_v43  ;;  %3655 = vrot.lane.b32.xlu0 %v8525_v35, %s7279_s2  ;;  %v765_v36 = vpop.f32.mrb[108].mxu0  ;;  %v8610_v13 = vrot.slane %v2075_v39, %v7775_v43  ;;  %v1155_v46 = vmax.f32 %v1065_v51, 0.0  ;;  %v2778_v35 = vcombine.low %v2074_v27, %v2076_v37 }
 0x1b9   :  { %v1578_v61 = vpack.c.bf16 %v1514_v34, %v1513_v50  ;;  %v6622_v12 = vpack.c.bf16 %v1514_v34, %v1514_v34  ;;  %v969_v38 = vmul.f32 %v8209_v1, %v765_v36  ;;  %v6934_v58 = vpop.f32.mrb[109].mxu0  ;;  %v4633_v51 = vsel %vm4616_vm7, %v4563_v16, %v8581_v45 }
 0x1ba   :  { %v4203_v9 = vpop.permute.xlu1 %4202  ;;  %v8613_v40 = vcombine.low %v2769_v21, %v2776_v0  ;;  %v4201_v29 = vpop.permute.xlu0 %4200  ;;  %v3742_v28 = vrot.slane %v8610_v13, 1  ;;  %v1515_v36 = vmul.f32 %v7864_v48, %v1155_v46  ;;  %v2786_v7 = vrot.slane %v2778_v35, %v7775_v43 }
 0x1bb   :  { %v768_v49 = vpop.f32.mrb[110].mxu0  ;;  %v2084_v39 = vrot.slane %v1578_v61, %v7775_v43  ;;  %v1066_v50 = vadd.f32 %v8203_v54, %v969_v38  ;;  %v2091_v62 = vrot.slane %v6622_v12, %v7775_v43  ;;  %v4886_v15 = vsel %vm4616_vm7, %v4818_v59, %v4201_v29 }
 0x1bc   :  { %4222 = vrot.lane.b32.xlu1 %v8546_v53, %s7282_s20  ;;  %v6935_v34 = vpop.f32.mrb[111].mxu0  ;;  %v970_v63 = vmul.f32 %v8209_v1, %v768_v49  ;;  %3914 = vrot.lane.b32.xlu0 %v8453_v26, %s7282_s20  ;;  %v3741_v37 = vrot.slane %v8613_v40, 1  ;;  %v3444_v53 = vsel %vm3240_vm4, %v3439_v33, %v3443_v31  ;;  %v4889_v59 = vsel %vm4616_vm7, %v4820_v19, %v4203_v9  ;;  %v11309_v33 = vld [vmem:[#allocation44_spill] sm:$0xff]  ;;  %v8660_v31 = vld [vmem:[%s11077_s4] ss:$0 sm:$0xff] }
 0x1bd   :  { %v2092_v27 = vcombine.high %v2084_v39, %v2084_v39  ;;  %v1156_v14 = vmax.f32 %v1066_v50, 0.0  ;;  %5351 = vmatprep.mubr.bf16.mxu1 %v4886_v15  ;;  %v3448_v21 = vshll.u32 %v8613_v40, 16  ;;  %v8647_v16 = vrot.slane %v2091_v62, %v7775_v43 }
 0x1be   :  { %v4103_v42 = vpop.permute.xlu1 %4102  ;;  %5352 = vmatmul.mubr.bf16.vlgmr.msra.gmra.mrb[0].mxu1 %v8575_v44  ;;  %v3638_v1 = vpop.permute.xlu0 %3637  ;;  %v8636_v26 = vsel %vm3689_vm3, %v3741_v37, %v3742_v28  ;;  %v1067_v44 = vadd.f32 %v8203_v54, %v970_v63  ;;  %v3446_v47 = vshrl.u32 %v8613_v40, 16  ;;  %v2093_v48 = vcombine.high %v2091_v62, %v2091_v62  ;;  %v8673_v62 = vld [vmem:[%s11078_s5] ss:$0 sm:$0xff] }
 0x1bf   :  { %v2779_v0 = vcombine.low %v2084_v39, %v2092_v27  ;;  %v1516_v61 = vmul.f32 %v11309_v33, %v1156_v14  ;;  %5359 = vmatprep.mubr.bf16.mxu1 %v4889_v59  ;;  %7005 = vmatpush3.bf16.msra.mxu1 %v8542_v52  ;;  %v4822_v54 = vsel %vm4551_vm6, %v4733_v18, %v4103_v42  ;;  %v3450_v29 = vrot.slane %v3448_v21, 1 }
 0x1c0   :  { %4024 = vrot.lane.b32.xlu1 %v8636_v26, %s7279_s2  ;;  %3818 = vrot.lane.b32.xlu0 %v3740_v55, %s7281_s13  ;;  %v773_v45 = vpop.f32.mrb[112].mxu0  ;;  %v4500_v55 = vsel %vm4486_vm5, %v8067_v3, %v3638_v1  ;;  %v1157_v28 = vmax.f32 %v1067_v44, 0.0  ;;  %v3745_v15 = vrot.slane %v8647_v16, 1  ;;  %v3453_v37 = vshll.u32 %v8610_v13, 16  ;;  %v11310_v44 = vld [vmem:[#allocation5_spill] sm:$0xff] }
 0x1c1   :  { %v2793_v12 = vrot.slane %v2779_v0, %v7775_v43  ;;  %v1579_v38 = vpack.c.bf16 %v1516_v61, %v1515_v36  ;;  %v6623_v9 = vpack.c.bf16 %v1516_v61, %v1516_v61  ;;  %v6938_v35 = vpop.f32.mrb[113].mxu0  ;;  %v971_v52 = vmul.f32 %v8660_v31, %v773_v45  ;;  %v11311_v45 = vld [vmem:[#allocation7_spill] sm:$0xff] }
 0x1c2   :  { %v8652_v58 = vpop.permute.xlu1 %4006  ;;  %v8663_v19 = vpop.permute.xlu0 %3896  ;;  %v4565_v18 = vsel %vm4551_vm6, %v4500_v55, %v8598_v32  ;;  %v3465_v1 = vshll.u32 %v8647_v16, 16  ;;  %v1517_v32 = vmul.f32 %v11310_v44, %v1157_v28 }
 0x1c3   :  { %v776_v46 = vpop.f32.mrb[114].mxu0  ;;  %v8665_v49 = vcombine.low %v2786_v7, %v2793_v12  ;;  %v2101_v39 = vrot.slane %v1579_v38, %v7775_v43  ;;  %v2108_v50 = vrot.slane %v6623_v9, %v7775_v43  ;;  %v1068_v63 = vadd.f32 %v8673_v62, %v971_v52 }
 0x1c4   :  { %v972_v34 = vmul.f32 %v8660_v31, %v776_v46  ;;  %v6939_v3 = vpop.f32.mrb[115].mxu0  ;;  %3657 = vrot.lane.b32.xlu0 %v3444_v53, %s7279_s2  ;;  %v3451_v7 = vor.u32 %v3450_v29, %v3446_v47  ;;  %v3455_v12 = vrot.slane %v3453_v37, 1 }
 0x1c5   :  { %v2109_v27 = vcombine.high %v2101_v39, %v2101_v39  ;;  %v2795_v14 = vcombine.low %v2093_v48, %v2101_v39  ;;  %4122 = vrot.lane.b32.xlu1 %v8665_v49, %s7281_s13  ;;  %v1158_v59 = vmax.f32 %v1068_v63, 0.0  ;;  %v3744_v13 = vrot.slane %v8665_v49, 1 }
 0x1c6   :  { %v4205_v42 = vpop.permute.xlu1 %4204  ;;  %v1069_v21 = vadd.f32 %v8673_v62, %v972_v34  ;;  %5360 = vmatmul.mubr.bf16.gmra.mrb[4].mxu1 %v4633_v51  ;;  %v8685_v53 = vpop.permute.xlu0 %3800  ;;  %v2110_v36 = vcombine.high %v2108_v50, %v2108_v50  ;;  %v3460_v61 = vshll.u32 %v8665_v49, 16  ;;  %v3458_v34 = vshrl.u32 %v8665_v49, 16 }
 0x1c7   :  { %v4892_v0 = vsel %vm4616_vm7, %v4822_v54, %v4205_v42  ;;  %v2796_v33 = vcombine.low %v2109_v27, %v2108_v50  ;;  %v1518_v16 = vmul.f32 %v11311_v45, %v1158_v59  ;;  %v8695_v48 = vsel %vm3689_vm3, %v3744_v13, %v3745_v15 }
 0x1c8   :  { %5367 = vmatprep.mubr.bf16.mxu1 %v4892_v0  ;;  %3916 = vrot.lane.b32.xlu0 %v8613_v40, %s7282_s20  ;;  %v781_v51 = vpop.f32.mrb[116].mxu0  ;;  %v2803_v38 = vrot.slane %v2795_v14, %v7775_v43  ;;  %v3462_v55 = vrot.slane %v3460_v61, 1  ;;  %v1159_v29 = vmax.f32 %v1069_v21, 0.0  ;;  %v8708_v37 = vrot.slane %v2110_v36, %v7775_v43 }
 0x1c9   :  { %v2810_v9 = vrot.slane %v2796_v33, %v7775_v43  ;;  %v973_v35 = vmul.f32 %v8660_v31, %v781_v51  ;;  %4026 = vrot.lane.b32.xlu1 %v8695_v48, %s7279_s2  ;;  %v6942_v47 = vpop.f32.mrb[117].mxu0  ;;  %v1580_v52 = vpack.c.bf16 %v1518_v16, %v1517_v32  ;;  %v6624_v46 = vpack.c.bf16 %v1518_v16, %v1518_v16  ;;  %v11312_v32 = vld [vmem:[#allocation9_spill] sm:$0xff]  ;;  %v11313_v16 = vld [vmem:[#allocation10_spill] sm:$0xff] }
 0x1ca   :  { %v4105_v54 = vpop.permute.xlu1 %4104  ;;  %v3640_v39 = vpop.permute.xlu0 %3639  ;;  %v3463_v42 = vor.u32 %v3462_v55, %v3458_v34  ;;  %v3467_v59 = vrot.slane %v3465_v1, 1  ;;  %v4736_v21 = vsel %vm4486_vm5, %v8193_v24, %v8652_v58  ;;  %v4636_v13 = vsel %vm4616_vm7, %v4565_v18, %v8663_v19 }
 0x1cb   :  { %v784_v50 = vpop.f32.mrb[118].mxu0  ;;  %v8703_v3 = vcombine.low %v2803_v38, %v2810_v9  ;;  %v1070_v28 = vadd.f32 %v8673_v62, %v973_v35  ;;  %v2118_v27 = vrot.slane %v1580_v52, %v7775_v43  ;;  %v2125_v14 = vrot.slane %v6624_v46, %v7775_v43 }
 0x1cc   :  { %v974_v63 = vmul.f32 %v8660_v31, %v784_v50  ;;  %v6943_v15 = vpop.f32.mrb[119].mxu0  ;;  %3820 = vrot.lane.b32.xlu0 %v8636_v26, %s7281_s13  ;;  %v8722_v36 = vsel %vm3240_vm4, %v3451_v7, %v3455_v12  ;;  %v1519_v45 = vmul.f32 %v11312_v32, %v1159_v29  ;;  %v8726_v26 = vsel %vm3240_vm4, %v3463_v42, %v3467_v59 }
 0x1cd   :  { %v1160_v0 = vmax.f32 %v1070_v28, 0.0  ;;  %v2126_v61 = vcombine.high %v2118_v27, %v2118_v27  ;;  %v2127_v44 = vcombine.high %v2125_v14, %v2125_v14  ;;  %v4824_v58 = vsel %vm4551_vm6, %v4736_v21, %v4105_v54  ;;  %4224 = vrot.lane.b32.xlu1 %v8726_v26, %s7282_s20 }
 0x1ce   :  { %v8719_v33 = vpop.permute.xlu1 %4008  ;;  %5368 = vmatmul.mubr.bf16.gmra.mrb[8].mxu1 %v4636_v13  ;;  %v3899_v1 = vpop.permute.xlu0 %3898  ;;  %v1071_v19 = vadd.f32 %v8673_v62, %v974_v63  ;;  %v3748_v18 = vrot.slane %v8708_v37, 1  ;;  %v4502_v12 = vsel %vm4486_vm5, %v8102_v17, %v3640_v39  ;;  %v3472_v9 = vshll.u32 %v8703_v3, 16 }
 0x1cf   :  { %v1520_v24 = vmul.f32 %v11313_v16, %v1160_v0  ;;  %v2812_v7 = vcombine.low %v2118_v27, %v2126_v61  ;;  %v2813_v51 = vcombine.low %v2125_v14, %v2127_v44  ;;  %v3747_v46 = vrot.slane %v8703_v3, 1 }
 0x1d0   :  { %3659 = vrot.lane.b32.xlu0 %v8722_v36, %s7279_s2  ;;  %v789_v38 = vpop.f32.mrb[120].mxu0  ;;  %v3474_v28 = vrot.slane %v3472_v9, 1  ;;  %v1161_v15 = vmax.f32 %v1071_v19, 0.0  ;;  %v4567_v14 = vsel %vm4551_vm6, %v4502_v12, %v8685_v53  ;;  %v3470_v0 = vshrl.u32 %v8703_v3, 16  ;;  %v11315_v12 = vld [vmem:[#allocation6_spill] sm:$0xff] }
 0x1d1   :  { %v1581_v35 = vpack.c.bf16 %v1520_v24, %v1519_v45  ;;  %v6625_v54 = vpack.c.bf16 %v1520_v24, %v1520_v24  ;;  %v975_v47 = vmul.f32 %v8660_v31, %v789_v38  ;;  %v6946_v52 = vpop.f32.mrb[121].mxu0  ;;  %v2820_v29 = vrot.slane %v2812_v7, %v7775_v43  ;;  %4124 = vrot.lane.b32.xlu1 %v8703_v3, %s7281_s13  ;;  %v11314_v7 = vld [vmem:[#allocation11_spill] sm:$0xff] }
 0x1d2   :  { %v4207_v55 = vpop.permute.xlu1 %4206  ;;  %v2827_v50 = vrot.slane %v2813_v51, %v7775_v43  ;;  %v3803_v34 = vpop.permute.xlu0 %3802  ;;  %v3477_v13 = vshll.u32 %v8708_v37, 16  ;;  %v4639_v45 = vsel %vm4616_vm7, %v4567_v14, %v3899_v1  ;;  %v8760_v16 = vsel %vm3689_vm3, %v3747_v46, %v3748_v18 }
 0x1d3   :  { %v792_v17 = vpop.f32.mrb[122].mxu0  ;;  %v4895_v39 = vsel %vm4616_vm7, %v4824_v58, %v4207_v55  ;;  %v2135_v63 = vrot.slane %v1581_v35, %v7775_v43  ;;  %v1072_v27 = vadd.f32 %v8673_v62, %v975_v47  ;;  %v2142_v61 = vrot.slane %v6625_v54, %v7775_v43 }
 0x1d4   :  { %v6947_v42 = vpop.f32.mrb[123].mxu0  ;;  %v8750_v59 = vcombine.low %v2820_v29, %v2827_v50  ;;  %v976_v21 = vmul.f32 %v8660_v31, %v792_v17  ;;  %5375 = vmatprep.mubr.bf16.mxu1 %v4895_v39  ;;  %3918 = vrot.lane.b32.xlu0 %v8665_v49, %s7282_s20  ;;  %v3475_v58 = vor.u32 %v3474_v28, %v3470_v0  ;;  %v3479_v9 = vrot.slane %v3477_v13, 1 }
 0x1d5   :  { %v2143_v44 = vcombine.high %v2135_v63, %v2135_v63  ;;  %v1162_v32 = vmax.f32 %v1072_v27, 0.0  ;;  %v1521_v51 = vmul.f32 %v11314_v7, %v1161_v15  ;;  %4028 = vrot.lane.b32.xlu1 %v8760_v16, %s7279_s2  ;;  %v3162_v18 = vrot.slane %v2135_v63, %v7775_v43 }
 0x1d6   :  { %v4107_v53 = vpop.permute.xlu1 %4106  ;;  %5376 = vmatmul.mubr.bf16.gmra.mrb[12].mxu1 %v4639_v45  ;;  %v3642_v24 = vpop.permute.xlu0 %3641  ;;  %v1073_v37 = vadd.f32 %v8673_v62, %v976_v21  ;;  %v3484_v46 = vshll.u32 %v8750_v59, 16  ;;  %v4739_v29 = vsel %vm4486_vm5, %v8250_v4, %v8719_v33  ;;  %v8780_v17 = vsel %vm3240_vm4, %v3475_v58, %v3479_v9 }
 0x1d7   :  { %v2829_v19 = vcombine.low %v2143_v44, %v2142_v61  ;;  %v1522_v38 = vmul.f32 %v11315_v12, %v1162_v32  ;;  %v4504_v47 = vsel %vm4486_vm5, %v8137_v10, %v3642_v24  ;;  %v2144_v63 = vcombine.high %v2142_v61, %v2142_v61 }
 0x1d8   :  { %3822 = vrot.lane.b32.xlu0 %v8695_v48, %s7281_s13  ;;  %v797_v1 = vpop.f32.mrb[124].mxu0  ;;  %v1163_v42 = vmax.f32 %v1073_v37, 0.0  ;;  %v4826_v4 = vsel %vm4551_vm6, %v4739_v29, %v4107_v53  ;;  %v4569_v21 = vsel %vm4551_vm6, %v4504_v47, %v3803_v34  ;;  %v3751_v61 = vrot.slane %v3162_v18, 1 }
 0x1d9   :  { %v1582_v35 = vpack.c.bf16 %v1522_v38, %v1521_v51  ;;  %v6626_v54 = vpack.c.bf16 %v1522_v38, %v1522_v38  ;;  %v6950_v52 = vpop.f32.mrb[125].mxu0  ;;  %v977_v50 = vmul.f32 %v8660_v31, %v797_v1  ;;  %4226 = vrot.lane.b32.xlu1 %v8780_v17, %s7282_s20  ;;  %v3486_v44 = vrot.slane %v3484_v46, 1  ;;  %v11316_v1 = vld [vmem:[#allocation8_spill] sm:$0xff] }
 0x1da   :  { %v8772_v55 = vpop.permute.xlu1 %4010  ;;  %v3901_v39 = vpop.permute.xlu0 %3900  ;;  %v3489_v32 = vshll.u32 %v3162_v18, 16  ;;  %v2837_v45 = vrot.slane %v2829_v19, %v7775_v43  ;;  %v3482_v34 = vshrl.u32 %v8750_v59, 16  ;;  %v1523_v19 = vmul.f32 %v7615_v11, %v1163_v42 }
 0x1db   :  { %v800_v28 = vpop.f32.mrb[126].mxu0  ;;  %v2152_v15 = vrot.slane %v1582_v35, %v7775_v43  ;;  %v2159_v10 = vrot.slane %v6626_v54, %v7775_v43  ;;  %v1074_v33 = vadd.f32 %v8673_v62, %v977_v50  ;;  %v4642_v53 = vsel %vm4616_vm7, %v4569_v21, %v3901_v39 }
 0x1dc   :  { %v978_v27 = vmul.f32 %v8660_v31, %v800_v28  ;;  %v6951_v14 = vpop.f32.mrb[127].mxu0  ;;  %3661 = vrot.lane.b32.xlu0 %v8726_v26, %s7279_s2  ;;  %v3750_v35 = vrot.slane %v8750_v59, 1  ;;  %v3487_v29 = vor.u32 %v3486_v44, %v3482_v34  ;;  %v3491_v50 = vrot.slane %v3489_v32, 1  ;;  %v11318_v34 = vld [vmem:[#allocation13_spill] sm:$0xff] }
 0x1dd   :  { %v2830_v0 = vcombine.low %v2144_v63, %v2152_v15  ;;  %v1164_v24 = vmax.f32 %v1074_v33, 0.0  ;;  %v2161_v51 = vcombine.high %v2159_v10, %v2159_v10  ;;  %4126 = vrot.lane.b32.xlu1 %v8750_v59, %s7281_s13  ;;  %v2160_v37 = vcombine.high %v2152_v15, %v2152_v15 }
 0x1de   :  { %v4209_v13 = vpop.permute.xlu1 %4208  ;;  %v8793_v58 = vpop.permute.xlu0 %3804  ;;  %v1075_v38 = vadd.f32 %v8673_v62, %v978_v27  ;;  %v8811_v11 = vsel %vm3689_vm3, %v3750_v35, %v3751_v61  ;;  %v8827_v44 = vsel %vm3240_vm4, %v3487_v29, %v3491_v50 }
 0x1df   :  { %v4898_v7 = vsel %vm4616_vm7, %v4826_v4, %v4209_v13  ;;  %v2844_v12 = vrot.slane %v2830_v0, %v7775_v43  ;;  %v1524_v9 = vmul.f32 %v11316_v1, %v1164_v24  ;;  %v2846_v27 = vcombine.low %v2159_v10, %v2161_v51 }
 0x1e0   :  { %5383 = vmatprep.mubr.bf16.mxu1 %v4898_v7  ;;  %3920 = vrot.lane.b32.xlu0 %v8703_v3, %s7282_s20  ;;  %v805_v18 = vpop.f32.mrb[128].mxu0  ;;  %v1165_v14 = vmax.f32 %v1075_v38, 0.0  ;;  %v8821_v0 = vrot.slane %v2160_v37, %v7775_v43  ;;  %v4742_v10 = vsel %vm4486_vm5, %v8300_v5, %v8772_v55  ;;  %v7210_v37 = vld [vmem:[%s11079_s6 + $0x88] sm:$0xff]  }
 0x1e1   :  { %5384 = vmatmul.mubr.bf16.gmra.mrb[16].mxu1 %v4642_v53  ;;  %v8807_v54 = vcombine.low %v2837_v45, %v2844_v12  ;;  %v979_v47 = vmul.f32 %v8660_v31, %v805_v18  ;;  %v6954_v46 = vpop.f32.mrb[129].mxu0  ;;  %v1583_v39 = vpack.c.bf16 %v1524_v9, %v1523_v19  ;;  %v6627_v28 = vpack.c.bf16 %v1524_v9, %v1524_v9  ;;  %v11317_v12 = vld [vmem:[#allocation12_spill] sm:$0xff] }
 0x1e2   :  { %v4109_v52 = vpop.permute.xlu1 %4108  ;;  %v3644_v63 = vpop.permute.xlu0 %3643  ;;  %4030 = vrot.lane.b32.xlu1 %v8811_v11, %s7279_s2  ;;  %v2854_v51 = vrot.slane %v2846_v27, %v7775_v43  ;;  %v1525_v38 = vmul.f32 %v11317_v12, %v1165_v14  ;;  %v3754_v18 = vrot.slane %v8821_v0, 1  ;;  %7006 = vmatprep.subr.bf16.mxu1 %v7210_v37 }
 0x1e3   :  { %v808_v15 = vpop.f32.mrb[130].mxu0  ;;  %v1076_v42 = vadd.f32 %v8673_v62, %v979_v47  ;;  %v2169_v21 = vrot.slane %v1583_v39, %v7775_v43  ;;  %v2176_v32 = vrot.slane %v6627_v28, %v7775_v43  ;;  %v4506_v24 = vsel %vm4486_vm5, %v8195_v57, %v3644_v63  ;;  %7007 = vmatpush3.bf16.msra.mxu1 %v7210_v37 }
 0x1e4   :  { %v980_v4 = vmul.f32 %v8660_v31, %v808_v15  ;;  %v6955_v33 = vpop.f32.mrb[131].mxu0  ;;  %3824 = vrot.lane.b32.xlu0 %v8760_v16, %s7281_s13  ;;  %v3496_v53 = vshll.u32 %v8807_v54, 16  ;;  %v4828_v57 = vsel %vm4551_vm6, %v4742_v10, %v4109_v52  ;;  %v3753_v9 = vrot.slane %v8807_v54, 1 }
 0x1e5   :  { %v1166_v13 = vmax.f32 %v1076_v42, 0.0  ;;  %v2177_v45 = vcombine.high %v2169_v21, %v2169_v21  ;;  %v4571_v39 = vsel %vm4551_vm6, %v4506_v24, %v8793_v58  ;;  %v2178_v28 = vcombine.high %v2176_v32, %v2176_v32 }
 0x1e6   :  { %v4013_v61 = vpop.permute.xlu1 %4012  ;;  %v3903_v7 = vpop.permute.xlu0 %3902  ;;  %v1077_v55 = vadd.f32 %v8673_v62, %v980_v4  ;;  %4228 = vrot.lane.b32.xlu1 %v8827_v44, %s7282_s20  ;;  %v3498_v14 = vrot.slane %v3496_v53, 1  ;;  %v3501_v24 = vshll.u32 %v8821_v0, 16  ;;  %v11321_v0 = vld [vmem:[#allocation15_spill] sm:$0xff] }
 0x1e7   :  { %v1526_v5 = vmul.f32 %v11318_v34, %v1166_v13  ;;  %v2847_v19 = vcombine.low %v2169_v21, %v2177_v45  ;;  %v4645_v13 = vsel %vm4616_vm7, %v4571_v39, %v3903_v7  ;;  %v3494_v45 = vshrl.u32 %v8807_v54, 16 }
 0x1e8   :  { %3663 = vrot.lane.b32.xlu0 %v8780_v17, %s7279_s2  ;;  %v813_v1 = vpop.f32.mrb[132].mxu0  ;;  %v1167_v4 = vmax.f32 %v1077_v55, 0.0  ;;  %v8871_v55 = vsel %vm3689_vm3, %v3753_v9, %v3754_v18  ;;  %v3503_v18 = vrot.slane %v3501_v24, 1 }
 0x1e9   :  { %v1584_v35 = vpack.c.bf16 %v1526_v5, %v1525_v38  ;;  %v6628_v47 = vpack.c.bf16 %v1526_v5, %v1526_v5  ;;  %v981_v46 = vmul.f32 %v8660_v31, %v813_v1  ;;  %v6958_v50 = vpop.f32.mrb[133].mxu0  ;;  %v2861_v52 = vrot.slane %v2847_v19, %v7775_v43  ;;  %11319 = vst [vmem:[#allocation41_spill] sm:$0xff] %v8871_v55 }
 0x1ea   :  { %v4211_v29 = vpop.permute.xlu1 %4210  ;;  %v8851_v63 = vpop.permute.xlu0 %3806  ;;  %4128 = vrot.lane.b32.xlu1 %v8807_v54, %s7281_s13  ;;  %v3499_v37 = vor.u32 %v3498_v14, %v3494_v45 }
 0x1eb   :  { %v816_v15 = vpop.f32.mrb[134].mxu0  ;;  %v4901_v27 = vsel %vm4616_vm7, %v4828_v57, %v4211_v29  ;;  %v2186_v42 = vrot.slane %v1584_v35, %v7775_v43  ;;  %v1078_v33 = vadd.f32 %v8673_v62, %v981_v46  ;;  %v8859_v10 = vcombine.low %v2854_v51, %v2861_v52  ;;  %v11320_v57 = vld [vmem:[#allocation14_spill] sm:$0xff] }
 0x1ec   :  { %v982_v58 = vmul.f32 %v8660_v31, %v816_v15  ;;  %v6959_v21 = vpop.f32.mrb[135].mxu0  ;;  %5391 = vmatprep.mubr.bf16.mxu1 %v4901_v27  ;;  %3922 = vrot.lane.b32.xlu0 %v8750_v59, %s7282_s20  ;;  %v8867_v53 = vrot.slane %v6628_v47, %v7775_v43  ;;  %v1527_v1 = vmul.f32 %v11320_v57, %v1167_v4 }
 0x1ed   :  { %v2194_v12 = vcombine.high %v2186_v42, %v2186_v42  ;;  %v2863_v38 = vcombine.low %v2178_v28, %v2186_v42  ;;  %v1168_v34 = vmax.f32 %v1078_v33, 0.0  ;;  %5392 = vmatmul.mubr.bf16.gmra.mrb[20].mxu1 %v4645_v13  ;;  %v4745_v46 = vsel %vm4486_vm5, %v8338_v20, %v4013_v61 }
 0x1ee   :  { %v4111_v5 = vpop.permute.xlu1 %4110  ;;  %v1079_v51 = vadd.f32 %v8673_v62, %v982_v58  ;;  %v3646_v7 = vpop.permute.xlu0 %3645  ;;  %4032 = vrot.lane.b32.xlu1 %v8871_v55, %s7279_s2  ;;  %v8884_v29 = vrot.slane %v2176_v32, %v7775_v43  ;;  %v8893_v61 = vsel %vm3240_vm4, %v3499_v37, %v3503_v18  ;;  %v3508_v32 = vshll.u32 %v8859_v10, 16 }
 0x1ef   :  { %v2864_v19 = vcombine.low %v2194_v12, %v8867_v53  ;;  %v1528_v35 = vmul.f32 %v11321_v0, %v1168_v34  ;;  %v2871_v47 = vrot.slane %v2863_v38, %v7775_v43  ;;  %v4508_v20 = vsel %vm4486_vm5, %v8244_v60, %v3646_v7 }
 0x1f0   :  { %3826 = vrot.lane.b32.xlu0 %v8811_v11, %s7281_s13  ;;  %v821_v9 = vpop.f32.mrb[136].mxu0  ;;  %v1169_v14 = vmax.f32 %v1079_v51, 0.0  ;;  %v4830_v60 = vsel %vm4551_vm6, %v4745_v46, %v4111_v5  ;;  %v3756_v12 = vrot.slane %v8859_v10, 1  ;;  %v4573_v37 = vsel %vm4551_vm6, %v4508_v20, %v8851_v63 }
 0x1f1   :  { %v2878_v50 = vrot.slane %v2864_v19, %v7775_v43  ;;  %v1585_v39 = vpack.c.bf16 %v1528_v35, %v1527_v1  ;;  %v6629_v28 = vpack.c.bf16 %v1528_v35, %v1528_v35  ;;  %v983_v52 = vmul.f32 %v8660_v31, %v821_v9  ;;  %v6962_v27 = vpop.f32.mrb[137].mxu0 }
 0x1f2   :  { %v8888_v15 = vpop.permute.xlu1 %4014  ;;  %v3905_v42 = vpop.permute.xlu0 %3904  ;;  %4230 = vrot.lane.b32.xlu1 %v8893_v61, %s7282_s20  ;;  %v1529_v19 = vmul.f32 %v7648_v22, %v1169_v14  ;;  %v3510_v0 = vrot.slane %v3508_v32, 1  ;;  %v3757_v9 = vrot.slane %v8884_v29, 1  ;;  %v2195_v22 = vcombine.high %v8867_v53, %v8867_v53 }
 0x1f3   :  { %v824_v4 = vpop.f32.mrb[138].mxu0  ;;  %v8896_v33 = vcombine.low %v2871_v47, %v2878_v50  ;;  %v2203_v58 = vrot.slane %v1585_v39, %v7775_v43  ;;  %v2210_v21 = vrot.slane %v6629_v28, %v7775_v43  ;;  %v1080_v13 = vadd.f32 %v8673_v62, %v983_v52 }
 0x1f4   :  { %v6963_v45 = vpop.f32.mrb[139].mxu0  ;;  %v984_v24 = vmul.f32 %v8660_v31, %v824_v4  ;;  %3665 = vrot.lane.b32.xlu0 %v8827_v44, %s7279_s2  ;;  %v4648_v1 = vsel %vm4616_vm7, %v4573_v37, %v3905_v42  ;;  %v3506_v50 = vshrl.u32 %v8859_v10, 16  ;;  %v8930_v42 = vsel %vm3689_vm3, %v3756_v12, %v3757_v9 }
 0x1f5   :  { %v2211_v38 = vcombine.high %v2203_v58, %v2203_v58  ;;  %v2212_v34 = vcombine.high %v2210_v21, %v2210_v21  ;;  %v1170_v51 = vmax.f32 %v1080_v13, 0.0  ;;  %11322 = vst [vmem:[#allocation35_spill] sm:$0xff] %v8930_v42  ;;  %v3520_v37 = vshll.u32 %v8896_v33, 16 }
 0x1f6   :  { %v4213_v7 = vpop.permute.xlu1 %4212  ;;  %v8911_v57 = vpop.permute.xlu0 %3808  ;;  %4130 = vrot.lane.b32.xlu1 %v8859_v10, %s7281_s13  ;;  %v1081_v63 = vadd.f32 %v8673_v62, %v984_v24 }
 0x1f7   :  { %v4904_v5 = vsel %vm4616_vm7, %v4830_v60, %v4213_v7  ;;  %v2880_v35 = vcombine.low %v2203_v58, %v2211_v38  ;;  %v2881_v47 = vcombine.low %v2210_v21, %v2212_v34  ;;  %v1530_v46 = vmul.f32 %v7650_v23, %v1170_v51 }
 0x1f8   :  { %5399 = vmatprep.mubr.bf16.mxu1 %v4904_v5  ;;  %3924 = vrot.lane.b32.xlu0 %v8807_v54, %s7282_s20  ;;  %v829_v18 = vpop.f32.mrb[140].mxu0  ;;  %v3513_v23 = vshll.u32 %v8884_v29, 16  ;;  %v3511_v58 = vor.u32 %v3510_v0, %v3506_v50  ;;  %v1171_v45 = vmax.f32 %v1081_v63, 0.0  ;;  %v3183_v7 = vrot.slane %v2195_v22, %v7775_v43  ;;  %v11323_v22 = vld [vmem:[#allocation16_spill] sm:$0xff] }
 0x1f9   :  { %5400 = vmatmul.mubr.bf16.gmra.mrb[24].mxu1 %v4648_v1  ;;  %v2888_v39 = vrot.slane %v2880_v35, %v7775_v43  ;;  %v2895_v28 = vrot.slane %v2881_v47, %v7775_v43  ;;  %v1586_v52 = vpack.c.bf16 %v1530_v46, %v1529_v19  ;;  %v6630_v27 = vpack.c.bf16 %v1530_v46, %v1530_v46  ;;  %v6966_v20 = vpop.f32.mrb[141].mxu0 }
 0x1fa   :  { %v4113_v14 = vpop.permute.xlu1 %4112  ;;  %v985_v53 = vmul.f32 %v8660_v31, %v829_v18  ;;  %v3648_v4 = vpop.permute.xlu0 %3647  ;;  %4034 = vrot.lane.b32.xlu1 %v8930_v42, %s7279_s2  ;;  %v3515_v12 = vrot.slane %v3513_v23, 1  ;;  %v4748_v35 = vsel %vm4486_vm5, %v8377_v6, %v8888_v15  ;;  %v1531_v9 = vmul.f32 %v7655_v25, %v1171_v45 }
 0x1fb   :  { %v832_v32 = vpop.f32.mrb[142].mxu0  ;;  %v8932_v21 = vcombine.low %v2888_v39, %v2895_v28  ;;  %v2220_v29 = vrot.slane %v1586_v52, %v7775_v43  ;;  %v2227_v38 = vrot.slane %v6630_v27, %v7775_v43  ;;  %v4510_v47 = vsel %vm4486_vm5, %v8281_v2, %v3648_v4 }
 0x1fc   :  { %v6967_v13 = vpop.f32.mrb[143].mxu0  ;;  %v1082_v60 = vadd.f32 %v8673_v62, %v985_v53  ;;  %v986_v24 = vmul.f32 %v8660_v31, %v832_v32  ;;  %3828 = vrot.lane.b32.xlu0 %v8871_v55, %s7281_s13  ;;  %v8945_v5 = vsel %vm3240_vm4, %v3511_v58, %v3515_v12  ;;  %v3759_v50 = vrot.slane %v8896_v33, 1 }
 0x1fd   :  { %v2228_v34 = vcombine.high %v2220_v29, %v2220_v29  ;;  %v3518_v6 = vshrl.u32 %v8896_v33, 16  ;;  %v4832_v15 = vsel %vm4551_vm6, %v4748_v35, %v4113_v14  ;;  %v3522_v28 = vrot.slane %v3520_v37, 1 }
 0x1fe   :  { %v4017_v51 = vpop.permute.xlu1 %4016  ;;  %v1172_v19 = vmax.f32 %v1082_v60, 0.0  ;;  %v3907_v1 = vpop.permute.xlu0 %3906  ;;  %v1083_v46 = vadd.f32 %v8673_v62, %v986_v24  ;;  %4232 = vrot.lane.b32.xlu1 %v8945_v5, %s7282_s20  ;;  %v3525_v52 = vshll.u32 %v3183_v7, 16  ;;  %v4575_v32 = vsel %vm4551_vm6, %v4510_v47, %v8911_v57 }
 0x1ff   :  { %v2897_v0 = vcombine.low %v2228_v34, %v2227_v38  ;;  %v4651_v45 = vsel %vm4616_vm7, %v4575_v32, %v3907_v1  ;;  %v2229_v24 = vcombine.high %v2227_v38, %v2227_v38  ;;  %v3760_v57 = vrot.slane %v3183_v7, 1 }
 0x200   :  { %v1532_v63 = vmul.f32 %v11323_v22, %v1172_v19  ;;  %3667 = vrot.lane.b32.xlu0 %v8893_v61, %s7279_s2  ;;  %v837_v18 = vpop.f32.mrb[144].mxu0  ;;  %v1173_v58 = vmax.f32 %v1083_v46, 0.0  ;;  %v3523_v35 = vor.u32 %v3522_v28, %v3518_v6  ;;  %v11325_v22 = vld [vmem:[#allocation17_spill] sm:$0xff] }
 0x201   :  { %v987_v2 = vmul.f32 %v8660_v31, %v837_v18  ;;  %v6970_v39 = vpop.f32.mrb[145].mxu0  ;;  %v8982_v1 = vsel %vm3689_vm3, %v3759_v50, %v3760_v57  ;;  %v11326_v18 = vld [vmem:[#allocation18_spill] sm:$0xff]  ;;  %v2905_v6 = vrot.slane %v2897_v0, %v7775_v43  ;;  %v4751_v50 = vsel %vm4486_vm5, %v8424_v56, %v4017_v51 }
 0x202   :  { %v4215_v23 = vpop.permute.xlu1 %4214  ;;  %v1587_v27 = vpack.c.bf16 %v1532_v63, %v1531_v9  ;;  %v6631_v25 = vpack.c.bf16 %v1532_v63, %v1532_v63  ;;  %v8963_v20 = vpop.permute.xlu0 %3810  ;;  %4132 = vrot.lane.b32.xlu1 %v8896_v33, %s7281_s13  ;;  %11324 = vst [vmem:[#allocation37_spill] sm:$0xff] %v8982_v1  ;;  %v8985_v9 = vrot.slane %v2220_v29, %v7775_v43 }
 0x203   :  { %v840_v53 = vpop.f32.mrb[146].mxu0  ;;  %v4907_v4 = vsel %vm4616_vm7, %v4832_v15, %v4215_v23  ;;  %v1084_v13 = vadd.f32 %v8673_v62, %v987_v2  ;;  %v1533_v63 = vmul.f32 %v11325_v22, %v1173_v58  ;;  %v3527_v15 = vrot.slane %v3525_v52, 1 }
 0x204   :  { %v988_v14 = vmul.f32 %v8660_v31, %v840_v53  ;;  %5407 = vmatprep.mubr.bf16.mxu1 %v4907_v4  ;;  %v6971_v60 = vpop.f32.mrb[147].mxu0  ;;  %v8974_v12 = vrot.slane %v1587_v27, %v7775_v43  ;;  %3926 = vrot.lane.b32.xlu0 %v8859_v10, %s7282_s20  ;;  %v2244_v34 = vrot.slane %v6631_v25, %v7775_v43  ;;  %v3532_v23 = vshll.u32 %v8932_v21, 16 }
 0x205   :  { %5408 = vmatmul.mubr.bf16.gmra.mrb[28].mxu1 %v4651_v45  ;;  %v1174_v37 = vmax.f32 %v1084_v13, 0.0  ;;  %v9002_v52 = vsel %vm3240_vm4, %v3523_v35, %v3527_v15  ;;  %v3763_v58 = vrot.slane %v8985_v9, 1 }
 0x206   :  { %v4115_v19 = vpop.permute.xlu1 %4114  ;;  %v2898_v47 = vcombine.low %v2229_v24, %v8974_v12  ;;  %v1085_v46 = vadd.f32 %v8673_v62, %v988_v14  ;;  %v3650_v38 = vpop.permute.xlu0 %3649  ;;  %4036 = vrot.lane.b32.xlu1 %v8982_v1, %s7279_s2  ;;  %v2246_v39 = vcombine.high %v2244_v34, %v2244_v34  ;;  %v3530_v24 = vshrl.u32 %v8932_v21, 16 }
 0x207   :  { %v1534_v7 = vmul.f32 %v11326_v18, %v1174_v37  ;;  %v4512_v14 = vsel %vm4486_vm5, %v8311_v8, %v3650_v38  ;;  %v2245_v57 = vcombine.high %v8974_v12, %v8974_v12  ;;  %v3534_v35 = vrot.slane %v3532_v23, 1 }
 0x208   :  { %v2912_v2 = vrot.slane %v2898_v47, %v7775_v43  ;;  %3830 = vrot.lane.b32.xlu0 %v8930_v42, %s7281_s13  ;;  %v845_v29 = vpop.f32.mrb[148].mxu0  ;;  %v1175_v56 = vmax.f32 %v1085_v46, 0.0  ;;  %v3537_v47 = vshll.u32 %v8985_v9, 16  ;;  %v2914_v8 = vcombine.low %v2244_v34, %v2246_v39  ;;  %v11327_v9 = vld [vmem:[#allocation19_spill] sm:$0xff] }
 0x209   :  { %v1588_v28 = vpack.c.bf16 %v1534_v7, %v1533_v63  ;;  %v989_v27 = vmul.f32 %v8660_v31, %v845_v29  ;;  %v6974_v0 = vpop.f32.mrb[149].mxu0  ;;  %v6632_v4 = vpack.c.bf16 %v1534_v7, %v1534_v7  ;;  %v4834_v38 = vsel %vm4551_vm6, %v4751_v50, %v4115_v19 }
 0x20a   :  { %v8999_v25 = vpop.permute.xlu1 %4018  ;;  %v9004_v53 = vcombine.low %v2905_v6, %v2912_v2  ;;  %v3909_v51 = vpop.permute.xlu0 %3908  ;;  %4234 = vrot.lane.b32.xlu1 %v9002_v52, %s7282_s20  ;;  %v1535_v7 = vmul.f32 %v7669_v30, %v1175_v56  ;;  %v4577_v6 = vsel %vm4551_vm6, %v4512_v14, %v8963_v20  ;;  %v3762_v29 = vrot.slane %v8932_v21, 1 }
 0x20b   :  { %v848_v32 = vpop.f32.mrb[150].mxu0  ;;  %v2254_v13 = vrot.slane %v1588_v28, %v7775_v43  ;;  %v1086_v45 = vadd.f32 %v8673_v62, %v989_v27  ;;  %v9022_v18 = vrot.slane %v6632_v4, %v7775_v43  ;;  %v4654_v19 = vsel %vm4616_vm7, %v4577_v6, %v3909_v51 }
 0x20c   :  { %v6975_v60 = vpop.f32.mrb[151].mxu0  ;;  %v990_v37 = vmul.f32 %v8660_v31, %v848_v32  ;;  %3669 = vrot.lane.b32.xlu0 %v8945_v5, %s7279_s2  ;;  %v3535_v23 = vor.u32 %v3534_v35, %v3530_v24  ;;  %v3539_v20 = vrot.slane %v3537_v47, 1  ;;  %v2922_v39 = vrot.slane %v2914_v8, %v7775_v43 }
 0x20d   :  { %v2262_v46 = vcombine.high %v2254_v13, %v2254_v13  ;;  %v1176_v22 = vmax.f32 %v1086_v45, 0.0  ;;  %v9042_v32 = vsel %vm3689_vm3, %v3762_v29, %v3763_v58  ;;  %v9045_v45 = vrot.slane %v2245_v57, %v7775_v43 }
 0x20e   :  { %v4217_v63 = vpop.permute.xlu1 %4216  ;;  %v9025_v12 = vpop.permute.xlu0 %3812  ;;  %4134 = vrot.lane.b32.xlu1 %v8932_v21, %s7281_s13  ;;  %v1087_v50 = vadd.f32 %v8673_v62, %v990_v37  ;;  %11328 = vst [vmem:[#allocation38_spill] sm:$0xff] %v9042_v32  ;;  %v2263_v60 = vcombine.high %v9022_v18, %v9022_v18  ;;  %v3544_v47 = vshll.u32 %v9004_v53, 16  ;;  %v9060_v57 = vsel %vm3240_vm4, %v3535_v23, %v3539_v20  ;;  %v11330_v23 = vld [vmem:[#allocation20_spill] sm:$0xff] }
 0x20f   :  { %v4910_v15 = vsel %vm4616_vm7, %v4834_v38, %v4217_v63  ;;  %v2915_v2 = vcombine.low %v2254_v13, %v2262_v46  ;;  %v1536_v34 = vmul.f32 %v11327_v9, %v1176_v22 }
 0x210   :  { %5415 = vmatprep.mubr.bf16.mxu1 %v4910_v15  ;;  %3928 = vrot.lane.b32.xlu0 %v8896_v33, %s7282_s20  ;;  %v853_v30 = vpop.f32.mrb[152].mxu0  ;;  %v1177_v58 = vmax.f32 %v1087_v50, 0.0  ;;  %v3766_v50 = vrot.slane %v9045_v45, 1 }
 0x211   :  { %5416 = vmatmul.mubr.bf16.gmra.mrb[32].mxu1 %v4654_v19  ;;  %v2929_v28 = vrot.slane %v2915_v2, %v7775_v43  ;;  %v1589_v27 = vpack.c.bf16 %v1536_v34, %v1535_v7  ;;  %v6633_v0 = vpack.c.bf16 %v1536_v34, %v1536_v34  ;;  %v6978_v56 = vpop.f32.mrb[153].mxu0  ;;  %v991_v51 = vmul.f32 %v8660_v31, %v853_v30  ;;  %v11329_v2 = vld [vmem:[#allocation61_spill] sm:$0xff] }
 0x212   :  { %v4117_v4 = vpop.permute.xlu1 %4116  ;;  %v3652_v13 = vpop.permute.xlu0 %3651  ;;  %4038 = vrot.lane.b32.xlu1 %v9042_v32, %s7279_s2  ;;  %v4754_v7 = vsel %vm4486_vm5, %v8460_v41, %v8999_v25  ;;  %v3765_v19 = vrot.slane %v9004_v53, 1  ;;  %v3542_v41 = vshrl.u32 %v9004_v53, 16  ;;  %v3546_v25 = vrot.slane %v3544_v47, 1 }
 0x213   :  { %v856_v14 = vpop.f32.mrb[154].mxu0  ;;  %v9049_v24 = vcombine.low %v2922_v39, %v2929_v28  ;;  %v2271_v37 = vrot.slane %v1589_v27, %v7775_v43  ;;  %v1088_v8 = vadd.f32 %v8673_v62, %v991_v51  ;;  %v9063_v38 = vrot.slane %v6633_v0, %v7775_v43  ;;  %v11331_v39 = vld [vmem:[#allocation21_spill] sm:$0xff] }
 0x214   :  { %v6979_v35 = vpop.f32.mrb[155].mxu0  ;;  %v992_v46 = vmul.f32 %v8660_v31, %v856_v14  ;;  %3832 = vrot.lane.b32.xlu0 %v8982_v1, %s7281_s13  ;;  %v4514_v9 = vsel %vm4486_vm5, %v11329_v2, %v3652_v13  ;;  %v1537_v20 = vmul.f32 %v11330_v23, %v1177_v58  ;;  %v4836_v27 = vsel %vm4551_vm6, %v4754_v7, %v4117_v4 }
 0x215   :  { %v2279_v22 = vcombine.high %v2271_v37, %v2271_v37  ;;  %v2931_v63 = vcombine.low %v2263_v60, %v2271_v37  ;;  %v1178_v6 = vmax.f32 %v1088_v8, 0.0  ;;  %v3549_v56 = vshll.u32 %v9045_v45, 16 }
 0x216   :  { %v9068_v15 = vpop.permute.xlu1 %4020  ;;  %v3911_v34 = vpop.permute.xlu0 %3910  ;;  %v1089_v29 = vadd.f32 %v8673_v62, %v992_v46  ;;  %4236 = vrot.lane.b32.xlu1 %v9060_v57, %s7282_s20  ;;  %v4579_v35 = vsel %vm4551_vm6, %v4514_v9, %v9025_v12  ;;  %v9105_v23 = vsel %vm3689_vm3, %v3765_v19, %v3766_v50 }
 0x217   :  { %v2932_v30 = vcombine.low %v2279_v22, %v9063_v38  ;;  %v1538_v28 = vmul.f32 %v11331_v39, %v1178_v6  ;;  %v2939_v51 = vrot.slane %v2931_v63, %v7775_v43  ;;  %v4657_v45 = vsel %vm4616_vm7, %v4579_v35, %v3911_v34  ;;  %11332 = vst [vmem:[#allocation44_spill] sm:$0xff] %v9105_v23 }
 0x218   :  { %3671 = vrot.lane.b32.xlu0 %v9002_v52, %s7279_s2  ;;  %v861_v0 = vpop.f32.mrb[156].mxu0  ;;  %v1179_v63 = vmax.f32 %v1089_v29, 0.0  ;;  %v3547_v34 = vor.u32 %v3546_v25, %v3542_v41 }
 0x219   :  { %v2946_v13 = vrot.slane %v2932_v30, %v7775_v43  ;;  %v993_v14 = vmul.f32 %v8660_v31, %v861_v0  ;;  %v6982_v37 = vpop.f32.mrb[157].mxu0  ;;  %v1590_v47 = vpack.c.bf16 %v1538_v28, %v1537_v20  ;;  %v6634_v58 = vpack.c.bf16 %v1538_v28, %v1538_v28 }
 0x21a   :  { %v4219_v60 = vpop.permute.xlu1 %4218  ;;  %v9090_v4 = vpop.permute.xlu0 %3814  ;;  %4136 = vrot.lane.b32.xlu1 %v9004_v53, %s7281_s13  ;;  %v9109_v20 = vrot.slane %v9022_v18, %v7775_v43  ;;  %v3551_v0 = vrot.slane %v3549_v56, 1  ;;  %v9125_v37 = vld [vmem:[%s11077_s4] ss:$0 sm:$0xff] }
 0x21b   :  { %v864_v8 = vpop.f32.mrb[158].mxu0  ;;  %v4913_v46 = vsel %vm4616_vm7, %v4836_v27, %v4219_v60  ;;  %v9094_v22 = vcombine.low %v2939_v51, %v2946_v13  ;;  %v1090_v7 = vadd.f32 %v8673_v62, %v993_v14  ;;  %v2288_v2 = vrot.slane %v1590_v47, %v7775_v43  ;;  %v11333_v51 = vld [vmem:[#allocation22_spill] sm:$0xff]  ;;  %v11334_v14 = vld [vmem:[#allocation23_spill] sm:$0xff] }
 0x21c   :  { %v994_v6 = vmul.f32 %v8660_v31, %v864_v8  ;;  %5423 = vmatprep.mubr.bf16.mxu1 %v4913_v46  ;;  %v6983_v12 = vpop.f32.mrb[159].mxu0  ;;  %v2295_v9 = vrot.slane %v6634_v58, %v7775_v43  ;;  %3930 = vrot.lane.b32.xlu0 %v8932_v21, %s7282_s20  ;;  %v1539_v13 = vmul.f32 %v11333_v51, %v1179_v63  ;;  %v3769_v8 = vrot.slane %v9109_v20, 1 }
 0x21d   :  { %5424 = vmatmul.mubr.bf16.gmra.mrb[36].mxu1 %v4657_v45  ;;  %v1180_v30 = vmax.f32 %v1090_v7, 0.0  ;;  %v2296_v31 = vcombine.high %v2288_v2, %v2288_v2  ;;  %v9119_v50 = vsel %vm3240_vm4, %v3547_v34, %v3551_v0  ;;  %v3561_v12 = vshll.u32 %v9109_v20, 16  ;;  %v11336_v0 = vld [vmem:[#allocation72_spill] sm:$0xff] }
 0x21e   :  { %v4119_v29 = vpop.permute.xlu1 %4118  ;;  %v2297_v39 = vcombine.high %v2295_v9, %v2295_v9  ;;  %v1091_v28 = vadd.f32 %v8673_v62, %v994_v6  ;;  %v3654_v27 = vpop.permute.xlu0 %3653  ;;  %4040 = vrot.lane.b32.xlu1 %v9105_v23, %s7279_s2  ;;  %v3556_v62 = vshll.u32 %v9049_v24, 16  ;;  %v4757_v51 = vsel %vm4486_vm5, %v11336_v0, %v9068_v15 }
 0x21f   :  { %v1540_v60 = vmul.f32 %v11334_v14, %v1180_v30  ;;  %v2948_v41 = vcombine.low %v2288_v2, %v2296_v31  ;;  %v9140_v30 = vld [vmem:[%s11078_s5] ss:$0 sm:$0xff] }
 0x220   :  { %v2949_v19 = vcombine.low %v2295_v9, %v2297_v39  ;;  %3834 = vrot.lane.b32.xlu0 %v9042_v32, %s7281_s13  ;;  %v869_v18 = vpop.f32.mrb[160].mxu0  ;;  %v1181_v63 = vmax.f32 %v1091_v28, 0.0  ;;  %v11335_v9 = vld [vmem:[#allocation63_spill] sm:$0xff]  ;;  %v3768_v28 = vrot.slane %v9049_v24, 1 }
 0x221   :  { %v1591_v25 = vpack.c.bf16 %v1540_v60, %v1539_v13  ;;  %v6635_v56 = vpack.c.bf16 %v1540_v60, %v1540_v60  ;;  %v995_v35 = vmul.f32 %v9125_v37, %v869_v18  ;;  %v6986_v58 = vpop.f32.mrb[161].mxu0  ;;  %v2956_v46 = vrot.slane %v2948_v41, %v7775_v43 }
 0x222   :  { %v4023_v47 = vpop.permute.xlu1 %4022  ;;  %v2963_v45 = vrot.slane %v2949_v19, %v7775_v43  ;;  %v3913_v7 = vpop.permute.xlu0 %3912  ;;  %v4516_v34 = vsel %vm4486_vm5, %v11335_v9, %v3654_v27  ;;  %4238 = vrot.lane.b32.xlu1 %v9119_v50, %s7282_s20  ;;  %v3558_v13 = vrot.slane %v3556_v62, 1  ;;  %v4838_v41 = vsel %vm4551_vm6, %v4757_v51, %v4119_v29 }
 0x223   :  { %v872_v6 = vpop.f32.mrb[162].mxu0  ;;  %v9133_v2 = vrot.slane %v1591_v25, %v7775_v43  ;;  %v1092_v31 = vadd.f32 %v9140_v30, %v995_v35  ;;  %v2312_v14 = vrot.slane %v6635_v56, %v7775_v43  ;;  %v2280_v25 = vcombine.high %v9063_v38, %v9063_v38  ;;  %v11337_v35 = vld [vmem:[#allocation24_spill] sm:$0xff]  ;;  %v11338_v56 = vld [vmem:[#allocation25_spill] sm:$0xff] }
 0x224   :  { %v6987_v39 = vpop.f32.mrb[163].mxu0  ;;  %v9146_v20 = vcombine.low %v2956_v46, %v2963_v45  ;;  %v996_v27 = vmul.f32 %v9125_v37, %v872_v6  ;;  %3673 = vrot.lane.b32.xlu0 %v9060_v57, %s7279_s2  ;;  %v1541_v15 = vmul.f32 %v11337_v35, %v1181_v63  ;;  %v4581_v62 = vsel %vm4551_vm6, %v4516_v34, %v9090_v4 }
 0x225   :  { %v2313_v60 = vcombine.high %v9133_v2, %v9133_v2  ;;  %v1182_v19 = vmax.f32 %v1092_v31, 0.0  ;;  %v4660_v29 = vsel %vm4616_vm7, %v4581_v62, %v3913_v7  ;;  %v3554_v9 = vshrl.u32 %v9049_v24, 16 }
 0x226   :  { %v4221_v18 = vpop.permute.xlu1 %4220  ;;  %v3817_v58 = vpop.permute.xlu0 %3816  ;;  %4138 = vrot.lane.b32.xlu1 %v9049_v24, %s7281_s13  ;;  %v1093_v38 = vadd.f32 %v9140_v30, %v996_v27  ;;  %v9173_v34 = vsel %vm3689_vm3, %v3768_v28, %v3769_v8  ;;  %v3211_v27 = vrot.slane %v2280_v25, %v7775_v43 }
 0x227   :  { %v4916_v46 = vsel %vm4616_vm7, %v4838_v41, %v4221_v18  ;;  %v2965_v45 = vcombine.low %v2313_v60, %v2312_v14  ;;  %v1542_v6 = vmul.f32 %v11338_v56, %v1182_v19  ;;  %11339 = vst [vmem:[#allocation5_spill] sm:$0xff] %v9173_v34  ;;  %v3559_v0 = vor.u32 %v3558_v13, %v3554_v9 }
 0x228   :  { %5431 = vmatprep.mubr.bf16.mxu1 %v4916_v46  ;;  %3932 = vrot.lane.b32.xlu0 %v9004_v53, %s7282_s20  ;;  %v877_v63 = vpop.f32.mrb[164].mxu0  ;;  %v3563_v19 = vrot.slane %v3561_v12, 1  ;;  %v2314_v18 = vcombine.high %v2312_v14, %v2312_v14  ;;  %v11341_v46 = vld [vmem:[#allocation70_spill] sm:$0xff]  ;;  %v1183_v56 = vmax.f32 %v1093_v38, 0.0  ;;  %v3568_v14 = vshll.u32 %v9094_v22, 16 }
 0x229   :  { %5432 = vmatmul.mubr.bf16.gmra.mrb[40].mxu1 %v4660_v29  ;;  %v1592_v31 = vpack.c.bf16 %v1542_v6, %v1541_v15  ;;  %v6990_v39 = vpop.f32.mrb[165].mxu0  ;;  %v6636_v51 = vpack.c.bf16 %v1542_v6, %v1542_v6  ;;  %v997_v60 = vmul.f32 %v9125_v37, %v877_v63  ;;  %v11340_v15 = vld [vmem:[#allocation65_spill] sm:$0xff]  ;;  %v4760_v62 = vsel %vm4486_vm5, %v11341_v46, %v4023_v47 }
 0x22a   :  { %v4121_v4 = vpop.permute.xlu1 %4120  ;;  %v3656_v7 = vpop.permute.xlu0 %3655  ;;  %4042 = vrot.lane.b32.xlu1 %v9173_v34, %s7279_s2  ;;  %v2973_v25 = vrot.slane %v2965_v45, %v7775_v43  ;;  %v9195_v63 = vsel %vm3240_vm4, %v3559_v0, %v3563_v19  ;;  %v11342_v0 = vld [vmem:[#allocation26_spill] sm:$0xff]  ;;  %v11343_v19 = vld [vmem:[#allocation27_spill] sm:$0xff]  ;;  %v3772_v46 = vrot.slane %v3211_v27, 1 }
 0x22b   :  { %v880_v41 = vpop.f32.mrb[166].mxu0  ;;  %v9178_v35 = vrot.slane %v1592_v31, %v7775_v43  ;;  %v4518_v8 = vsel %vm4486_vm5, %v11340_v15, %v3656_v7  ;;  %v1094_v12 = vadd.f32 %v9140_v30, %v997_v60  ;;  %v4840_v29 = vsel %vm4551_vm6, %v4760_v62, %v4121_v4 }
 0x22c   :  { %v998_v28 = vmul.f32 %v9125_v37, %v880_v41  ;;  %v6991_v13 = vpop.f32.mrb[167].mxu0  ;;  %3836 = vrot.lane.b32.xlu0 %v9105_v23, %s7281_s13  ;;  %v2329_v47 = vrot.slane %v6636_v51, %v7775_v43  ;;  %v4583_v60 = vsel %vm4551_vm6, %v4518_v8, %v3817_v58  ;;  %v1543_v41 = vmul.f32 %v11342_v0, %v1183_v56  ;;  %v11346_v23 = vld [vmem:[#allocation74_spill] sm:$0xff] }
 0x22d   :  { %v2966_v6 = vcombine.low %v2314_v18, %v9178_v35  ;;  %v1184_v38 = vmax.f32 %v1094_v12, 0.0  ;;  %v3771_v58 = vrot.slane %v9094_v22, 1  ;;  %v3570_v15 = vrot.slane %v3568_v14, 1 }
 0x22e   :  { %v4223_v9 = vpop.permute.xlu1 %4222  ;;  %v3915_v31 = vpop.permute.xlu0 %3914  ;;  %v1095_v45 = vadd.f32 %v9140_v30, %v998_v28  ;;  %4240 = vrot.lane.b32.xlu1 %v9195_v63, %s7282_s20  ;;  %v3573_v62 = vshll.u32 %v3211_v27, 16  ;;  %v2331_v12 = vcombine.high %v2329_v47, %v2329_v47 }
 0x22f   :  { %v4919_v39 = vsel %vm4616_vm7, %v4840_v29, %v4223_v9  ;;  %v2980_v7 = vrot.slane %v2966_v6, %v7775_v43  ;;  %v4663_v4 = vsel %vm4616_vm7, %v4583_v60, %v3915_v31  ;;  %v1544_v51 = vmul.f32 %v11343_v19, %v1184_v38  ;;  %v7225_v31 = vld [vmem:[%s11079_s6 + $0x90] ss:$0 sps:$4 sm:$0x33]  }
 0x230   :  { %5439 = vmatprep.mubr.bf16.mxu1 %v4919_v39  ;;  %3675 = vrot.lane.b32.xlu0 %v9119_v50, %s7279_s2  ;;  %v885_v18 = vpop.f32.mrb[168].mxu0  ;;  %v3566_v38 = vshrl.u32 %v9094_v22, 16  ;;  %v1185_v14 = vmax.f32 %v1095_v45, 0.0  ;;  %v3218_v19 = vrot.slane %v9133_v2, %v7775_v43 }
 0x231   :  { %5440 = vmatmul.mubr.bf16.gmra.mrb[44].mxu1 %v4663_v4  ;;  %v9210_v8 = vcombine.low %v2973_v25, %v2980_v7  ;;  %v999_v28 = vmul.f32 %v9125_v37, %v885_v18  ;;  %v6994_v13 = vpop.f32.mrb[169].mxu0  ;;  %v1593_v6 = vpack.c.bf16 %v1544_v51, %v1543_v41  ;;  %v6637_v56 = vpack.c.bf16 %v1544_v51, %v1544_v51 }
 0x232   :  { %v9213_v29 = vpop.permute.xlu0 %3818  ;;  %v888_v9 = vpop.f32.mrb[170].mxu0  ;;  %4140 = vrot.lane.b32.xlu1 %v9094_v22, %s7281_s13  ;;  %v9227_v4 = vsel %vm3689_vm3, %v3771_v58, %v3772_v46  ;;  %v3571_v0 = vor.u32 %v3570_v15, %v3566_v38  ;;  %7128 = vmatprep.subr.msk.bf16.mxu1 %vm511_vm1, %v7225_v31  ;;  %v3575_v41 = vrot.slane %v3573_v62, 1  ;;  %v5285_v51 = vsel %vm511_vm1, %v7225_v31, 0  ;;  %v11344_v58 = vld [vmem:[#allocation28_spill] sm:$0xff]  ;;  %v11345_v46 = vld [vmem:[#allocation29_spill] sm:$0xff] }
 0x233   :  { %v1096_v25 = vadd.f32 %v9140_v30, %v999_v28  ;;  %v4025_v39 = vpop.permute.xlu1 %4024  ;;  %v1000_v27 = vmul.f32 %v9125_v37, %v888_v9  ;;  %v6995_v60 = vpop.f32.mrb[171].mxu0  ;;  %v2339_v7 = vrot.slane %v1593_v6, %v7775_v43  ;;  %v2982_v18 = vcombine.low %v2329_v47, %v2331_v12  ;;  %7009 = vmatpush3.bf16.msra.mxu1 %v5285_v51 }
 0x234   :  { %3934 = vrot.lane.b32.xlu0 %v9049_v24, %s7282_s20  ;;  %v9234_v28 = vrot.slane %v6637_v56, %v7775_v43  ;;  %v3580_v9 = vshll.u32 %v9146_v20, 16  ;;  %v1545_v15 = vmul.f32 %v11344_v58, %v1185_v14  ;;  %v9245_v12 = vsel %vm3240_vm4, %v3571_v0, %v3575_v41 }
 0x235   :  { %v1186_v45 = vmax.f32 %v1096_v25, 0.0  ;;  %v2347_v13 = vcombine.high %v2339_v7, %v2339_v7  ;;  %v1097_v62 = vadd.f32 %v9140_v30, %v1000_v27  ;;  %v3774_v56 = vrot.slane %v9146_v20, 1 }
 0x236   :  { %v3658_v6 = vpop.permute.xlu0 %3657  ;;  %4044 = vrot.lane.b32.xlu1 %v9227_v4, %s7279_s2  ;;  %v3775_v27 = vrot.slane %v3218_v19, 1  ;;  %v2990_v51 = vrot.slane %v2982_v18, %v7775_v43 }
 0x237   :  { %v1546_v38 = vmul.f32 %v11345_v46, %v1186_v45  ;;  %v4123_v2 = vpop.permute.xlu1 %4122  ;;  %v2983_v31 = vcombine.low %v2339_v7, %v2347_v13  ;;  %v2348_v7 = vcombine.high %v9234_v28, %v9234_v28  ;;  %v1187_v41 = vmax.f32 %v1097_v62, 0.0 }
 0x238   :  { %3838 = vrot.lane.b32.xlu0 %v9173_v34, %s7281_s13  ;;  %v893_v47 = vpop.f32.mrb[172].mxu0  ;;  %v3582_v34 = vrot.slane %v3580_v9, 1  ;;  %v3578_v9 = vshrl.u32 %v9146_v20, 16  ;;  %v3585_v62 = vshll.u32 %v3218_v19, 16  ;;  %v11347_v19 = vld [vmem:[#allocation30_spill] sm:$0xff] }
 0x239   :  { %v1594_v25 = vpack.c.bf16 %v1546_v38, %v1545_v15  ;;  %v6638_v14 = vpack.c.bf16 %v1546_v38, %v1546_v38  ;;  %v1001_v60 = vmul.f32 %v9125_v37, %v893_v47  ;;  %v6998_v45 = vpop.f32.mrb[173].mxu0  ;;  %v2997_v13 = vrot.slane %v2983_v31, %v7775_v43 }
 0x23a   :  { %v3917_v58 = vpop.permute.xlu0 %3916  ;;  %v896_v46 = vpop.f32.mrb[174].mxu0  ;;  %4242 = vrot.lane.b32.xlu1 %v9245_v12, %s7282_s20  ;;  %v4520_v31 = vsel %vm4486_vm5, %v11346_v23, %v3658_v6  ;;  %v3583_v23 = vor.u32 %v3582_v34, %v3578_v9  ;;  %v1547_v42 = vmul.f32 %v11347_v19, %v1187_v41 }
 0x23b   :  { %v2356_v0 = vrot.slane %v1594_v25, %v7775_v43  ;;  %v1098_v15 = vadd.f32 %v9140_v30, %v1001_v60  ;;  %v1002_v38 = vmul.f32 %v9125_v37, %v896_v46  ;;  %v9258_v47 = vpop.permute.xlu1 %4026  ;;  %v6999_v18 = vpop.f32.mrb[175].mxu0  ;;  %v9260_v45 = vcombine.low %v2990_v51, %v2997_v13 }
 0x23c   :  { %3677 = vrot.lane.b32.xlu0 %v9195_v63, %s7279_s2  ;;  %v9268_v25 = vrot.slane %v6638_v14, %v7775_v43  ;;  %v9274_v51 = vsel %vm3689_vm3, %v3774_v56, %v3775_v27  ;;  %v4763_v13 = vsel %vm4486_vm5, %v8722_v36, %v4025_v39  ;;  %v11348_v14 = vld [vmem:[#allocation31_spill] sm:$0xff]  ;;  %v4585_v56 = vsel %vm4551_vm6, %v4520_v31, %v9213_v29 }
 0x23d   :  { %v2364_v60 = vcombine.high %v2356_v0, %v2356_v0  ;;  %v2999_v32 = vcombine.low %v2348_v7, %v2356_v0  ;;  %v1188_v46 = vmax.f32 %v1098_v15, 0.0  ;;  %v1099_v1 = vadd.f32 %v9140_v30, %v1002_v38 }
 0x23e   :  { %v9271_v18 = vpop.permute.xlu0 %3820  ;;  %4142 = vrot.lane.b32.xlu1 %v9146_v20, %s7281_s13  ;;  %v4842_v0 = vsel %vm4551_vm6, %v4763_v13, %v4123_v2  ;;  %v3587_v27 = vrot.slane %v3585_v62, 1  ;;  %v4666_v19 = vsel %vm4616_vm7, %v4585_v56, %v3917_v58 }
 0x23f   :  { %v3000_v6 = vcombine.low %v2364_v60, %v9268_v25  ;;  %v1548_v55 = vmul.f32 %v11348_v14, %v1188_v46  ;;  %v3007_v7 = vrot.slane %v2999_v32, %v7775_v43  ;;  %v4225_v15 = vpop.permute.xlu1 %4224  ;;  %v2330_v32 = vcombine.high %v9178_v35, %v9178_v35 }
 0x240   :  { %3936 = vrot.lane.b32.xlu0 %v9094_v22, %s7282_s20  ;;  %v901_v34 = vpop.f32.mrb[176].mxu0  ;;  %v1189_v2 = vmax.f32 %v1099_v1, 0.0  ;;  %v4922_v60 = vsel %vm4616_vm7, %v4842_v0, %v4225_v15  ;;  %v9307_v0 = vsel %vm3240_vm4, %v3583_v23, %v3587_v27 }
 0x241   :  { %v3014_v36 = vrot.slane %v3000_v6, %v7775_v43  ;;  %v1595_v39 = vpack.c.bf16 %v1548_v55, %v1547_v42  ;;  %v6639_v41 = vpack.c.bf16 %v1548_v55, %v1548_v55  ;;  %v1003_v38 = vmul.f32 %v9125_v37, %v901_v34  ;;  %v7002_v9 = vpop.f32.mrb[177].mxu0  ;;  %5447 = vmatprep.mubr.bf16.mxu1 %v4922_v60 }
 0x242   :  { %v3660_v46 = vpop.permute.xlu0 %3659  ;;  %v904_v13 = vpop.f32.mrb[178].mxu0  ;;  %4046 = vrot.lane.b32.xlu1 %v9274_v51, %s7279_s2  ;;  %5448 = vmatmul.mubr.bf16.gmra.mrb[48].mxu1 %v4666_v19  ;;  %v3225_v56 = vrot.slane %v2330_v32, %v7775_v43 }
 0x243   :  { %v9295_v29 = vcombine.low %v3007_v7, %v3014_v36  ;;  %v2373_v31 = vrot.slane %v1595_v39, %v7775_v43  ;;  %v2380_v55 = vrot.slane %v6639_v41, %v7775_v43  ;;  %v1100_v42 = vadd.f32 %v9140_v30, %v1003_v38  ;;  %v7003_v62 = vpop.f32.mrb[179].mxu0  ;;  %v4125_v58 = vpop.permute.xlu1 %4124  ;;  %v11349_v41 = vld [vmem:[#allocation32_spill] sm:$0xff]  ;;  %v11350_v38 = vld [vmem:[#allocation33_spill] sm:$0xff] }
 0x244   :  { %v1004_v1 = vmul.f32 %v9125_v37, %v904_v13  ;;  %3840 = vrot.lane.b32.xlu0 %v9227_v4, %s7281_s13  ;;  %v3592_v36 = vshll.u32 %v9210_v8, 16  ;;  %v1549_v15 = vmul.f32 %v11349_v41, %v1189_v2  ;;  %v4522_v60 = vsel %vm4486_vm5, %v8613_v40, %v3660_v46  ;;  %v11351_v2 = vld [vmem:[#allocation34_spill] sm:$0xff] }
 0x245   :  { %v2381_v35 = vcombine.high %v2373_v31, %v2373_v31  ;;  %v2382_v6 = vcombine.high %v2380_v55, %v2380_v55  ;;  %v1190_v14 = vmax.f32 %v1100_v42, 0.0  ;;  %v3778_v46 = vrot.slane %v3225_v56, 1 }
 0x246   :  { %v1101_v7 = vadd.f32 %v9140_v30, %v1004_v1  ;;  %v3919_v34 = vpop.permute.xlu0 %3918  ;;  %4244 = vrot.lane.b32.xlu1 %v9307_v0, %s7282_s20  ;;  %v3777_v30 = vrot.slane %v9210_v8, 1  ;;  %v3590_v42 = vshrl.u32 %v9210_v8, 16  ;;  %v3594_v62 = vrot.slane %v3592_v36, 1 }
 0x247   :  { %v3867_v39 = vcombine.low %v2373_v31, %v2381_v35  ;;  %v3868_v37 = vcombine.low %v2380_v55, %v2382_v6  ;;  %v1550_v9 = vmul.f32 %v11350_v38, %v1190_v14  ;;  %v9320_v31 = vpop.permute.xlu1 %4028  ;;  %v3597_v6 = vshll.u32 %v3225_v56, 16 }
 0x248   :  { %v1191_v13 = vmax.f32 %v1101_v7, 0.0  ;;  %3679 = vrot.lane.b32.xlu0 %v9245_v12, %s7279_s2  ;;  %v4766_v7 = vsel %vm4486_vm5, %v8726_v26, %v9258_v47  ;;  %v4587_v36 = vsel %vm4551_vm6, %v4522_v60, %v9271_v18 }
 0x249   :  { %v3875_v23 = vrot.slane %v3867_v39, %v7775_v43  ;;  %v3882_v27 = vrot.slane %v3868_v37, %v7775_v43  ;;  %v1596_v32 = vpack.c.bf16 %v1550_v9, %v1549_v15  ;;  %v6640_v19 = vpack.c.bf16 %v1550_v9, %v1550_v9 }
 0x24a   :  { %v1551_v55 = vmul.f32 %v11351_v2, %v1191_v13  ;;  %v9325_v40 = vpop.permute.xlu0 %3822  ;;  %4144 = vrot.lane.b32.xlu1 %v9210_v8, %s7281_s13  ;;  %v9338_v37 = vsel %vm3689_vm3, %v3777_v30, %v3778_v46  ;;  %v4844_v56 = vsel %vm4551_vm6, %v4766_v7, %v4125_v58  ;;  %v4669_v30 = vsel %vm4616_vm7, %v4587_v36, %v3919_v34 }
 0x24b   :  { %v2390_v1 = vrot.slane %v1596_v32, %v7775_v43  ;;  %v2397_v35 = vrot.slane %v6640_v19, %v7775_v43  ;;  %v9330_v14 = vcombine.low %v3875_v23, %v3882_v27  ;;  %v4227_v38 = vpop.permute.xlu1 %4226  ;;  %v3595_v23 = vor.u32 %v3594_v62, %v3590_v42 }
 0x24c   :  { %v1597_v39 = vpack.c.bf16 %v1551_v55, %v1551_v55  ;;  %3938 = vrot.lane.b32.xlu0 %v9146_v20, %s7282_s20  ;;  %v4925_v9 = vsel %vm4616_vm7, %v4844_v56, %v4227_v38  ;;  %v3599_v2 = vrot.slane %v3597_v6, 1  ;;  %v3232_v56 = vrot.slane %v9234_v28, %v7775_v43 }
 0x24d   :  { %v2398_v41 = vcombine.high %v2390_v1, %v2390_v1  ;;  %v2399_v15 = vcombine.high %v2397_v35, %v2397_v35  ;;  %v3961_v26 = vrot.slane %v2390_v1, %v7775_v43  ;;  %5455 = vmatprep.mubr.bf16.mxu1 %v4925_v9  ;;  %v3989_v18 = vrot.slane %v9330_v14, 1 }
 0x24e   :  { %v2406_v47 = vrot.slane %v1597_v39, %v7775_v43  ;;  %v3662_v13 = vpop.permute.xlu0 %3661  ;;  %v3977_v58 = vshll.u32 %v9330_v14, 16  ;;  %4048 = vrot.lane.b32.xlu1 %v9338_v37, %s7279_s2  ;;  %5456 = vmatmul.mubr.bf16.gmra.mrb[52].mxu1 %v4669_v30  ;;  %v3975_v42 = vshrl.u32 %v9330_v14, 16  ;;  %v9363_v6 = vsel %vm3240_vm4, %v3595_v23, %v3599_v2 }
 0x24f   :  { %v4073_v27 = vcombine.low %v2398_v41, %v2397_v35  ;;  %v3990_v60 = vrot.slane %v3961_v26, 1  ;;  %v3982_v55 = vshll.u32 %v3961_v26, 16  ;;  %v4127_v46 = vpop.permute.xlu1 %4126  ;;  %v3604_v41 = vshll.u32 %v9260_v45, 16 }
 0x250   :  { %v2407_v32 = vcombine.high %v2406_v47, %v2406_v47  ;;  %v4074_v19 = vcombine.low %v2399_v15, %v2406_v47  ;;  %3842 = vrot.lane.b32.xlu0 %v9274_v51, %s7281_s13  ;;  %v3979_v62 = vrot.slane %v3977_v58, 1  ;;  %v3780_v30 = vrot.slane %v9260_v45, 1 }
 0x251   :  { %v9356_v34 = vsel %vm3689_vm3, %v3989_v18, %v3990_v60  ;;  %v4081_v1 = vrot.slane %v4073_v27, %v7775_v43  ;;  %v3984_v7 = vrot.slane %v3982_v55, 1  ;;  %v4524_v18 = vsel %vm4486_vm5, %v8665_v49, %v3662_v13 }
 0x252   :  { %v3921_v35 = vpop.permute.xlu0 %3920  ;;  %v4088_v39 = vrot.slane %v4074_v19, %v7775_v43  ;;  %v4167_v36 = vrot.slane %v2407_v32, %v7775_v43  ;;  %v3980_v15 = vor.u32 %v3979_v62, %v3975_v42  ;;  %4246 = vrot.lane.b32.xlu1 %v9363_v6, %s7282_s20  ;;  %v3606_v60 = vrot.slane %v3604_v41, 1 }
 0x253   :  { %v4769_v32 = vsel %vm4486_vm5, %v8780_v17, %v9320_v31  ;;  %v3781_v19 = vrot.slane %v3232_v56, 1  ;;  %v3602_v49 = vshrl.u32 %v9260_v45, 16  ;;  %v3609_v13 = vshll.u32 %v3232_v56, 16 }
 0x254   :  { %v9370_v38 = vcombine.low %v4081_v1, %v4088_v39  ;;  %v4031_v26 = vpop.permute.xlu1 %4030  ;;  %3681 = vrot.lane.b32.xlu0 %v9307_v0, %s7279_s2  ;;  %v9375_v47 = vsel %vm3240_vm4, %v3980_v15, %v3984_v7  ;;  %v4188_v27 = vshll.u32 %v4167_v36, 16  ;;  %v4260_v58 = vrot.slane %v4167_v36, 1 }
 0x255   :  { %v4846_v42 = vsel %vm4551_vm6, %v4769_v32, %v4127_v46  ;;  %v4589_v7 = vsel %vm4551_vm6, %v4524_v18, %v9325_v40  ;;  %v9399_v46 = vsel %vm3689_vm3, %v3780_v30, %v3781_v19  ;;  %v3607_v15 = vor.u32 %v3606_v60, %v3602_v49 }
 0x256   :  { %v3825_v9 = vpop.permute.xlu0 %3824  ;;  %v4183_v23 = vshll.u32 %v9370_v38, 16  ;;  %v4259_v28 = vrot.slane %v9370_v38, 1  ;;  %4146 = vrot.lane.b32.xlu1 %v9260_v45, %s7281_s13  ;;  %v4181_v2 = vshrl.u32 %v9370_v38, 16  ;;  %v4190_v36 = vrot.slane %v4188_v27, 1 }
 0x257   :  { %v4672_v41 = vsel %vm4616_vm7, %v4589_v7, %v3921_v35  ;;  %v3611_v27 = vrot.slane %v3609_v13, 1  ;;  %v3616_v35 = vshll.u32 %v9295_v29, 16  ;;  %v3783_v32 = vrot.slane %v9295_v29, 1 }
 0x258   :  { %v4185_v55 = vrot.slane %v4183_v23, 1  ;;  %v4229_v62 = vpop.permute.xlu1 %4228  ;;  %3940 = vrot.lane.b32.xlu0 %v9210_v8, %s7282_s20  ;;  %v9393_v1 = vsel %vm3689_vm3, %v4259_v28, %v4260_v58  ;;  %v2365_v23 = vcombine.high %v9268_v25, %v9268_v25  ;;  %v3614_v49 = vshrl.u32 %v9295_v29, 16 }
 0x259   :  { %v4928_v17 = vsel %vm4616_vm7, %v4846_v42, %v4229_v62  ;;  %v9412_v18 = vsel %vm3240_vm4, %v3607_v15, %v3611_v27  ;;  %v3618_v19 = vrot.slane %v3616_v35, 1 }
 0x25a   :  { %v3664_v31 = vpop.permute.xlu0 %3663  ;;  %v4186_v39 = vor.u32 %v4185_v55, %v4181_v2  ;;  %5463 = vmatprep.mubr.bf16.mxu1 %v4928_v17  ;;  %4050 = vrot.lane.b32.xlu1 %v9399_v46, %s7279_s2  ;;  %v3239_v25 = vrot.slane %v2365_v23, %v7775_v43  ;;  %v4772_v2 = vsel %vm4486_vm5, %v8827_v44, %v4031_v26 }
 0x25b   :  { %5464 = vmatmul.mubr.bf16.gmra.mrb[56].mxu1 %v4672_v41  ;;  %v4526_v58 = vsel %vm4486_vm5, %v8703_v3, %v3664_v31  ;;  %v3619_v7 = vor.u32 %v3618_v19, %v3614_v49  ;;  %v7211_v49 = vld [vmem:[%s11074_s1 + $0x18] sm:$0xff]  }
 0x25c   :  { %v9405_v56 = vsel %vm3240_vm4, %v4186_v39, %v4190_v36  ;;  %v4129_v40 = vpop.permute.xlu1 %4128  ;;  %3844 = vrot.lane.b32.xlu0 %v9338_v37, %s7281_s13  ;;  %v3784_v62 = vrot.slane %v3239_v25, 1  ;;  %v3621_v13 = vshll.u32 %v3239_v25, 16  ;;  %v4591_v31 = vsel %vm4551_vm6, %v4526_v58, %v3825_v9 }
 0x25d   :  { %v4848_v55 = vsel %vm4551_vm6, %v4772_v2, %v4129_v40 }
 0x25e   :  { %v3923_v30 = vpop.permute.xlu0 %3922  ;;  %4248 = vrot.lane.b32.xlu1 %v9412_v18, %s7282_s20  ;;  %v9434_v44 = vsel %vm3689_vm3, %v3783_v32, %v3784_v62  ;;  %v3623_v36 = vrot.slane %v3621_v13, 1 }
 0x25f   :  { %v4675_v26 = vsel %vm4616_vm7, %v4591_v31, %v3923_v30 }
 0x260   :  { %v4033_v60 = vpop.permute.xlu1 %4032  ;;  %3683 = vrot.lane.b32.xlu0 %v9363_v6, %s7279_s2  ;;  %v9442_v15 = vsel %vm3240_vm4, %v3619_v7, %v3623_v36  ;;  %v7215_v7 = vld [vmem:[%s11074_s1 + $0x38] sm:$0xff]  }
 0x261   :  { %v4775_v27 = vsel %vm4486_vm5, %v8893_v61, %v4033_v60 }
 0x262   :  { %v3827_v28 = vpop.permute.xlu0 %3826  ;;  %4148 = vrot.lane.b32.xlu1 %v9295_v29, %s7281_s13 }
 0x264   :  { %v4231_v42 = vpop.permute.xlu1 %4230  ;;  %3942 = vrot.lane.b32.xlu0 %v9260_v45, %s7282_s20 }
 0x265   :  { %v4931_v3 = vsel %vm4616_vm7, %v4848_v55, %v4231_v42 }
 0x266   :  { %v3666_v17 = vpop.permute.xlu0 %3665  ;;  %5471 = vmatprep.mubr.bf16.mxu1 %v4931_v3  ;;  %4052 = vrot.lane.b32.xlu1 %v9434_v44, %s7279_s2 }
 0x267   :  { %5472 = vmatmul.mubr.bf16.gmra.mrb[60].mxu1 %v4675_v26  ;;  %v4528_v40 = vsel %vm4486_vm5, %v8750_v59, %v3666_v17  ;;  %v7213_v17 = vld [vmem:[%s11074_s1 + $0x28] sm:$0xff]   ;;  %v7214_v26 = vld [vmem:[%s11074_s1 + $0x20] sm:$0xff]  }
 0x268   :  { %v4131_v39 = vpop.permute.xlu1 %4130  ;;  %3846 = vrot.lane.b32.xlu0 %v9399_v46, %s7281_s13  ;;  %v4593_v32 = vsel %vm4551_vm6, %v4528_v40, %v3827_v28 }
 0x269   :  { %v4850_v30 = vsel %vm4551_vm6, %v4775_v27, %v4131_v39  ;;  %v7217_v27 = vld [vmem:[%s11074_s1 + $0x48] sm:$0xff]  }
 0x26a   :  { %v3925_v41 = vpop.permute.xlu0 %3924  ;;  %4250 = vrot.lane.b32.xlu1 %v9442_v15, %s7282_s20 }
 0x26b   :  { %v4678_v59 = vsel %vm4616_vm7, %v4593_v32, %v3925_v41  ;;  %v11353_v32 = vld [vmem:[#allocation40_spill] sm:$0xff] }
 0x26c   :  { %v4035_v9 = vpop.permute.xlu1 %4034  ;;  %3685 = vrot.lane.b32.xlu0 %v9412_v18, %s7279_s2 }
 0x26d   :  { %v4778_v55 = vsel %vm4486_vm5, %v8945_v5, %v4035_v9  ;;  %v7216_v9 = vld [vmem:[%s11074_s1 + $0x30] sm:$0xff]  }
 0x26e   :  { %v3829_v23 = vpop.permute.xlu0 %3828  ;;  %4150 = vrot.lane.b32.xlu1 %v9330_v14, %s7281_s13 }
 0x270   :  { %v4233_v35 = vpop.permute.xlu1 %4232  ;;  %3944 = vrot.lane.b32.xlu0 %v9295_v29, %s7282_s20 }
 0x271   :  { %v4934_v25 = vsel %vm4616_vm7, %v4850_v30, %v4233_v35  ;;  %v11352_v30 = vld [vmem:[#allocation42_spill] sm:$0xff] }
 0x272   :  { %v3668_v58 = vpop.permute.xlu0 %3667  ;;  %5479 = vmatprep.mubr.bf16.mxu1 %v4934_v25  ;;  %4054 = vrot.lane.b32.xlu1 %v9356_v34, %s7279_s2 }
 0x273   :  { %5480 = vmatmul.mubr.bf16.gmra.mrb[64].mxu1 %v4678_v59  ;;  %v4530_v2 = vsel %vm4486_vm5, %v8807_v54, %v3668_v58  ;;  %v3022_v59 = vrot.slane %v11353_v32, %v7775_v43 }
 0x274   :  { %v4133_v61 = vpop.permute.xlu1 %4132  ;;  %3848 = vrot.lane.b32.xlu0 %v9434_v44, %s7281_s13  ;;  %v4595_v54 = vsel %vm4551_vm6, %v4530_v2, %v3829_v23 }
 0x275   :  { %v4852_v42 = vsel %vm4551_vm6, %v4778_v55, %v4133_v61  ;;  %v7218_v61 = vld [vmem:[%s11074_s1 + $0x40] sm:$0xff]  }
 0x276   :  { %v3927_v60 = vpop.permute.xlu0 %3926  ;;  %4252 = vrot.lane.b32.xlu1 %v9375_v47, %s7282_s20 }
 0x277   :  { %v4681_v5 = vsel %vm4616_vm7, %v4595_v54, %v3927_v60  ;;  %v11354_v60 = vld [vmem:[#allocation39_spill] sm:$0xff]  ;;  %v3249_v54 = vshll.u32 %v3022_v59, 16 }
 0x278   :  { %v4037_v19 = vpop.permute.xlu1 %4036  ;;  %3687 = vrot.lane.b32.xlu0 %v9442_v15, %s7279_s2 }
 0x279   :  { %v4781_v41 = vsel %vm4486_vm5, %v9002_v52, %v4037_v19  ;;  %v3244_v19 = vshll.u32 %v11354_v60, 16 }
 0x27a   :  { %v3831_v28 = vpop.permute.xlu0 %3830  ;;  %4152 = vrot.lane.b32.xlu1 %v9370_v38, %s7281_s13 }
 0x27c   :  { %v4235_v62 = vpop.permute.xlu1 %4234  ;;  %3946 = vrot.lane.b32.xlu0 %v9330_v14, %s7282_s20  ;;  %v7212_v14 = vld [vmem:[%s11074_s1 + $0x10] sm:$0xff]  }
 0x27d   :  { %v4937_v13 = vsel %vm4616_vm7, %v4852_v42, %v4235_v62  ;;  %v7220_v62 = vld [vmem:[%s11074_s1 + $0x50] sm:$0xff]  }
 0x27e   :  { %v3670_v3 = vpop.permute.xlu0 %3669  ;;  %5487 = vmatprep.mubr.bf16.mxu1 %v4937_v13  ;;  %4254 = vrot.lane.b32.xlu1 %v9405_v56, %s7282_s20 }
 0x27f   :  { %5488 = vmatmul.mubr.bf16.gmra.mrb[68].mxu1 %v4681_v5  ;;  %v4532_v36 = vsel %vm4486_vm5, %v8859_v10, %v3670_v3  ;;  %v1693_v10 = vcombine.high %v11352_v30, %v11352_v30  ;;  %v3246_v3 = vrot.slane %v3244_v19, 1  ;;  %v3251_v30 = vrot.slane %v3249_v54, 1 }
 0x280   :  { %v4135_v38 = vpop.permute.xlu1 %4134  ;;  %4428 = vrot.lane.b32.xlu0 %v7211_v49, %s7279_s2  ;;  %v4597_v25 = vsel %vm4551_vm6, %v4532_v36, %v3831_v28  ;;  %v7219_v28 = vld [vmem:[%s11074_s1 + $0x58] sm:$0xff]   ;;  %v11355_v49 = vld [vmem:[#allocation43_spill] sm:$0xff]  ;;  %v3691_v19 = vrot.slane %v3022_v59, 1 }
 0x281   :  { %v4854_v23 = vsel %vm4551_vm6, %v4781_v41, %v4135_v38  ;;  %v9530_v42 = vrot.slane %v1693_v10, %v7775_v43  ;;  %v3693_v13 = vrot.slane %v11355_v49, 1 }
 0x282   :  { %v3929_v31 = vpop.permute.xlu0 %3928  ;;  %4426 = vrot.lane.b32.xlu1 %v7212_v14, %s7279_s2 }
 0x283   :  { %v4684_v58 = vsel %vm4616_vm7, %v4597_v25, %v3929_v31  ;;  %v3694_v31 = vrot.slane %v9530_v42, 1  ;;  %v11356_v25 = vld [vmem:[#allocation46_spill] sm:$0xff] }
 0x284   :  { %v4039_v56 = vpop.permute.xlu1 %4038  ;;  %4432 = vrot.lane.b32.xlu0 %v7213_v17, %s7279_s2 }
 0x285   :  { %v4784_v41 = vsel %vm4486_vm5, %v9060_v57, %v4039_v56 }
 0x286   :  { %v3833_v39 = vpop.permute.xlu0 %3832  ;;  %4430 = vrot.lane.b32.xlu1 %v7214_v26, %s7279_s2  ;;  %v3242_v26 = vshrl.u32 %v11354_v60, 16 }
 0x288   :  { %v4237_v40 = vpop.permute.xlu1 %4236  ;;  %4436 = vrot.lane.b32.xlu0 %v7215_v7, %s7279_s2 }
 0x289   :  { %v4940_v52 = vsel %vm4616_vm7, %v4854_v23, %v4237_v40  ;;  %v9550_v23 = vsel %vm3689_vm3, %v3693_v13, %v3694_v31  ;;  %v7221_v40 = vld [vmem:[%s11074_s1 + $0x60] sm:$0xff]  }
 0x28a   :  { %v3672_v35 = vpop.permute.xlu0 %3671  ;;  %5495 = vmatprep.mubr.bf16.mxu1 %v4940_v52  ;;  %4434 = vrot.lane.b32.xlu1 %v7216_v9, %s7279_s2 }
 0x28b   :  { %5496 = vmatmul.mubr.bf16.gmra.mrb[72].mxu1 %v4684_v58  ;;  %v4534_v7 = vsel %vm4486_vm5, %v8896_v33, %v3672_v35  ;;  %v3268_v58 = vshll.u32 %v11356_v25, 16 }
 0x28c   :  { %v4137_v2 = vpop.permute.xlu1 %4136  ;;  %4440 = vrot.lane.b32.xlu0 %v7217_v27, %s7279_s2  ;;  %v3247_v27 = vor.u32 %v3246_v3, %v3242_v26  ;;  %v4599_v52 = vsel %vm4551_vm6, %v4534_v7, %v3833_v39  ;;  %v3690_v3 = vrot.slane %v11354_v60, 1  ;;  %v3256_v26 = vshll.u32 %v11355_v49, 16 }
 0x28d   :  { %v4856_v10 = vsel %vm4551_vm6, %v4784_v41, %v4137_v2  ;;  %v11357_v2 = vld [vmem:[#allocation45_spill] sm:$0xff]  ;;  %v3266_v41 = vshrl.u32 %v11356_v25, 16 }
 0x28e   :  { %v3931_v55 = vpop.permute.xlu0 %3930  ;;  %4438 = vrot.lane.b32.xlu1 %v7218_v61, %s7279_s2  ;;  %v3252_v32 = vsel %vm3240_vm4, %v3247_v27, %v3251_v30  ;;  %v7222_v61 = vld [vmem:[%s11074_s1 + $0x68] sm:$0xff]   ;;  %v3692_v59 = vsel %vm3689_vm3, %v3690_v3, %v3691_v19 }
 0x28f   :  { %v4687_v35 = vsel %vm4616_vm7, %v4599_v52, %v3931_v55 }
 0x290   :  { %v4041_v5 = vpop.permute.xlu1 %4040  ;;  %4444 = vrot.lane.b32.xlu0 %v7219_v28, %s7279_s2  ;;  %v3036_v28 = vrot.slane %v11357_v2, %v7775_v43  ;;  %v3254_v2 = vshrl.u32 %v11355_v49, 16 }
 0x291   :  { %v9537_v14 = vpop.f32.mrb[0].mxu1 }
 0x292   :  { %v5355_v38 = vpop.f32.mrb[1].mxu1  ;;  %v3835_v17 = vpop.permute.xlu0 %3834  ;;  %4442 = vrot.lane.b32.xlu1 %v7220_v62, %s7279_s2 }
 0x293   :  { %v9544_v36 = vpop.f32.mrb[2].mxu1  ;;  %v3270_v38 = vrot.slane %v3268_v58, 1 }
 0x294   :  { %v5358_v9 = vpop.f32.mrb[3].mxu1  ;;  %v4239_v33 = vpop.permute.xlu1 %4238  ;;  %3992 = vrot.lane.b32.xlu0 %v9550_v23, %s7279_s2 }
 0x295   :  { %v4943_v57 = vsel %vm4616_vm7, %v4856_v10, %v4239_v33  ;;  %v3273_v9 = vshll.u32 %v3036_v28, 16  ;;  %v3271_v30 = vor.u32 %v3270_v38, %v3266_v41  ;;  %v3696_v10 = vrot.slane %v11356_v25, 1 }
 0x296   :  { %v3674_v56 = vpop.permute.xlu0 %3673  ;;  %5503 = vmatprep.mubr.bf16.mxu1 %v4943_v57  ;;  %4446 = vrot.lane.b32.xlu1 %v7221_v40, %s7279_s2  ;;  %v4787_v33 = vsel %vm4486_vm5, %v9119_v50, %v4041_v5  ;;  %v3258_v57 = vrot.slane %v3256_v26, 1 }
 0x297   :  { %5504 = vmatmul.mubr.bf16.gmra.mrb[76].mxu1 %v4687_v35  ;;  %v4536_v27 = vsel %vm4486_vm5, %v8932_v21, %v3674_v56  ;;  %v3261_v21 = vshll.u32 %v9530_v42, 16  ;;  %v3697_v56 = vrot.slane %v3036_v28, 1 }
 0x298   :  { %v4139_v62 = vpop.permute.xlu1 %4138  ;;  %3625 = vrot.lane.b32.xlu0 %v3252_v32, %s7279_s2  ;;  %v3275_v32 = vrot.slane %v3273_v9, 1  ;;  %v4601_v5 = vsel %vm4551_vm6, %v4536_v27, %v3835_v17  ;;  %v7223_v17 = vld [vmem:[%s11074_s1 + $0x70] sm:$0xff]   ;;  %v3259_v28 = vor.u32 %v3258_v57, %v3254_v2  ;;  %v11359_v9 = vld [vmem:[#allocation48_spill] sm:$0xff] }
 0x299   :  { %v9569_v39 = vpop.f32.mrb[4].mxu1  ;;  %v4858_v52 = vsel %vm4551_vm6, %v4787_v33, %v4139_v62  ;;  %v9603_v38 = vsel %vm3689_vm3, %v3696_v10, %v3697_v56  ;;  %v3263_v41 = vrot.slane %v3261_v21, 1  ;;  %v3280_v27 = vshll.u32 %v11359_v9, 16  ;;  %v7224_v10 = vld [vmem:[%s11074_s1 + $0x78] sm:$0xff]  }
 0x29a   :  { %v5363_v55 = vpop.f32.mrb[5].mxu1  ;;  %v3933_v13 = vpop.permute.xlu0 %3932  ;;  %4448 = vrot.lane.b32.xlu1 %v7222_v61, %s7279_s2  ;;  %v9597_v62 = vsel %vm3240_vm4, %v3271_v30, %v3275_v32 }
 0x29b   :  { %v9573_v54 = vpop.f32.mrb[6].mxu1  ;;  %v4690_v3 = vsel %vm4616_vm7, %v4601_v5, %v3933_v13  ;;  %v9617_v30 = vsel %vm3240_vm4, %v3259_v28, %v3263_v41  ;;  %v3699_v28 = vrot.slane %v11359_v9, 1 }
 0x29c   :  { %v5366_v31 = vpop.f32.mrb[7].mxu1  ;;  %v4043_v7 = vpop.permute.xlu1 %4042  ;;  %3786 = vrot.lane.b32.xlu0 %v3692_v59, %s7281_s13 }
 0x29d   :  { %v11358_v31 = vld [vmem:[#allocation47_spill] sm:$0xff] }
 0x29e   :  { %v3837_v40 = vpop.permute.xlu0 %3836  ;;  %4090 = vrot.lane.b32.xlu1 %v11356_v25, %s7281_s13  ;;  %v1728_v59 = vcombine.high %v11358_v31, %v11358_v31 }
 0x2a0   :  { %v4241_v35 = vpop.permute.xlu1 %4240  ;;  %3884 = vrot.lane.b32.xlu0 %v11355_v49, %s7282_s20  ;;  %v3043_v33 = vrot.slane %v1728_v59, %v7775_v43 }
 0x2a1   :  { %v9588_v58 = vpop.f32.mrb[8].mxu1  ;;  %v4946_v19 = vsel %vm4616_vm7, %v4858_v52, %v4241_v35 }
 0x2a2   :  { %v5371_v61 = vpop.f32.mrb[9].mxu1  ;;  %v3676_v50 = vpop.permute.xlu0 %3675  ;;  %5511 = vmatprep.mubr.bf16.mxu1 %v4946_v19  ;;  %4192 = vrot.lane.b32.xlu1 %v9597_v62, %s7282_s20  ;;  %v4790_v19 = vsel %vm4486_vm5, %v9195_v63, %v4043_v7  ;;  %v3700_v59 = vrot.slane %v3043_v33, 1 }
 0x2a3   :  { %v9599_v55 = vpop.f32.mrb[10].mxu1  ;;  %5512 = vmatmul.mubr.bf16.gmra.mrb[80].mxu1 %v4690_v3  ;;  %v4538_v21 = vsel %vm4486_vm5, %v9004_v53, %v3676_v50  ;;  %v3282_v61 = vrot.slane %v3280_v27, 1  ;;  %v3278_v3 = vshrl.u32 %v11359_v9, 16 }
 0x2a4   :  { %v5374_v42 = vpop.f32.mrb[11].mxu1  ;;  %v4141_v26 = vpop.permute.xlu1 %4140  ;;  %3994 = vrot.lane.b32.xlu0 %v9603_v38, %s7279_s2 }
 0x2a5   :  { %v4860_v5 = vsel %vm4551_vm6, %v4790_v19, %v4141_v26  ;;  %v3285_v42 = vshll.u32 %v3043_v33, 16  ;;  %v3283_v7 = vor.u32 %v3282_v61, %v3278_v3 }
 0x2a6   :  { %v3935_v13 = vpop.permute.xlu0 %3934  ;;  %4450 = vrot.lane.b32.xlu1 %v7223_v17, %s7279_s2  ;;  %v4603_v17 = vsel %vm4551_vm6, %v4538_v21, %v3837_v40 }
 0x2a7   :  { %v4693_v63 = vsel %vm4616_vm7, %v4603_v17, %v3935_v13  ;;  %v9652_v13 = vsel %vm3689_vm3, %v3699_v28, %v3700_v59  ;;  %v11360_v17 = vld [vmem:[#allocation49_spill] sm:$0xff] }
 0x2a8   :  { %v4045_v57 = vpop.permute.xlu1 %4044  ;;  %3627 = vrot.lane.b32.xlu0 %v9617_v30, %s7279_s2 }
 0x2a9   :  { %v9623_v52 = vpop.f32.mrb[12].mxu1 }
 0x2aa   :  { %v5379_v35 = vpop.f32.mrb[13].mxu1  ;;  %v3839_v32 = vpop.permute.xlu0 %3838  ;;  %4452 = vrot.lane.b32.xlu1 %v7224_v10, %s7279_s2  ;;  %v7226_v10 = vld [vmem:[%s11074_s1 + $0x80] sm:$0xff]  }
 0x2ab   :  { %v9629_v56 = vpop.f32.mrb[14].mxu1 }
 0x2ac   :  { %v5382_v43 = vpop.f32.mrb[15].mxu1  ;;  %v4243_v2 = vpop.permute.xlu1 %4242  ;;  %3788 = vrot.lane.b32.xlu0 %v9550_v23, %s7281_s13  ;;  %v3287_v23 = vrot.slane %v3285_v42, 1 }
 0x2ad   :  { %v4949_v53 = vsel %vm4616_vm7, %v4860_v5, %v4243_v2  ;;  %v7227_v43 = vld [vmem:[%s11074_s1 + $0x88] sm:$0xff]   ;;  %v4793_v5 = vsel %vm4486_vm5, %v9245_v12, %v4045_v57 }
 0x2ae   :  { %v3678_v50 = vpop.permute.xlu0 %3677  ;;  %5519 = vmatprep.mubr.bf16.mxu1 %v4949_v53  ;;  %4092 = vrot.lane.b32.xlu1 %v11359_v9, %s7281_s13  ;;  %v9647_v41 = vsel %vm3240_vm4, %v3283_v7, %v3287_v23 }
 0x2af   :  { %5520 = vmatmul.mubr.bf16.gmra.mrb[84].mxu1 %v4693_v63  ;;  %v4540_v19 = vsel %vm4486_vm5, %v9049_v24, %v3678_v50 }
 0x2b0   :  { %v4143_v31 = vpop.permute.xlu1 %4142  ;;  %3886 = vrot.lane.b32.xlu0 %v11356_v25, %s7282_s20  ;;  %v4605_v24 = vsel %vm4551_vm6, %v4540_v19, %v3839_v32 }
 0x2b1   :  { %v4862_v2 = vsel %vm4551_vm6, %v4793_v5, %v4143_v31 }
 0x2b2   :  { %v3937_v26 = vpop.permute.xlu0 %3936  ;;  %4194 = vrot.lane.b32.xlu1 %v9647_v41, %s7282_s20 }
 0x2b3   :  { %v4696_v50 = vsel %vm4616_vm7, %v4605_v24, %v3937_v26  ;;  %v11361_v26 = vld [vmem:[#allocation51_spill] sm:$0xff] }
 0x2b4   :  { %v9649_v40 = vpop.f32.mrb[16].mxu1  ;;  %3996 = vrot.lane.b32.xlu0 %v9652_v13, %s7279_s2  ;;  %v4047_v35 = vpop.permute.xlu1 %4046 }
 0x2b5   :  { %v5387_v27 = vpop.f32.mrb[17].mxu1 }
 0x2b6   :  { %v9661_v33 = vpop.f32.mrb[18].mxu1  ;;  %v3841_v61 = vpop.permute.xlu0 %3840  ;;  %4454 = vrot.lane.b32.xlu1 %v7226_v10, %s7279_s2  ;;  %v7228_v27 = vld [vmem:[%s11074_s1 + $0x90] sm:$0xff]   ;;  %v4796_v10 = vsel %vm4486_vm5, %v9307_v0, %v4047_v35  ;;  %v7229_v0 = vld [vmem:[%s11074_s1 + $0x98] sm:$0xff]  }
 0x2b7   :  { %v5390_v21 = vpop.f32.mrb[19].mxu1 }
 0x2b8   :  { %3629 = vrot.lane.b32.xlu0 %v9597_v62, %s7279_s2  ;;  %v4245_v3 = vpop.permute.xlu1 %4244  ;;  %v11362_v21 = vld [vmem:[#allocation50_spill] sm:$0xff] }
 0x2b9   :  { %v4952_v42 = vsel %vm4616_vm7, %v4862_v2, %v4245_v3 }
 0x2ba   :  { %v3680_v53 = vpop.permute.xlu0 %3679  ;;  %5527 = vmatprep.mubr.bf16.mxu1 %v4952_v42  ;;  %4456 = vrot.lane.b32.xlu1 %v7227_v43, %s7279_s2 }
 0x2bb   :  { %5528 = vmatmul.mubr.bf16.gmra.mrb[88].mxu1 %v4696_v50  ;;  %v4542_v59 = vsel %vm4486_vm5, %v9094_v22, %v3680_v53 }
 0x2bc   :  { %3790 = vrot.lane.b32.xlu0 %v9603_v38, %s7281_s13  ;;  %v4145_v12 = vpop.permute.xlu1 %4144  ;;  %v4607_v22 = vsel %vm4551_vm6, %v4542_v59, %v3841_v61 }
 0x2bd   :  { %v4864_v19 = vsel %vm4551_vm6, %v4796_v10, %v4145_v12 }
 0x2be   :  { %v3939_v57 = vpop.permute.xlu0 %3938  ;;  %4094 = vrot.lane.b32.xlu1 %v11360_v17, %s7281_s13 }
 0x2bf   :  { %v4699_v3 = vsel %vm4616_vm7, %v4607_v22, %v3939_v57 }
 0x2c0   :  { %v9682_v63 = vpop.f32.mrb[20].mxu1  ;;  %3888 = vrot.lane.b32.xlu0 %v11359_v9, %s7282_s20  ;;  %v4049_v32 = vpop.permute.xlu1 %4048 }
 0x2c1   :  { %v5395_v7 = vpop.f32.mrb[21].mxu1  ;;  %v4799_v59 = vsel %vm4486_vm5, %v9363_v6, %v4049_v32  ;;  %v7232_v32 = vld [vmem:[%s11074_s1 + $0xb8] sm:$0xff]  }
 0x2c2   :  { %v9686_v28 = vpop.f32.mrb[22].mxu1  ;;  %v3843_v23 = vpop.permute.xlu0 %3842  ;;  %4196 = vrot.lane.b32.xlu1 %v11361_v26, %s7282_s20 }
 0x2c3   :  { %v5398_v31 = vpop.f32.mrb[23].mxu1 }
 0x2c4   :  { %3998 = vrot.lane.b32.xlu0 %v11362_v21, %s7279_s2  ;;  %v4247_v43 = vpop.permute.xlu1 %4246  ;;  %v11363_v31 = vld [vmem:[#allocation52_spill] sm:$0xff] }
 0x2c5   :  { %v4955_v5 = vsel %vm4616_vm7, %v4864_v19, %v4247_v43 }
 0x2c6   :  { %v3682_v2 = vpop.permute.xlu0 %3681  ;;  %5535 = vmatprep.mubr.bf16.mxu1 %v4955_v5  ;;  %4458 = vrot.lane.b32.xlu1 %v7228_v27, %s7279_s2  ;;  %v7230_v27 = vld [vmem:[%s11074_s1 + $0xa8] sm:$0xff]  }
 0x2c7   :  { %5536 = vmatmul.mubr.bf16.gmra.mrb[92].mxu1 %v4699_v3  ;;  %v4544_v7 = vsel %vm4486_vm5, %v9146_v20, %v3682_v2  ;;  %v11364_v2 = vld [vmem:[#allocation54_spill] sm:$0xff] }
 0x2c8   :  { %3631 = vrot.lane.b32.xlu0 %v9647_v41, %s7279_s2  ;;  %v4147_v35 = vpop.permute.xlu1 %4146  ;;  %v4609_v20 = vsel %vm4551_vm6, %v4544_v7, %v3843_v23 }
 0x2c9   :  { %v4866_v10 = vsel %vm4551_vm6, %v4799_v59, %v4147_v35  ;;  %v7233_v35 = vld [vmem:[%s11074_s1 + $0xb0] sm:$0xff]  }
 0x2ca   :  { %v3941_v42 = vpop.permute.xlu0 %3940  ;;  %4460 = vrot.lane.b32.xlu1 %v7229_v0, %s7279_s2 }
 0x2cb   :  { %v4702_v6 = vsel %vm4616_vm7, %v4609_v20, %v3941_v42 }
 0x2cc   :  { %v9709_v53 = vpop.f32.mrb[24].mxu1  ;;  %3792 = vrot.lane.b32.xlu0 %v9652_v13, %s7281_s13  ;;  %v4051_v50 = vpop.permute.xlu1 %4050 }
 0x2cd   :  { %v5403_v61 = vpop.f32.mrb[25].mxu1 }
 0x2ce   :  { %v9714_v24 = vpop.f32.mrb[26].mxu1  ;;  %v3845_v57 = vpop.permute.xlu0 %3844  ;;  %4096 = vrot.lane.b32.xlu1 %v11363_v31, %s7281_s13  ;;  %v7234_v61 = vld [vmem:[%s11074_s1 + $0xc8] sm:$0xff]  }
 0x2cf   :  { %v5406_v12 = vpop.f32.mrb[27].mxu1 }
 0x2d0   :  { %3890 = vrot.lane.b32.xlu0 %v11360_v17, %s7282_s20  ;;  %v4249_v19 = vpop.permute.xlu1 %4248  ;;  %v7231_v17 = vld [vmem:[%s11074_s1 + $0xa0] sm:$0xff]  }
 0x2d1   :  { %v4958_v43 = vsel %vm4616_vm7, %v4866_v10, %v4249_v19  ;;  %v4802_v10 = vsel %vm4486_vm5, %v9412_v18, %v4051_v50  ;;  %v7236_v19 = vld [vmem:[%s11074_s1 + $0xd8] sm:$0xff]   ;;  %v7237_v18 = vld [vmem:[%s11074_s1 + $0xd0] sm:$0xff]   ;;  %v7238_v50 = vld [vmem:[%s11074_s1 + $0xe8] sm:$0xff]  }
 0x2d2   :  { %v3684_v5 = vpop.permute.xlu0 %3683  ;;  %5543 = vmatprep.mubr.bf16.mxu1 %v4958_v43  ;;  %4198 = vrot.lane.b32.xlu1 %v11364_v2, %s7282_s20 }
 0x2d3   :  { %5544 = vmatmul.mubr.bf16.gmra.mrb[96].mxu1 %v4702_v6  ;;  %v4546_v59 = vsel %vm4486_vm5, %v9210_v8, %v3684_v5 }
 0x2d4   :  { %4464 = vrot.lane.b32.xlu0 %v7230_v27, %s7279_s2  ;;  %v4149_v22 = vpop.permute.xlu1 %4148  ;;  %v7235_v27 = vld [vmem:[%s11074_s1 + $0xc0] sm:$0xff]   ;;  %v4611_v2 = vsel %vm4551_vm6, %v4546_v59, %v3845_v57 }
 0x2d5   :  { %v4868_v43 = vsel %vm4551_vm6, %v4802_v10, %v4149_v22  ;;  %v7241_v10 = vld [vmem:[%s11074_s1 + $0xf0] sm:$0xff]  }
 0x2d6   :  { %v3943_v3 = vpop.permute.xlu0 %3942  ;;  %4462 = vrot.lane.b32.xlu1 %v7231_v17, %s7279_s2 }
 0x2d7   :  { %v4705_v6 = vsel %vm4616_vm7, %v4611_v2, %v3943_v3  ;;  %v7239_v3 = vld [vmem:[%s11074_s1 + $0xe0] sm:$0xff]  }
 0x2d8   :  { %v9740_v23 = vpop.f32.mrb[28].mxu1  ;;  %4468 = vrot.lane.b32.xlu0 %v7232_v32, %s7279_s2  ;;  %v4053_v12 = vpop.permute.xlu1 %4052 }
 0x2d9   :  { %v5411_v0 = vpop.f32.mrb[29].mxu1 }
 0x2da   :  { %v9747_v42 = vpop.f32.mrb[30].mxu1  ;;  %v3847_v31 = vpop.permute.xlu0 %3846  ;;  %4466 = vrot.lane.b32.xlu1 %v7233_v35, %s7279_s2  ;;  %v7240_v35 = vld [vmem:[%s11074_s1 + $0xf8] sm:$0xff]  }
 0x2db   :  { %v5414_v7 = vpop.f32.mrb[31].mxu1 }
 0x2dc   :  { %4472 = vrot.lane.b32.xlu0 %v7234_v61, %s7279_s2  ;;  %v4251_v20 = vpop.permute.xlu1 %4250 }
 0x2dd   :  { %v4961_v8 = vsel %vm4616_vm7, %v4868_v43, %v4251_v20 }
 0x2de   :  { %v3686_v5 = vpop.permute.xlu0 %3685  ;;  %5551 = vmatprep.mubr.bf16.mxu1 %v4961_v8  ;;  %4470 = vrot.lane.b32.xlu1 %v7235_v27, %s7279_s2 }
 0x2df   :  { %5552 = vmatmul.mubr.bf16.gmra.mrb[100].mxu1 %v4705_v6  ;;  %v4548_v27 = vsel %vm4486_vm5, %v9260_v45, %v3686_v5 }
 0x2e0   :  { %4476 = vrot.lane.b32.xlu0 %v7236_v19, %s7279_s2  ;;  %v4151_v17 = vpop.permute.xlu1 %4150  ;;  %v4805_v19 = vsel %vm4486_vm5, %v9442_v15, %v4053_v12  ;;  %v4613_v6 = vsel %vm4551_vm6, %v4548_v27, %v3847_v31 }
 0x2e1   :  { %v4870_v43 = vsel %vm4551_vm6, %v4805_v19, %v4151_v17  ;;  %v11365_v19 = vld [vmem:[#allocation67_spill] sm:$0xff] }
 0x2e2   :  { %v3945_v32 = vpop.permute.xlu0 %3944  ;;  %4474 = vrot.lane.b32.xlu1 %v7237_v18, %s7279_s2 }
 0x2e3   :  { %v4708_v45 = vsel %vm4616_vm7, %v4613_v6, %v3945_v32 }
 0x2e4   :  { %v9776_v22 = vpop.f32.mrb[32].mxu1  ;;  %4480 = vrot.lane.b32.xlu0 %v7238_v50, %s7279_s2  ;;  %v4055_v61 = vpop.permute.xlu1 %4054 }
 0x2e5   :  { %v5419_v57 = vpop.f32.mrb[33].mxu1  ;;  %v4808_v17 = vsel %vm4486_vm5, %v9375_v47, %v4055_v61 }
 0x2e6   :  { %v9783_v0 = vpop.f32.mrb[34].mxu1  ;;  %v3849_v59 = vpop.permute.xlu0 %3848  ;;  %4478 = vrot.lane.b32.xlu1 %v7239_v3, %s7279_s2 }
 0x2e7   :  { %v5422_v7 = vpop.f32.mrb[35].mxu1 }
 0x2e8   :  { %4484 = vrot.lane.b32.xlu0 %v7240_v35, %s7279_s2  ;;  %v4253_v20 = vpop.permute.xlu1 %4252 }
 0x2e9   :  { %v4964_v8 = vsel %vm4616_vm7, %v4870_v43, %v4253_v20 }
 0x2ea   :  { %v3688_v2 = vpop.permute.xlu0 %3687  ;;  %5559 = vmatprep.mubr.bf16.mxu1 %v4964_v8  ;;  %4482 = vrot.lane.b32.xlu1 %v7241_v10, %s7279_s2 }
 0x2eb   :  { %5560 = vmatmul.mubr.bf16.gmra.mrb[104].mxu1 %v4708_v45  ;;  %v4550_v15 = vsel %vm4486_vm5, %v9295_v29, %v3688_v2  ;;  %v4971_v29 = vsel %vm4486_vm5, %v9603_v38, %v11365_v19  ;;  %v11366_v2 = vld [vmem:[#allocation69_spill] sm:$0xff] }
 0x2ec   :  { %v4153_v5 = vpop.permute.xlu1 %4152  ;;  %v4615_v27 = vsel %vm4551_vm6, %v4550_v15, %v3849_v59  ;;  %v4974_v59 = vsel %vm4486_vm5, %v9652_v13, %v11366_v2 }
 0x2ed   :  { %v4872_v31 = vsel %vm4551_vm6, %v4808_v17, %v4153_v5 }
 0x2ee   :  { %v3947_v18 = vpop.permute.xlu0 %3946 }
 0x2ef   :  { %v4711_v10 = vsel %vm4616_vm7, %v4615_v27, %v3947_v18 }
 0x2f0   :  { %v9802_v50 = vpop.f32.mrb[36].mxu1  ;;  %v4255_v3 = vpop.permute.xlu1 %4254 }
 0x2f1   :  { %v5427_v12 = vpop.f32.mrb[37].mxu1  ;;  %v4967_v32 = vsel %vm4616_vm7, %v4872_v31, %v4255_v3  ;;  %v11367_v3 = vld [vmem:[#allocation53_spill] sm:$0xff] }
 0x2f2   :  { %v9808_v57 = vpop.f32.mrb[38].mxu1  ;;  %v4429_v7 = vpop.permute.xlu0 %4428  ;;  %5567 = vmatprep.mubr.bf16.mxu1 %v4967_v32  ;;  %v11368_v32 = vld [vmem:[#allocation55_spill] sm:$0xff] }
 0x2f3   :  { %v5430_v35 = vpop.f32.mrb[39].mxu1  ;;  %5568 = vmatmul.mubr.bf16.gmra.mrb[108].mxu1 %v4711_v10  ;;  %v4980_v13 = vsel %vm4486_vm5, %v11367_v3, %v4429_v7 }
 0x2f4   :  { %7010 = vmatprep.mubr.msk.bf16.mxu1 %vm375_vm2, %v4971_v29  ;;  %v4427_v47 = vpop.permute.xlu1 %4426 }
 0x2f5   :  { %v4977_v45 = vsel %vm4486_vm5, %v11362_v21, %v4427_v47 }
 0x2f6   :  { %v4433_v61 = vpop.permute.xlu0 %4432 }
 0x2f8   :  { %v4431_v43 = vpop.permute.xlu1 %4430 }
 0x2f9   :  { %v4983_v21 = vsel %vm4486_vm5, %v11368_v32, %v4431_v43 }
 0x2fa   :  { %v4437_v20 = vpop.permute.xlu0 %4436 }
 0x2fb   :  { %7011 = vmatmul.mubr.msk.bf16.vlgmr.msra.gmra.mrb[112].mxu1 %vm375_vm2, %v4974_v59  ;;  %v11369_v59 = vld [vmem:[#allocation56_spill] sm:$0xff] }
 0x2fc   :  { %v9818_v8 = vpop.f32.mrb[40].mxu1  ;;  %7014 = vmatprep.mubr.msk.bf16.mxu1 %vm375_vm2, %v4977_v45  ;;  %v4435_v5 = vpop.permute.xlu1 %4434  ;;  %v11370_v45 = vld [vmem:[#allocation57_spill] sm:$0xff] }
 0x2fd   :  { %v5435_v6 = vpop.f32.mrb[41].mxu1  ;;  %v4989_v7 = vsel %vm4486_vm5, %v11370_v45, %v4435_v5 }
 0x2fe   :  { %v9826_v38 = vpop.f32.mrb[42].mxu1  ;;  %v4441_v15 = vpop.permute.xlu0 %4440  ;;  %v4986_v6 = vsel %vm4486_vm5, %v11369_v59, %v4433_v61 }
 0x2ff   :  { %v5438_v18 = vpop.f32.mrb[43].mxu1 }
 0x300   :  { %v4439_v12 = vpop.permute.xlu1 %4438 }
 0x302   :  { %v4445_v17 = vpop.permute.xlu0 %4444 }
 0x303   :  { %7015 = vmatmul.mubr.msk.bf16.gmra.mrb[116].mxu1 %vm375_vm2, %v4980_v13 }
 0x304   :  { %v9829_v31 = vpop.f32.mrb[44].mxu1  ;;  %7018 = vmatprep.mubr.msk.bf16.mxu1 %vm375_vm2, %v4983_v21  ;;  %v4443_v10 = vpop.permute.xlu1 %4442  ;;  %v11372_v21 = vld [vmem:[#allocation59_spill] sm:$0xff] }
 0x305   :  { %v5443_v35 = vpop.f32.mrb[45].mxu1 }
 0x306   :  { %v9836_v27 = vpop.f32.mrb[46].mxu1  ;;  %v3993_v29 = vpop.permute.xlu0 %3992  ;;  %v11371_v35 = vld [vmem:[#allocation58_spill] sm:$0xff] }
 0x307   :  { %v5446_v19 = vpop.f32.mrb[47].mxu1  ;;  %v4992_v32 = vsel %vm4486_vm5, %v11371_v35, %v4437_v20  ;;  %v4715_v61 = vsel %vm4486_vm5, %v9617_v30, %v3993_v29 }
 0x308   :  { %v4447_v47 = vpop.permute.xlu1 %4446  ;;  %v4995_v19 = vsel %vm4486_vm5, %v11372_v21, %v4439_v12 }
 0x30a   :  { %v3626_v2 = vpop.permute.xlu0 %3625 }
 0x30b   :  { %7019 = vmatmul.mubr.msk.bf16.gmra.mrb[120].mxu1 %vm375_vm2, %v4986_v6  ;;  %v4488_v5 = vsel %vm4486_vm5, %v11354_v60, %v3626_v2 }
 0x30c   :  { %7022 = vmatprep.mubr.msk.bf16.mxu1 %vm375_vm2, %v4989_v7  ;;  %v4449_v43 = vpop.permute.xlu1 %4448 }
 0x30e   :  { %v3787_v18 = vpop.permute.xlu0 %3786 }
 0x30f   :  { %v4553_v45 = vsel %vm4551_vm6, %v4488_v5, %v3787_v18 }
 0x310   :  { %v4091_v3 = vpop.permute.xlu1 %4090 }
 0x311   :  { %v4810_v59 = vsel %vm4551_vm6, %v4715_v61, %v4091_v3 }
 0x312   :  { %v3885_v13 = vpop.permute.xlu0 %3884 }
 0x313   :  { %7023 = vmatmul.mubr.msk.bf16.gmra.mrb[124].mxu1 %vm375_vm2, %v4992_v32  ;;  %v4618_v35 = vsel %vm4616_vm7, %v4553_v45, %v3885_v13  ;;  %v11373_v32 = vld [vmem:[#allocation60_spill] sm:$0xff] }
 0x314   :  { %7026 = vmatprep.mubr.msk.bf16.mxu1 %vm375_vm2, %v4995_v19  ;;  %v4193_v6 = vpop.permute.xlu1 %4192  ;;  %v4998_v21 = vsel %vm4486_vm5, %v11373_v32, %v4441_v15  ;;  %v11374_v19 = vld [vmem:[#allocation62_spill] sm:$0xff]  ;;  %v11375_v45 = vld [vmem:[#allocation64_spill] sm:$0xff] }
 0x315   :  { %v4874_v20 = vsel %vm4616_vm7, %v4810_v59, %v4193_v6  ;;  %v9858_v7 = vpop.f32.mrb[48].mxu1  ;;  %v5001_v18 = vsel %vm4486_vm5, %v11374_v19, %v4443_v10 }
 0x316   :  { %v3995_v12 = vpop.permute.xlu0 %3994  ;;  %5319 = vmatprep.mubr.bf16.mxu0 %v4874_v20  ;;  %v5451_v30 = vpop.f32.mrb[49].mxu1  ;;  %v5004_v20 = vsel %vm4486_vm5, %v11375_v45, %v4445_v17 }
 0x317   :  { %5320 = vmatmul.mubr.bf16.vlgmr.msra.gmra.mrb[180].mxu0 %v4618_v35  ;;  %v9861_v29 = vpop.f32.mrb[50].mxu1  ;;  %v11376_v30 = vld [vmem:[#allocation66_spill] sm:$0xff]  ;;  %v4718_v10 = vsel %vm4486_vm5, %v9597_v62, %v3995_v12 }
 0x318   :  { %v4451_v60 = vpop.permute.xlu1 %4450  ;;  %v5454_v2 = vpop.f32.mrb[51].mxu1  ;;  %v5007_v15 = vsel %vm4486_vm5, %v11376_v30, %v4447_v47 }
 0x31a   :  { %v3628_v3 = vpop.permute.xlu0 %3627 }
 0x31b   :  { %7027 = vmatmul.mubr.msk.bf16.gmra.mrb[128].mxu1 %vm375_vm2, %v4998_v21  ;;  %v4490_v32 = vsel %vm4486_vm5, %v11355_v49, %v3628_v3  ;;  %v11378_v3 = vld [vmem:[#allocation68_spill] sm:$0xff] }
 0x31c   :  { %7030 = vmatprep.mubr.msk.bf16.mxu1 %vm375_vm2, %v5001_v18  ;;  %v4453_v61 = vpop.permute.xlu1 %4452 }
 0x31e   :  { %v3789_v13 = vpop.permute.xlu0 %3788 }
 0x31f   :  { %v4555_v18 = vsel %vm4551_vm6, %v4490_v32, %v3789_v13 }
 0x320   :  { %v4093_v5 = vpop.permute.xlu1 %4092 }
 0x321   :  { %v9869_v59 = vpop.f32.mrb[52].mxu1  ;;  %v4812_v21 = vsel %vm4551_vm6, %v4718_v10, %v4093_v5  ;;  %v5013_v5 = vsel %vm4486_vm5, %v11378_v3, %v4451_v60 }
 0x322   :  { %v3887_v6 = vpop.permute.xlu0 %3886  ;;  %v5459_v35 = vpop.f32.mrb[53].mxu1 }
 0x323   :  { %7031 = vmatmul.mubr.msk.bf16.gmra.mrb[132].mxu1 %vm375_vm2, %v5004_v20  ;;  %v9878_v2 = vpop.f32.mrb[54].mxu1  ;;  %v4621_v62 = vsel %vm4616_vm7, %v4555_v18, %v3887_v6  ;;  %v11377_v35 = vld [vmem:[#allocation71_spill] sm:$0xff] }
 0x324   :  { %7034 = vmatprep.mubr.msk.bf16.mxu1 %vm375_vm2, %v5007_v15  ;;  %v4195_v19 = vpop.permute.xlu1 %4194  ;;  %v5462_v17 = vpop.f32.mrb[55].mxu1  ;;  %v5010_v49 = vsel %vm4486_vm5, %v11377_v35, %v4449_v43 }
 0x325   :  { %v4877_v47 = vsel %vm4616_vm7, %v4812_v21, %v4195_v19  ;;  %v11379_v17 = vld [vmem:[#allocation73_spill] sm:$0xff] }
 0x326   :  { %v3997_v45 = vpop.permute.xlu0 %3996  ;;  %5327 = vmatprep.mubr.bf16.mxu0 %v4877_v47  ;;  %v5016_v43 = vsel %vm4486_vm5, %v11379_v17, %v4453_v61 }
 0x327   :  { %5328 = vmatmul.mubr.bf16.gmra.mrb[184].mxu0 %v4621_v62  ;;  %v4721_v60 = vsel %vm4486_vm5, %v9647_v41, %v3997_v45 }
 0x328   :  { %v4455_v12 = vpop.permute.xlu1 %4454 }
 0x329   :  { %v5019_v18 = vsel %vm4486_vm5, %v8695_v48, %v4455_v12 }
 0x32a   :  { %v3630_v20 = vpop.permute.xlu0 %3629 }
 0x32b   :  { %7035 = vmatmul.mubr.msk.bf16.gmra.mrb[136].mxu1 %vm375_vm2, %v5010_v49  ;;  %v4492_v47 = vsel %vm4486_vm5, %v11356_v25, %v3630_v20 }
 0x32c   :  { %7038 = vmatprep.mubr.msk.bf16.mxu1 %vm375_vm2, %v5013_v5  ;;  %v4457_v13 = vpop.permute.xlu1 %4456 }
 0x32d   :  { %v5022_v25 = vsel %vm4486_vm5, %v8760_v16, %v4457_v13 }
 0x32e   :  { %v9893_v30 = vpop.f32.mrb[56].mxu1  ;;  %v3791_v15 = vpop.permute.xlu0 %3790 }
 0x32f   :  { %v5467_v10 = vpop.f32.mrb[57].mxu1  ;;  %v4557_v49 = vsel %vm4551_vm6, %v4492_v47, %v3791_v15 }
 0x330   :  { %v9895_v32 = vpop.f32.mrb[58].mxu1  ;;  %v4095_v6 = vpop.permute.xlu1 %4094 }
 0x331   :  { %v5470_v21 = vpop.f32.mrb[59].mxu1  ;;  %v4814_v62 = vsel %vm4551_vm6, %v4721_v60, %v4095_v6 }
 0x332   :  { %v3889_v19 = vpop.permute.xlu0 %3888 }
 0x333   :  { %7039 = vmatmul.mubr.msk.bf16.gmra.mrb[140].mxu1 %vm375_vm2, %v5016_v43  ;;  %v4624_v41 = vsel %vm4616_vm7, %v4557_v49, %v3889_v19  ;;  %v11380_v43 = vld [vmem:[#allocation41_spill] sm:$0xff] }
 0x334   :  { %7042 = vmatprep.mubr.msk.bf16.mxu1 %vm375_vm2, %v5019_v18  ;;  %v4197_v35 = vpop.permute.xlu1 %4196 }
 0x335   :  { %v4880_v61 = vsel %vm4616_vm7, %v4814_v62, %v4197_v35 }
 0x336   :  { %v3999_v3 = vpop.permute.xlu0 %3998  ;;  %5335 = vmatprep.mubr.bf16.mxu0 %v4880_v61 }
 0x337   :  { %5336 = vmatmul.mubr.bf16.gmra.mrb[188].mxu0 %v4624_v41  ;;  %v4724_v16 = vsel %vm4486_vm5, %v11361_v26, %v3999_v3 }
 0x338   :  { %v4459_v48 = vpop.permute.xlu1 %4458 }
 0x339   :  { %v5025_v5 = vsel %vm4486_vm5, %v8811_v11, %v4459_v48 }
 0x33a   :  { %v9911_v45 = vpop.f32.mrb[60].mxu1  ;;  %v3632_v12 = vpop.permute.xlu0 %3631 }
 0x33b   :  { %v5475_v20 = vpop.f32.mrb[61].mxu1  ;;  %7043 = vmatmul.mubr.msk.bf16.gmra.mrb[144].mxu1 %vm375_vm2, %v5022_v25  ;;  %v4494_v11 = vsel %vm4486_vm5, %v11359_v9, %v3632_v12  ;;  %v11381_v9 = vmov 0.0   ;;  %v11382_v12 = vld [vmem:[#allocation35_spill] sm:$0xff] }
 0x33c   :  { %v9918_v15 = vpop.f32.mrb[62].mxu1  ;;  %7046 = vmatprep.mubr.msk.bf16.mxu1 %vm375_vm2, %v5025_v5  ;;  %v4461_v10 = vpop.permute.xlu1 %4460  ;;  %v11383_v20 = vld [vmem:[#allocation37_spill] sm:$0xff] }
 0x33d   :  { %v5478_v6 = vpop.f32.mrb[63].mxu1  ;;  %v5028_v60 = vsel %vm4486_vm5, %v11380_v43, %v4461_v10 }
 0x33e   :  { %v3793_v21 = vpop.permute.xlu0 %3792  ;;  %v11384_v6 = vld [vmem:[#allocation38_spill] sm:$0xff] }
 0x33f   :  { %v4559_v47 = vsel %vm4551_vm6, %v4494_v11, %v3793_v21 }
 0x340   :  { %v4097_v19 = vpop.permute.xlu1 %4096 }
 0x341   :  { %v4816_v13 = vsel %vm4551_vm6, %v4724_v16, %v4097_v19 }
 0x342   :  { %v3891_v17 = vpop.permute.xlu0 %3890 }
 0x343   :  { %7047 = vmatmul.mubr.msk.bf16.gmra.mrb[148].mxu1 %vm375_vm2, %v5028_v60  ;;  %v4627_v61 = vsel %vm4616_vm7, %v4559_v47, %v3891_v17  ;;  %v11385_v60 = vld [vmem:[#allocation44_spill] sm:$0xff] }
 0x344   :  { %v4199_v18 = vpop.permute.xlu1 %4198 }
 0x345   :  { %v4883_v62 = vsel %vm4616_vm7, %v4816_v13, %v4199_v18  ;;  %v11386_v13 = vld [vmem:[#allocation5_spill] sm:$0xff] }
 0x346   :  { %v9931_v35 = vpop.f32.mrb[64].mxu1  ;;  %5343 = vmatprep.mubr.bf16.mxu0 %v4883_v62  ;;  %v4465_v41 = vpop.permute.xlu0 %4464 }
 0x347   :  { %v5483_v49 = vpop.f32.mrb[65].mxu1  ;;  %5344 = vmatmul.mubr.bf16.gmra.mrb[192].mxu0 %v4627_v61  ;;  %v5034_v5 = vsel %vm4486_vm5, %v11383_v20, %v4465_v41 }
 0x348   :  { %v9934_v26 = vpop.f32.mrb[66].mxu1  ;;  %v4463_v3 = vpop.permute.xlu1 %4462  ;;  %7082 = vmatprep.mubr.msk.f32.mxu0 %vm7277_vm0, %v11381_v9 }
 0x349   :  { %v5486_v48 = vpop.f32.mrb[67].mxu1  ;;  %v5031_v25 = vsel %vm4486_vm5, %v11382_v12, %v4463_v3 }
 0x34a   :  { %7050 = vmatprep.mubr.msk.bf16.mxu1 %vm375_vm2, %v5031_v25  ;;  %v4469_v19 = vpop.permute.xlu0 %4468 }
 0x34b   :  { %7051 = vmatmul.mubr.msk.bf16.gmra.mrb[152].mxu1 %vm375_vm2, %v5034_v5  ;;  %v5040_v16 = vsel %vm4486_vm5, %v11385_v60, %v4469_v19 }
 0x34c   :  { %v4467_v10 = vpop.permute.xlu1 %4466 }
 0x34d   :  { %v5037_v21 = vsel %vm4486_vm5, %v11384_v6, %v4467_v10 }
 0x34e   :  { %7054 = vmatprep.mubr.msk.bf16.mxu1 %vm375_vm2, %v5037_v21  ;;  %v4473_v49 = vpop.permute.xlu0 %4472 }
 0x34f   :  { %v5046_v41 = vsel %vm4486_vm5, %v9227_v4, %v4473_v49 }
 0x350   :  { %v4471_v17 = vpop.permute.xlu1 %4470 }
 0x351   :  { %v5043_v18 = vsel %vm4486_vm5, %v11386_v13, %v4471_v17 }
 0x352   :  { %v9947_v43 = vpop.f32.mrb[68].mxu1  ;;  %v4477_v25 = vpop.permute.xlu0 %4476 }
 0x353   :  { %v5491_v11 = vpop.f32.mrb[69].mxu1  ;;  %7055 = vmatmul.mubr.msk.bf16.gmra.mrb[156].mxu1 %vm375_vm2, %v5040_v16  ;;  %v5052_v6 = vsel %vm4486_vm5, %v9338_v37, %v4477_v25 }
 0x354   :  { %v9954_v47 = vpop.f32.mrb[70].mxu1  ;;  %7058 = vmatprep.mubr.msk.bf16.mxu1 %vm375_vm2, %v5043_v18  ;;  %v4475_v61 = vpop.permute.xlu1 %4474 }
 0x355   :  { %v5494_v62 = vpop.f32.mrb[71].mxu1  ;;  %v5049_v3 = vsel %vm4486_vm5, %v9274_v51, %v4475_v61 }
 0x356   :  { %v4481_v51 = vpop.permute.xlu0 %4480 }
 0x357   :  { %v5058_v17 = vsel %vm4486_vm5, %v9434_v44, %v4481_v51 }
 0x358   :  { %v4479_v5 = vpop.permute.xlu1 %4478 }
 0x359   :  { %v5055_v4 = vsel %vm4486_vm5, %v9399_v46, %v4479_v5 }
 0x35a   :  { %v4485_v11 = vpop.permute.xlu0 %4484 }
 0x35b   :  { %7059 = vmatmul.mubr.msk.bf16.gmra.mrb[160].mxu1 %vm375_vm2, %v5046_v41  ;;  %v5064_v13 = vsel %vm4486_vm5, %v9393_v1, %v4485_v11 }
 0x35c   :  { %7062 = vmatprep.mubr.msk.bf16.mxu1 %vm375_vm2, %v5049_v3  ;;  %v4483_v21 = vpop.permute.xlu1 %4482 }
 0x35d   :  { %v5061_v16 = vsel %vm4486_vm5, %v9356_v34, %v4483_v21 }
 0x35e   :  { %v9963_v48 = vpop.f32.mrb[72].mxu1 }
 0x35f   :  { %v5499_v12 = vpop.f32.mrb[73].mxu1 }
 0x360   :  { %v9965_v20 = vpop.f32.mrb[74].mxu1 }
 0x361   :  { %v5502_v10 = vpop.f32.mrb[75].mxu1 }
 0x363   :  { %7063 = vmatmul.mubr.msk.bf16.gmra.mrb[164].mxu1 %vm375_vm2, %v5052_v6 }
 0x364   :  { %7066 = vmatprep.mubr.msk.bf16.mxu1 %vm375_vm2, %v5055_v4 }
 0x36a   :  { %v9973_v19 = vpop.f32.mrb[76].mxu1 }
 0x36b   :  { %v5507_v60 = vpop.f32.mrb[77].mxu1  ;;  %7067 = vmatmul.mubr.msk.bf16.gmra.mrb[168].mxu1 %vm375_vm2, %v5058_v17 }
 0x36c   :  { %v9980_v37 = vpop.f32.mrb[78].mxu1  ;;  %7070 = vmatprep.mubr.msk.bf16.mxu1 %vm375_vm2, %v5061_v16 }
 0x36d   :  { %v5510_v46 = vpop.f32.mrb[79].mxu1 }
 0x373   :  { %7071 = vmatmul.mubr.msk.bf16.gmra.mrb[172].mxu1 %vm375_vm2, %v5064_v13 }
 0x376   :  { %v9986_v18 = vpop.f32.mrb[80].mxu1 }
 0x377   :  { %v5515_v44 = vpop.f32.mrb[81].mxu1 }
 0x378   :  { %v9988_v62 = vpop.f32.mrb[82].mxu1 }
 0x379   :  { %v5518_v49 = vpop.f32.mrb[83].mxu1 }
 0x382   :  { %v9990_v34 = vpop.f32.mrb[84].mxu1 }
 0x383   :  { %v5523_v61 = vpop.f32.mrb[85].mxu1 }
 0x384   :  { %v9992_v41 = vpop.f32.mrb[86].mxu1 }
 0x385   :  { %v5526_v3 = vpop.f32.mrb[87].mxu1 }
 0x38e   :  { %v9994_v12 = vpop.f32.mrb[88].mxu1 }
 0x38f   :  { %v5531_v25 = vpop.f32.mrb[89].mxu1 }
 0x390   :  { %v9996_v5 = vpop.f32.mrb[90].mxu1 }
 0x391   :  { %11387 = vst [vmem:[#allocation7_spill] sm:$0xff] %v9996_v5  ;;  %v5534_v1 = vpop.f32.mrb[91].mxu1 }
 0x39a   :  { %v9998_v10 = vpop.f32.mrb[92].mxu1 }
 0x39b   :  { %11388 = vst [vmem:[#allocation9_spill] sm:$0xff] %v9998_v10  ;;  %v5539_v6 = vpop.f32.mrb[93].mxu1 }
 0x39c   :  { %v10000_v4 = vpop.f32.mrb[94].mxu1 }
 0x39d   :  { %11389 = vst [vmem:[#allocation10_spill] sm:$0xff] %v10000_v4  ;;  %v5542_v51 = vpop.f32.mrb[95].mxu1 }
 0x3a6   :  { %v10002_v21 = vpop.f32.mrb[96].mxu1 }
 0x3a7   :  { %11390 = vst [vmem:[#allocation11_spill] sm:$0xff] %v10002_v21  ;;  %v5547_v17 = vpop.f32.mrb[97].mxu1 }
 0x3a8   :  { %v10004_v60 = vpop.f32.mrb[98].mxu1 }
 0x3a9   :  { %11391 = vst [vmem:[#allocation6_spill] sm:$0xff] %v10004_v60  ;;  %v5550_v16 = vpop.f32.mrb[99].mxu1 }
 0x3aa   :  { %v6163_v16 = vld [vmem:[%s11082_s9] sm:$0xff] }
 0x3b2   :  { %v10006_v46 = vpop.f32.mrb[100].mxu1 }
 0x3b3   :  { %11392 = vst [vmem:[#allocation8_spill] sm:$0xff] %v10006_v46  ;;  %v5555_v11 = vpop.f32.mrb[101].mxu1 }
 0x3b4   :  { %v10008_v13 = vpop.f32.mrb[102].mxu1  ;;  %v6164_v11 = vld [vmem:[%s11082_s9 + $0x8] sm:$0xff] }
 0x3b5   :  { %11393 = vst [vmem:[#allocation12_spill] sm:$0xff] %v10008_v13  ;;  %v5558_v44 = vpop.f32.mrb[103].mxu1 }
 0x3b6   :  { %v7283_v44 = vmov 0.0|0.0  }
 0x3b7   :  { %7090 = vmatprep.subr.bf16.mxu0 %v7283_v44 }
 0x3be   :  { %v10010_v49 = vpop.f32.mrb[104].mxu1 }
 0x3bf   :  { %11394 = vst [vmem:[#allocation13_spill] sm:$0xff] %v10010_v49  ;;  %v5563_v61 = vpop.f32.mrb[105].mxu1 }
 0x3c0   :  { %v10012_v3 = vpop.f32.mrb[106].mxu1  ;;  %v7091_v61 = vpack.c.bf16 %v6164_v11, %v6163_v16  ;;  %v10039_v16 = vld [vmem:[%s11080_s7] ss:$0 sm:$0xff] }
 0x3c1   :  { %11395 = vst [vmem:[#allocation14_spill] sm:$0xff] %v10012_v3  ;;  %v5566_v25 = vpop.f32.mrb[107].mxu1  ;;  %v5362_v11 = vadd.f32 %v10039_v16, %v9569_v39  ;;  %v5357_v39 = vadd.f32 %v10039_v16, %v9544_v36  ;;  %v5381_v36 = vadd.f32 %v10039_v16, %v9629_v56  ;;  %v5394_v56 = vadd.f32 %v10039_v16, %v9682_v63 }
 0x3c2   :  { %7092 = vmatpush3.bf16.msra.mxu0 %v7091_v61  ;;  %v6166_v61 = vld [vmem:[%s11082_s9 + $0x18] sm:$0xff]  ;;  %v5389_v63 = vadd.f32 %v10039_v16, %v9661_v33 }
 0x3c3   :  { %7093 = vmatprep.subr.bf16.mxu0 %v7283_v44  ;;  %v6165_v44 = vld [vmem:[%s11082_s9 + $0x10] sm:$0xff] }
 0x3c6   :  { %v10014_v1 = vpop.f32.mrb[108].mxu1 }
 0x3c7   :  { %11396 = vst [vmem:[#allocation15_spill] sm:$0xff] %v10014_v1  ;;  %v5571_v6 = vpop.f32.mrb[109].mxu1 }
 0x3c8   :  { %v10016_v51 = vpop.f32.mrb[110].mxu1 }
 0x3c9   :  { %11397 = vst [vmem:[#allocation16_spill] sm:$0xff] %v10016_v51  ;;  %v5574_v17 = vpop.f32.mrb[111].mxu1 }
 0x3ce   :  { %v10024_v49 = vpop.f32.mrb[112].mxu1 }
 0x3cf   :  { %v5610_v25 = vpop.f32.mrb[113].mxu1 }
 0x3d0   :  { %v10026_v6 = vpop.f32.mrb[114].mxu1 }
 0x3d1   :  { %v5613_v51 = vpop.f32.mrb[115].mxu1 }
 0x3d6   :  { %v10028_v17 = vpop.f32.mrb[116].mxu1 }
 0x3d7   :  { %11398 = vst [vmem:[#allocation17_spill] sm:$0xff] %v10028_v17  ;;  %v10030_v1 = vpop.f32.mrb[117].mxu1 }
 0x3d8   :  { %11399 = vst [vmem:[#allocation18_spill] sm:$0xff] %v10030_v1  ;;  %v10032_v3 = vpop.f32.mrb[118].mxu1  ;;  %v5365_v1 = vadd.f32 %v10039_v16, %v9573_v54  ;;  %v5378_v54 = vadd.f32 %v10039_v16, %v9623_v52 }
 0x3d9   :  { %11400 = vst [vmem:[#allocation19_spill] sm:$0xff] %v10032_v3  ;;  %v10034_v13 = vpop.f32.mrb[119].mxu1  ;;  %v5354_v3 = vadd.f32 %v10039_v16, %v9537_v14 }
 0x3da   :  { %11401 = vst [vmem:[#allocation61_spill] sm:$0xff] %v10034_v13  ;;  %v7094_v13 = vpack.c.bf16 %v6166_v61, %v6165_v44 }
 0x3dc   :  { %7095 = vmatpush3.bf16.msra.mxu0 %v7094_v13 }
 0x3dd   :  { %7085 = vmatprep.subr.mxu0 %v11381_v9 }
 0x3de   :  { %v7020_v17 = vpop.f32.mrb[120].mxu1 }
 0x3df   :  { %v10053_v46 = vadd.f32 %v7020_v17, %v5362_v11  ;;  %v5642_v60 = vpop.f32.mrb[121].mxu1  ;;  %v5370_v17 = vadd.f32 %v10039_v16, %v9588_v58 }
 0x3e0   :  { %v10057_v21 = vadd.f32 %v5642_v60, %v5354_v3  ;;  %v7021_v4 = vpop.f32.mrb[122].mxu1 }
 0x3e1   :  { %11402 = vst [vmem:[#allocation20_spill] sm:$0xff] %v10053_v46  ;;  %v10059_v10 = vadd.f32 %v7021_v4, %v5365_v1  ;;  %v5645_v5 = vpop.f32.mrb[123].mxu1  ;;  %v5373_v4 = vadd.f32 %v10039_v16, %v9599_v55 }
 0x3e2   :  { %11403 = vst [vmem:[#allocation21_spill] sm:$0xff] %v10057_v21  ;;  %v10062_v14 = vadd.f32 %v5645_v5, %v5357_v39 }
 0x3e3   :  { %11404 = vst [vmem:[#allocation22_spill] sm:$0xff] %v10059_v10 }
 0x3e4   :  { %11405 = vst [vmem:[#allocation23_spill] sm:$0xff] %v10062_v14 }
 0x3e6   :  { %v7024_v11 = vpop.f32.mrb[124].mxu1 }
 0x3e7   :  { %v10070_v60 = vadd.f32 %v7024_v11, %v5378_v54  ;;  %v5658_v13 = vpop.f32.mrb[125].mxu1  ;;  %v5386_v11 = vadd.f32 %v10039_v16, %v9649_v40  ;;  %v5410_v40 = vadd.f32 %v10039_v16, %v9740_v23 }
 0x3e8   :  { %v10074_v3 = vadd.f32 %v5658_v13, %v5370_v17  ;;  %v7025_v5 = vpop.f32.mrb[126].mxu1  ;;  %v5397_v13 = vadd.f32 %v10039_v16, %v9686_v28  ;;  %v5402_v28 = vadd.f32 %v10039_v16, %v9709_v53 }
 0x3e9   :  { %11406 = vst [vmem:[#allocation63_spill] sm:$0xff] %v10070_v60  ;;  %v10076_v1 = vadd.f32 %v7025_v5, %v5381_v36  ;;  %v5661_v44 = vpop.f32.mrb[127].mxu1 }
 0x3ea   :  { %11407 = vst [vmem:[#allocation72_spill] sm:$0xff] %v10074_v3  ;;  %v10078_v52 = vadd.f32 %v5661_v44, %v5373_v4  ;;  %v5321_v61 = vpop.f32.mrb[180].mxu0 }
 0x3eb   :  { %v5322_v58 = vadd.f32 %v10039_v16, %v5321_v61  ;;  %v5323_v39 = vpop.f32.mrb[181].mxu0 }
 0x3ec   :  { %v5324_v9 = vpop.f32.mrb[182].mxu0 }
 0x3ed   :  { %v10083_v54 = vadd.f32 %v5610_v25, %v5322_v58  ;;  %v5325_v55 = vadd.f32 %v10039_v16, %v5324_v9  ;;  %v5326_v17 = vpop.f32.mrb[183].mxu0 }
 0x3ee   :  { %v7028_v36 = vpop.f32.mrb[128].mxu1  ;;  %v5405_v17 = vadd.f32 %v10039_v16, %v9714_v24 }
 0x3ef   :  { %11408 = vst [vmem:[#allocation24_spill] sm:$0xff] %v10083_v54  ;;  %v10090_v4 = vadd.f32 %v5613_v51, %v5325_v55  ;;  %v10092_v5 = vadd.f32 %v7028_v36, %v5394_v56  ;;  %v5674_v44 = vpop.f32.mrb[129].mxu1  ;;  %v5413_v56 = vadd.f32 %v10039_v16, %v9747_v42  ;;  %v5426_v42 = vadd.f32 %v10039_v16, %v9802_v50 }
 0x3f0   :  { %v10096_v25 = vadd.f32 %v5674_v44, %v5386_v11  ;;  %v7029_v61 = vpop.f32.mrb[130].mxu1  ;;  %v5437_v50 = vadd.f32 %v10039_v16, %v9826_v38  ;;  %v10152_v38 = vadd.f32 %v10039_v16, %v9861_v29  ;;  %v10174_v29 = vadd.f32 %v10039_v16, %v9911_v45 }
 0x3f1   :  { %11409 = vst [vmem:[#allocation25_spill] sm:$0xff] %v10090_v4  ;;  %v10098_v9 = vadd.f32 %v7029_v61, %v5397_v13  ;;  %v5677_v58 = vpop.f32.mrb[131].mxu1  ;;  %v10196_v45 = vadd.f32 %v10039_v16, %v9954_v47  ;;  %v10216_v47 = vadd.f32 %v10039_v16, %v9986_v18 }
 0x3f2   :  { %v10100_v39 = vadd.f32 %v5677_v58, %v5389_v63 }
 0x3f6   :  { %v7032_v51 = vpop.f32.mrb[132].mxu1 }
 0x3f7   :  { %v10108_v55 = vadd.f32 %v7032_v51, %v5410_v40  ;;  %v5690_v33 = vpop.f32.mrb[133].mxu1  ;;  %v5418_v51 = vadd.f32 %v10039_v16, %v9776_v22  ;;  %v5442_v22 = vadd.f32 %v10039_v16, %v9829_v31  ;;  %v10160_v31 = vadd.f32 %v10039_v16, %v9878_v2 }
 0x3f8   :  { %v10112_v11 = vadd.f32 %v5690_v33, %v5402_v28  ;;  %v7033_v36 = vpop.f32.mrb[134].mxu1  ;;  %v5429_v33 = vadd.f32 %v10039_v16, %v9808_v57  ;;  %v10146_v57 = vadd.f32 %v10039_v16, %v9858_v7  ;;  %v10166_v7 = vadd.f32 %v10039_v16, %v9893_v30 }
 0x3f9   :  { %v10114_v13 = vadd.f32 %v7033_v36, %v5413_v56  ;;  %v5693_v44 = vpop.f32.mrb[135].mxu1  ;;  %v5421_v56 = vadd.f32 %v10039_v16, %v9783_v0  ;;  %v5434_v36 = vadd.f32 %v10039_v16, %v9818_v8  ;;  %v5445_v0 = vadd.f32 %v10039_v16, %v9836_v27 }
 0x3fa   :  { %v10116_v23 = vadd.f32 %v5693_v44, %v5405_v17  ;;  %v5329_v63 = vpop.f32.mrb[184].mxu0  ;;  %v10180_v2 = vadd.f32 %v10039_v16, %v9918_v15  ;;  %v10188_v30 = vadd.f32 %v10039_v16, %v9934_v26  ;;  %v10200_v15 = vadd.f32 %v10039_v16, %v9963_v48 }
 0x3fb   :  { %11410 = vst [vmem:[#allocation65_spill] sm:$0xff] %v10114_v13  ;;  %v5330_v53 = vadd.f32 %v10039_v16, %v5329_v63  ;;  %v5331_v61 = vpop.f32.mrb[185].mxu0  ;;  %v10208_v26 = vadd.f32 %v10039_v16, %v9973_v19  ;;  %v10220_v48 = vadd.f32 %v10039_v16, %v9988_v62  ;;  %v10228_v19 = vadd.f32 %v10039_v16, %v9992_v41  ;;  %v11425_v41 = vld [vmem:[#allocation11_spill] sm:$0xff] }
 0x3fc   :  { %11411 = vst [vmem:[#allocation70_spill] sm:$0xff] %v10116_v23  ;;  %v5332_v58 = vpop.f32.mrb[186].mxu0 }
 0x3fd   :  { %v10122_v40 = vadd.f32 %v10024_v49, %v5330_v53  ;;  %v5333_v24 = vadd.f32 %v10039_v16, %v5332_v58  ;;  %v5334_v28 = vpop.f32.mrb[187].mxu0  ;;  %v10170_v58 = vadd.f32 %v10039_v16, %v9895_v32  ;;  %v10192_v32 = vadd.f32 %v10039_v16, %v9947_v43  ;;  %11417 = vst [vmem:[#allocation30_spill] sm:$0xff] %v10220_v48 }
 0x3fe   :  { %v7036_v17 = vpop.f32.mrb[136].mxu1  ;;  %v10212_v43 = vadd.f32 %v10039_v16, %v9980_v37  ;;  %v10232_v37 = vadd.f32 %v10039_v16, %v9994_v12  ;;  %v10254_v12 = vld [vmem:[%s11081_s8 + $0x50] sm:$0xff] }
 0x3ff   :  { %11412 = vst [vmem:[#allocation26_spill] sm:$0xff] %v10122_v40  ;;  %v10136_v49 = vadd.f32 %v10026_v6, %v5333_v24  ;;  %v10138_v44 = vadd.f32 %v7036_v17, %v5426_v42  ;;  %v5706_v63 = vpop.f32.mrb[137].mxu1  ;;  %v10156_v6 = vadd.f32 %v10039_v16, %v9869_v59  ;;  %v10184_v42 = vadd.f32 %v10039_v16, %v9931_v35  ;;  %v11419_v24 = vld [vmem:[#allocation7_spill] sm:$0xff] }
 0x400   :  { %v10148_v8 = vadd.f32 %v5706_v63, %v5418_v51  ;;  %v7037_v53 = vpop.f32.mrb[138].mxu1  ;;  %v10204_v35 = vadd.f32 %v10039_v16, %v9965_v20  ;;  %v10224_v20 = vadd.f32 %v10039_v16, %v9990_v34  ;;  %11418 = vst [vmem:[#allocation31_spill] sm:$0xff] %v10232_v37  ;;  %v10236_v18 = vadd.f32 %v10039_v16, %v11419_v24  ;;  %v11421_v51 = vld [vmem:[#allocation9_spill] sm:$0xff]  ;;  %v11423_v34 = vld [vmem:[#allocation10_spill] sm:$0xff] }
 0x401   :  { %11413 = vst [vmem:[#allocation27_spill] sm:$0xff] %v10138_v44  ;;  %v10162_v27 = vadd.f32 %v7037_v53, %v5429_v33  ;;  %v5709_v61 = vpop.f32.mrb[139].mxu1  ;;  %v10245_v33 = vadd.f32 %v10039_v16, %v11423_v34  ;;  %v10249_v17 = vadd.f32 %v10039_v16, %v11425_v41  ;;  %v11436_v34 = vld [vmem:[#allocation13_spill] sm:$0xff]  ;;  %v11454_v37 = vmax.f32 %v10062_v14, 0.0 }
 0x402   :  { %11414 = vst [vmem:[#allocation28_spill] sm:$0xff] %v10148_v8  ;;  %v10176_v59 = vadd.f32 %v5709_v61, %v5421_v56  ;;  %11420 = vst [vmem:[#allocation32_spill] sm:$0xff] %v10236_v18  ;;  %v10241_v56 = vadd.f32 %v10039_v16, %v11421_v51  ;;  %v11428_v61 = vld [vmem:[#allocation6_spill] sm:$0xff]  ;;  %v10289_v51 = vadd.f32 %v10039_v16, %v11436_v34  ;;  %v10345_v8 = vld [vmem:[%s11081_s8 + $0x70] sm:$0xff]  ;;  %v11453_v18 = vmax.f32 %v10122_v40, 0.0 }
 0x403   :  { %11415 = vst [vmem:[#allocation29_spill] sm:$0xff] %v10162_v27  ;;  %11424 = vst [vmem:[#allocation34_spill] sm:$0xff] %v10245_v33  ;;  %v10260_v24 = vadd.f32 %v10039_v16, %v11428_v61  ;;  %v10282_v61 = vld [vmem:[%s11081_s8 + $0x58] sm:$0xff]  ;;  %v11458_v14 = vmax.f32 %v10074_v3, 0.0 }
 0x404   :  { %11416 = vst [vmem:[#allocation74_spill] sm:$0xff] %v10176_v59  ;;  %11422 = vst [vmem:[#allocation33_spill] sm:$0xff] %v10241_v56  ;;  %v11433_v59 = vld [vmem:[#allocation12_spill] sm:$0xff] }
 0x405   :  { %11426 = vst [vmem:[#allocation42_spill] sm:$0xff] %v10249_v17  ;;  %11429 = vst [vmem:[#allocation39_spill] sm:$0xff] %v10260_v24  ;;  %v11431_v17 = vld [vmem:[#allocation8_spill] sm:$0xff] }
 0x406   :  { %v7040_v62 = vpop.f32.mrb[140].mxu1  ;;  %v10268_v27 = vadd.f32 %v10039_v16, %v11431_v17  ;;  %11437 = vst [vmem:[#allocation48_spill] sm:$0xff] %v10289_v51 }
 0x407   :  { %v10256_v63 = vadd.f32 %v7040_v62, %v5442_v22  ;;  %v5722_v53 = vpop.f32.mrb[141].mxu1  ;;  %v10272_v22 = vadd.f32 %v10039_v16, %v11433_v59  ;;  %v10277_v62 = vld [vmem:[%s11081_s8 + $0x40] sm:$0xff]  ;;  %v11438_v59 = vmax.f32 %v10053_v46, 0.0  ;;  %v11449_v46 = vmax.f32 %v10090_v4, 0.0 }
 0x408   :  { %v10264_v28 = vadd.f32 %v5722_v53, %v5434_v36  ;;  %v7041_v41 = vpop.f32.mrb[142].mxu1  ;;  %11432 = vst [vmem:[#allocation46_spill] sm:$0xff] %v10268_v27  ;;  %v5930_v36 = vld [vmem:[%s11081_s8 + $0x8] sm:$0xff] }
 0x409   :  { %11427 = vst [vmem:[#allocation40_spill] sm:$0xff] %v10256_v63  ;;  %11434 = vst [vmem:[#allocation45_spill] sm:$0xff] %v10272_v22  ;;  %v10285_v53 = vadd.f32 %v7041_v41, %v5445_v0  ;;  %v5725_v17 = vpop.f32.mrb[143].mxu1  ;;  %v5971_v63 = vmul.f32 %v10254_v12, %v11438_v59  ;;  %v11440_v0 = vld [vmem:[#allocation14_spill] sm:$0xff] }
 0x40a   :  { %11430 = vst [vmem:[#allocation43_spill] sm:$0xff] %v10264_v28  ;;  %v10295_v24 = vadd.f32 %v5725_v17, %v5437_v50  ;;  %v5337_v22 = vpop.f32.mrb[188].mxu0  ;;  %v10302_v41 = vadd.f32 %v10039_v16, %v11440_v0  ;;  %v5929_v50 = vld [vmem:[%s11081_s8] sm:$0xff]  ;;  %v11444_v17 = vld [vmem:[#allocation16_spill] sm:$0xff]  ;;  %v11446_v0 = vmax.f32 %v10057_v21, 0.0 }
 0x40b   :  { %11435 = vst [vmem:[#allocation47_spill] sm:$0xff] %v10285_v53  ;;  %v11442_v53 = vld [vmem:[#allocation15_spill] sm:$0xff]  ;;  %v5338_v59 = vadd.f32 %v10039_v16, %v5337_v22  ;;  %v5339_v28 = vpop.f32.mrb[189].mxu0  ;;  %v10340_v27 = vsel %vm4486_vm5, %v5971_v63, 0.0 }
 0x40c   :  { %11439 = vst [vmem:[#allocation49_spill] sm:$0xff] %v10295_v24  ;;  %11441 = vst [vmem:[#allocation51_spill] sm:$0xff] %v10302_v41  ;;  %v10306_v34 = vadd.f32 %v10039_v16, %v11442_v53  ;;  %v10315_v24 = vadd.f32 %v10039_v16, %v11444_v17  ;;  %v5969_v41 = vmul.f32 %v10277_v62, %v11446_v0  ;;  %v11447_v53 = vmax.f32 %v10059_v10, 0.0  ;;  %v5340_v22 = vpop.f32.mrb[190].mxu0  ;;  %v5931_v28 = vld [vmem:[%s11081_s8 + $0x10] sm:$0xff]  ;;  %v10330_v17 = vld [vmem:[%s11081_s8 + $0x48] sm:$0xff] }
 0x40d   :  { %v5341_v10 = vadd.f32 %v10039_v16, %v5340_v22  ;;  %v5963_v21 = vmul.f32 %v5931_v28, %v11453_v18  ;;  %v5970_v63 = vmul.f32 %v10330_v17, %v11454_v37  ;;  %v5933_v18 = vld [vmem:[%s11081_s8 + $0x20] sm:$0xff] }
 0x40e   :  { %11443 = vst [vmem:[#allocation50_spill] sm:$0xff] %v10306_v34  ;;  %11445 = vst [vmem:[#allocation52_spill] sm:$0xff] %v10315_v24  ;;  %v5972_v51 = vmul.f32 %v10282_v61, %v11447_v53  ;;  %v11448_v24 = vld [vmem:[#allocation18_spill] sm:$0xff]  ;;  %v5342_v53 = vpop.f32.mrb[191].mxu0  ;;  %v5962_v34 = vmul.f32 %v5930_v36, %v11449_v46  ;;  %v10354_v46 = vld [vmem:[%s11081_s8 + $0x60] sm:$0xff] }
 0x40f   :  { %v10334_v0 = vadd.f32 %v11448_v24, %v5338_v59  ;;  %v7044_v24 = vpop.f32.mrb[144].mxu1  ;;  %v11450_v59 = vmax.f32 %v10083_v54, 0.0  ;;  %v11451_v53 = vld [vmem:[#allocation61_spill] sm:$0xff]  ;;  %v10366_v54 = vsel %vm4486_vm5, %v5969_v41, 0.0  ;;  %v11456_v41 = vmax.f32 %v10070_v60, 0.0 }
 0x410   :  { %v10358_v4 = vadd.f32 %v11451_v53, %v5341_v10  ;;  %v10361_v33 = vadd.f32 %v7044_v24, %v10156_v6  ;;  %v5738_v44 = vpop.f32.mrb[145].mxu1  ;;  %v5932_v6 = vld [vmem:[%s11081_s8 + $0x18] sm:$0xff]  ;;  %v5973_v40 = vmul.f32 %v10354_v46, %v11458_v14  ;;  %v10415_v48 = vsel %vm4486_vm5, %v5970_v63, 0.0 }
 0x411   :  { %v5961_v22 = vmul.f32 %v5929_v50, %v11450_v59  ;;  %v10369_v59 = vsel %vm4486_vm5, %v5972_v51, 0.0  ;;  %v10375_v10 = vadd.f32 %v5738_v44, %v10146_v57  ;;  %v7045_v53 = vpop.f32.mrb[146].mxu1  ;;  %v5975_v51 = vmul.f32 %v10345_v8, %v11456_v41  ;;  %v10402_v41 = vld [vmem:[%s11081_s8 + $0x78] sm:$0xff] }
 0x412   :  { %11452 = vst [vmem:[#allocation54_spill] sm:$0xff] %v10361_v33  ;;  %v10388_v37 = vadd.f32 %v7045_v53, %v10160_v31  ;;  %v5741_v44 = vpop.f32.mrb[147].mxu1  ;;  %v6026_v57 = vsel %vm4486_vm5, %v5962_v34, 0.0  ;;  %v6028_v31 = vsel %vm4486_vm5, %v5963_v21, 0.0  ;;  %v11460_v53 = vmax.f32 %v10136_v49, 0.0 }
 0x413   :  { %11455 = vst [vmem:[#allocation67_spill] sm:$0xff] %v10375_v10  ;;  %v11188_v13 = vmax.f32 %v10375_v10, 0.0  ;;  %v10397_v60 = vadd.f32 %v5741_v44, %v10152_v38  ;;  %v6025_v34 = vsel %vm4486_vm5, %v5961_v22, 0.0  ;;  %v11461_v14 = vmax.f32 %v10334_v0, 0.0 }
 0x414   :  { %11457 = vst [vmem:[#allocation69_spill] sm:$0xff] %v10388_v37  ;;  %v5964_v24 = vmul.f32 %v5932_v6, %v11460_v53  ;;  %v6027_v23 = vadd.f32 %v6026_v57, %v6025_v34  ;;  %v10418_v21 = vsel %vm4486_vm5, %v5975_v51, 0.0  ;;  %v5934_v51 = vld [vmem:[%s11081_s8 + $0x28] sm:$0xff]  ;;  %v10435_v22 = vsel %vm4486_vm5, %v5973_v40, 0.0 }
 0x415   :  { %11459 = vst [vmem:[#allocation53_spill] sm:$0xff] %v10397_v60  ;;  %v5965_v56 = vmul.f32 %v5933_v18, %v11461_v14  ;;  %v5993_v3 = vmul.f32 %v5929_v50, %v11188_v13  ;;  %v11189_v44 = vmax.f32 %v10397_v60, 0.0  ;;  %v11462_v14 = vmax.f32 %v10076_v1, 0.0 }
 0x416   :  { %v11463_v50 = vmax.f32 %v10361_v33, 0.0  ;;  %v6029_v63 = vadd.f32 %v6028_v31, %v6027_v23  ;;  %v7048_v34 = vpop.f32.mrb[148].mxu1  ;;  %v6030_v53 = vsel %vm4486_vm5, %v5964_v24, 0.0  ;;  %v11464_v23 = vmax.f32 %v10388_v37, 0.0 }
 0x417   :  { %v10425_v10 = vmul.f32 %v10402_v41, %v11462_v14  ;;  %v5994_v57 = vmul.f32 %v5930_v36, %v11189_v44  ;;  %v10439_v14 = vadd.f32 %v7048_v34, %v10174_v29  ;;  %v5754_v38 = vpop.f32.mrb[149].mxu1 }
 0x418   :  { %v5995_v13 = vmul.f32 %v5931_v28, %v11463_v50  ;;  %v6032_v28 = vsel %vm4486_vm5, %v5965_v56, 0.0  ;;  %v6094_v50 = vsel %vm4486_vm5, %v5993_v3, 0.0  ;;  %v5996_v36 = vmul.f32 %v5932_v6, %v11464_v23  ;;  %v7049_v40 = vpop.f32.mrb[150].mxu1  ;;  %v5935_v6 = vld [vmem:[%s11081_s8 + $0x30] sm:$0xff] }
 0x419   :  { %v6095_v31 = vsel %vm4486_vm5, %v5994_v57, 0.0  ;;  %v10447_v44 = vadd.f32 %v5754_v38, %v10166_v7  ;;  %v10451_v29 = vadd.f32 %v7049_v40, %v10180_v2  ;;  %v5757_v34 = vpop.f32.mrb[151].mxu1  ;;  %v11466_v56 = vmax.f32 %v10358_v4, 0.0 }
 0x41a   :  { %v6096_v33 = vadd.f32 %v6095_v31, %v6094_v50  ;;  %v6097_v3 = vsel %vm4486_vm5, %v5995_v13, 0.0  ;;  %v6031_v38 = vadd.f32 %v6030_v53, %v6029_v63  ;;  %v10461_v57 = vadd.f32 %v5757_v34, %v10170_v58  ;;  %v5345_v50 = vpop.f32.mrb[192].mxu0  ;;  %v5936_v58 = vld [vmem:[%s11081_s8 + $0x38] sm:$0xff] }
 0x41b   :  { %11465 = vst [vmem:[#allocation55_spill] sm:$0xff] %v10447_v44  ;;  %v5966_v60 = vmul.f32 %v5934_v51, %v11466_v56  ;;  %v11193_v7 = vmax.f32 %v10447_v44, 0.0  ;;  %v5346_v40 = vadd.f32 %v10039_v16, %v5345_v50  ;;  %v5347_v56 = vpop.f32.mrb[193].mxu0  ;;  %v6099_v13 = vsel %vm4486_vm5, %v5996_v36, 0.0 }
 0x41c   :  { %v6098_v23 = vadd.f32 %v6097_v3, %v6096_v33  ;;  %v6033_v37 = vadd.f32 %v6032_v28, %v6031_v38  ;;  %v11196_v53 = vmax.f32 %v10461_v57, 0.0  ;;  %v5348_v63 = vpop.f32.mrb[194].mxu0  ;;  %v11467_v33 = vmax.f32 %v10439_v14, 0.0  ;;  %v11468_v56 = vld [vmem:[#allocation17_spill] sm:$0xff] }
 0x41d   :  { %v5997_v24 = vmul.f32 %v5933_v18, %v11193_v7  ;;  %v6034_v50 = vsel %vm4486_vm5, %v5966_v60, 0.0  ;;  %v10477_v2 = vadd.f32 %v11468_v56, %v5346_v40  ;;  %v5350_v36 = vpop.f32.mrb[195].mxu0  ;;  %v5349_v7 = vadd.f32 %v10039_v16, %v5348_v63 }
 0x41e   :  { %v5999_v34 = vmul.f32 %v5935_v6, %v11467_v33  ;;  %v6100_v3 = vadd.f32 %v6099_v13, %v6098_v23  ;;  %v5998_v38 = vmul.f32 %v5934_v51, %v11196_v53  ;;  %v7052_v31 = vpop.f32.mrb[152].mxu1  ;;  %v11469_v33 = vmax.f32 %v10451_v29, 0.0 }
 0x41f   :  { %v6101_v28 = vsel %vm4486_vm5, %v5997_v24, 0.0  ;;  %v11213_v60 = vmax.f32 %v10477_v2, 0.0  ;;  %v10488_v40 = vadd.f32 %v7052_v31, %v10192_v32  ;;  %v5770_v13 = vpop.f32.mrb[153].mxu1  ;;  %v6035_v56 = vadd.f32 %v6034_v50, %v6033_v37  ;;  %v11470_v24 = vld [vmem:[#allocation19_spill] sm:$0xff]  ;;  %v5942_v37 = vld [vmem:[%s11081_s8 + $0x68] sm:$0xff] }
 0x420   :  { %v6102_v44 = vadd.f32 %v6101_v28, %v6100_v3  ;;  %v6000_v23 = vmul.f32 %v5936_v58, %v11469_v33  ;;  %v6103_v36 = vsel %vm4486_vm5, %v5998_v38, 0.0  ;;  %v10492_v18 = vadd.f32 %v11470_v24, %v5349_v7  ;;  %v7053_v16 = vpop.f32.mrb[154].mxu1 }
 0x421   :  { %v10495_v51 = vadd.f32 %v5770_v13, %v10184_v42  ;;  %v6105_v63 = vsel %vm4486_vm5, %v5999_v34, 0.0  ;;  %v5967_v28 = vmul.f32 %v5935_v6, %v11213_v60  ;;  %v10501_v32 = vadd.f32 %v7053_v16, %v10196_v45  ;;  %v5773_v31 = vpop.f32.mrb[155].mxu1  ;;  %v10509_v42 = vld [vmem:[%s11081_s8 + $0x90] sm:$0xff] }
 0x422   :  { %v6104_v3 = vadd.f32 %v6103_v36, %v6102_v44  ;;  %v11197_v7 = vmax.f32 %v10492_v18, 0.0  ;;  %v11198_v44 = vmax.f32 %v10488_v40, 0.0  ;;  %v10515_v6 = vadd.f32 %v5773_v31, %v10188_v30 }
 0x423   :  { %v11195_v34 = vmax.f32 %v10495_v51, 0.0  ;;  %v6107_v45 = vsel %vm4486_vm5, %v6000_v23, 0.0  ;;  %v6036_v38 = vsel %vm4486_vm5, %v5967_v28, 0.0  ;;  %v11200_v33 = vmax.f32 %v10501_v32, 0.0 }
 0x424   :  { %v6106_v50 = vadd.f32 %v6105_v63, %v6104_v3  ;;  %v6037_v13 = vadd.f32 %v6036_v38, %v6035_v56  ;;  %v5968_v36 = vmul.f32 %v5936_v58, %v11197_v7  ;;  %v11199_v16 = vmax.f32 %v10515_v6, 0.0  ;;  %v10538_v58 = vld [vmem:[%s11081_s8 + $0x80] sm:$0xff] }
 0x425   :  { %v6001_v24 = vmul.f32 %v10277_v62, %v11195_v34  ;;  %v10528_v30 = vsel %vm4486_vm5, %v10425_v10, 0.0  ;;  %v11471_v23 = vmax.f32 %v10078_v52, 0.0  ;;  %v11472_v3 = vmax.f32 %v10092_v5, 0.0 }
 0x426   :  { %v6108_v28 = vadd.f32 %v6107_v45, %v6106_v50  ;;  %v6038_v62 = vsel %vm4486_vm5, %v5968_v36, 0.0  ;;  %v6003_v10 = vmul.f32 %v10254_v12, %v11198_v44  ;;  %v6002_v38 = vmul.f32 %v10330_v17, %v11199_v16  ;;  %v10558_v12 = vld [vmem:[%s11081_s8 + $0x98] sm:$0xff] }
 0x427   :  { %v5974_v63 = vmul.f32 %v5942_v37, %v11471_v23  ;;  %v5979_v56 = vmul.f32 %v10509_v42, %v11472_v3  ;;  %v6109_v31 = vsel %vm4486_vm5, %v6001_v24, 0.0  ;;  %v7056_v23 = vpop.f32.mrb[156].mxu1  ;;  %v11207_v3 = vmax.f32 %v10098_v9, 0.0 }
 0x428   :  { %v6039_v34 = vadd.f32 %v6038_v62, %v6037_v13  ;;  %v6110_v53 = vadd.f32 %v6109_v31, %v6108_v28  ;;  %v10550_v7 = vadd.f32 %v7056_v23, %v10208_v26  ;;  %v5786_v45 = vpop.f32.mrb[157].mxu1  ;;  %v11473_v50 = vmax.f32 %v10096_v25, 0.0 }
 0x429   :  { %v6004_v17 = vmul.f32 %v10282_v61, %v11200_v33  ;;  %v6111_v13 = vsel %vm4486_vm5, %v6002_v38, 0.0  ;;  %v10565_v24 = vadd.f32 %v5786_v45, %v10200_v15  ;;  %v7057_v26 = vpop.f32.mrb[158].mxu1  ;;  %v11211_v28 = vmax.f32 %v10100_v39, 0.0 }
 0x42a   :  { %v5977_v36 = vmul.f32 %v10538_v58, %v11473_v50  ;;  %v6041_v62 = vadd.f32 %v10366_v54, %v6039_v34  ;;  %v6112_v31 = vadd.f32 %v6111_v13, %v6110_v53  ;;  %v10570_v23 = vadd.f32 %v7057_v26, %v10212_v43  ;;  %v5789_v50 = vpop.f32.mrb[159].mxu1  ;;  %v5946_v43 = vld [vmem:[%s11081_s8 + $0x88] sm:$0xff] }
 0x42b   :  { %v6113_v44 = vsel %vm4486_vm5, %v6003_v10, 0.0  ;;  %v11201_v16 = vmax.f32 %v10550_v7, 0.0  ;;  %v11204_v61 = vmax.f32 %v10565_v24, 0.0  ;;  %v10576_v38 = vadd.f32 %v5789_v50, %v10204_v35 }
 0x42c   :  { %v6050_v15 = vsel %vm4486_vm5, %v5974_v63, 0.0  ;;  %v5980_v54 = vmul.f32 %v10558_v12, %v11207_v3  ;;  %v6043_v53 = vadd.f32 %v10415_v48, %v6041_v62  ;;  %v6114_v34 = vadd.f32 %v6113_v44, %v6112_v31 }
 0x42d   :  { %v6115_v10 = vsel %vm4486_vm5, %v6004_v17, 0.0  ;;  %v6005_v35 = vmul.f32 %v10354_v46, %v11204_v61  ;;  %v11202_v45 = vmax.f32 %v10570_v23, 0.0  ;;  %v11203_v63 = vmax.f32 %v10576_v38, 0.0 }
 0x42e   :  { %v10593_v13 = vsel %vm4486_vm5, %v5979_v56, 0.0  ;;  %v6056_v26 = vsel %vm4486_vm5, %v5977_v36, 0.0  ;;  %v6045_v50 = vadd.f32 %v10340_v27, %v6043_v53  ;;  %v6116_v33 = vadd.f32 %v6115_v10, %v6114_v34  ;;  %v7060_v62 = vpop.f32.mrb[160].mxu1 }
 0x42f   :  { %v5978_v48 = vmul.f32 %v5946_v43, %v11211_v28  ;;  %v6007_v44 = vmul.f32 %v10345_v8, %v11201_v16  ;;  %v6117_v46 = vsel %vm4486_vm5, %v6005_v35, 0.0  ;;  %v6006_v17 = vmul.f32 %v5942_v37, %v11203_v63  ;;  %v5802_v53 = vpop.f32.mrb[161].mxu1  ;;  %v10616_v8 = vld [vmem:[%s11081_s8 + $0xb0] sm:$0xff]  ;;  %v11477_v63 = vld [vmem:[#allocation65_spill] sm:$0xff] }
 0x430   :  { %v11205_v56 = vmax.f32 %v10108_v55, 0.0  ;;  %v6047_v36 = vadd.f32 %v10369_v59, %v6045_v50  ;;  %v6118_v31 = vadd.f32 %v6117_v46, %v6116_v33  ;;  %v10608_v27 = vadd.f32 %v7060_v62, %v10224_v20  ;;  %v7061_v20 = vpop.f32.mrb[162].mxu1 }
 0x431   :  { %v10611_v34 = vsel %vm4486_vm5, %v5980_v54, 0.0  ;;  %v6008_v37 = vmul.f32 %v10402_v41, %v11202_v45  ;;  %v6119_v10 = vsel %vm4486_vm5, %v6006_v17, 0.0  ;;  %v10623_v59 = vadd.f32 %v5802_v53, %v10216_v47  ;;  %v5805_v46 = vpop.f32.mrb[163].mxu1  ;;  %v11475_v17 = vld [vmem:[#allocation30_spill] sm:$0xff] }
 0x432   :  { %v11210_v33 = vmax.f32 %v10112_v11, 0.0  ;;  %v6049_v54 = vadd.f32 %v10435_v22, %v6047_v36  ;;  %v6120_v35 = vadd.f32 %v6119_v10, %v6118_v31  ;;  %v10628_v50 = vadd.f32 %v7061_v20, %v10228_v19  ;;  %v5949_v22 = vld [vmem:[%s11081_s8 + $0xa0] sm:$0xff]  ;;  %v11476_v19 = vld [vmem:[#allocation70_spill] sm:$0xff] }
 0x433   :  { %v6121_v62 = vsel %vm4486_vm5, %v6007_v44, 0.0  ;;  %v11208_v16 = vmax.f32 %v10608_v27, 0.0  ;;  %v11206_v41 = vmax.f32 %v10623_v59, 0.0  ;;  %v10634_v45 = vadd.f32 %v5805_v46, %v11475_v17 }
 0x434   :  { %11474 = vst [vmem:[#allocation56_spill] sm:$0xff] %v10628_v50  ;;  %v5983_v47 = vmul.f32 %v10616_v8, %v11205_v56  ;;  %v11212_v36 = vmax.f32 %v11476_v19, 0.0  ;;  %v6051_v31 = vadd.f32 %v6050_v15, %v6049_v54  ;;  %v6122_v53 = vadd.f32 %v6121_v62, %v6120_v35  ;;  %v5950_v56 = vld [vmem:[%s11081_s8 + $0xa8] sm:$0xff] }
 0x435   :  { %v6123_v44 = vsel %vm4486_vm5, %v6008_v37, 0.0  ;;  %v6009_v10 = vmul.f32 %v10538_v58, %v11206_v41  ;;  %v11214_v20 = vmax.f32 %v10628_v50, 0.0  ;;  %v11209_v46 = vmax.f32 %v10634_v45, 0.0 }
 0x436   :  { %v6058_v17 = vsel %vm4486_vm5, %v5978_v48, 0.0  ;;  %v11215_v61 = vmax.f32 %v11477_v63, 0.0  ;;  %v6053_v15 = vadd.f32 %v10418_v21, %v6051_v31  ;;  %v6124_v54 = vadd.f32 %v6123_v44, %v6122_v53  ;;  %v7064_v62 = vpop.f32.mrb[164].mxu1  ;;  %v11478_v31 = vld [vmem:[#allocation33_spill] sm:$0xff] }
 0x437   :  { %v5981_v37 = vmul.f32 %v5949_v22, %v11210_v33  ;;  %v6011_v58 = vmul.f32 %v10509_v42, %v11208_v16  ;;  %v6125_v35 = vsel %vm4486_vm5, %v6009_v10, 0.0  ;;  %v6010_v48 = vmul.f32 %v5946_v43, %v11209_v46  ;;  %v5818_v44 = vpop.f32.mrb[165].mxu1  ;;  %v5952_v42 = vld [vmem:[%s11081_s8 + $0xb8] sm:$0xff]  ;;  %v11480_v16 = vld [vmem:[#allocation31_spill] sm:$0xff]  ;;  %v11483_v46 = vld [vmem:[#allocation34_spill] sm:$0xff] }
 0x438   :  { %v10664_v41 = vsel %vm4486_vm5, %v5983_v47, 0.0  ;;  %v6055_v3 = vadd.f32 %v10528_v30, %v6053_v15  ;;  %v6126_v21 = vadd.f32 %v6125_v35, %v6124_v54  ;;  %v10668_v53 = vadd.f32 %v7064_v62, %v11478_v31  ;;  %v7065_v15 = vpop.f32.mrb[166].mxu1  ;;  %v11482_v54 = vld [vmem:[#allocation27_spill] sm:$0xff] }
 0x439   :  { %v5982_v10 = vmul.f32 %v5950_v56, %v11212_v36  ;;  %v6012_v43 = vmul.f32 %v10558_v12, %v11214_v20  ;;  %v6127_v47 = vsel %vm4486_vm5, %v6010_v48, 0.0  ;;  %v10680_v30 = vadd.f32 %v5818_v44, %v11480_v16  ;;  %v5821_v28 = vpop.f32.mrb[167].mxu1  ;;  %v11485_v20 = vld [vmem:[#allocation32_spill] sm:$0xff] }
 0x43a   :  { %11479 = vst [vmem:[#allocation57_spill] sm:$0xff] %v10668_v53  ;;  %v11217_v35 = vmax.f32 %v11482_v54, 0.0  ;;  %v6057_v62 = vadd.f32 %v6056_v26, %v6055_v3  ;;  %v6128_v31 = vadd.f32 %v6127_v47, %v6126_v21  ;;  %v10684_v33 = vadd.f32 %v7065_v15, %v11483_v46  ;;  %v5955_v3 = vld [vmem:[%s11081_s8 + $0xd0] sm:$0xff]  ;;  %v11491_v47 = vld [vmem:[#allocation29_spill] sm:$0xff] }
 0x43b   :  { %11481 = vst [vmem:[#allocation58_spill] sm:$0xff] %v10680_v30  ;;  %v6129_v36 = vsel %vm4486_vm5, %v6011_v58, 0.0  ;;  %v11216_v12 = vmax.f32 %v10680_v30, 0.0  ;;  %v10690_v48 = vadd.f32 %v5821_v28, %v11485_v20  ;;  %v6064_v16 = vsel %vm4486_vm5, %v5981_v37, 0.0  ;;  %v11487_v37 = vld [vmem:[#allocation28_spill] sm:$0xff] }
 0x43c   :  { %11484 = vst [vmem:[#allocation59_spill] sm:$0xff] %v10684_v33  ;;  %v5984_v44 = vmul.f32 %v5952_v42, %v11215_v61  ;;  %v6059_v26 = vadd.f32 %v6058_v17, %v6057_v62  ;;  %v6130_v46 = vadd.f32 %v6129_v36, %v6128_v31  ;;  %v6131_v58 = vsel %vm4486_vm5, %v6012_v43, 0.0  ;;  %v5953_v36 = vld [vmem:[%s11081_s8 + $0xc0] sm:$0xff] }
 0x43d   :  { %11486 = vst [vmem:[#allocation60_spill] sm:$0xff] %v10690_v48  ;;  %v6013_v21 = vmul.f32 %v5949_v22, %v11216_v12  ;;  %v11219_v28 = vmax.f32 %v10690_v48, 0.0  ;;  %v6066_v20 = vsel %vm4486_vm5, %v5982_v10, 0.0  ;;  %v5987_v17 = vmul.f32 %v5955_v3, %v11217_v35  ;;  %v11489_v12 = vld [vmem:[#allocation74_spill] sm:$0xff] }
 0x43e   :  { %v6061_v61 = vadd.f32 %v10593_v13, %v6059_v26  ;;  %v6132_v60 = vadd.f32 %v6131_v58, %v6130_v46  ;;  %v11488_v22 = vmax.f32 %v10668_v53, 0.0  ;;  %v7068_v31 = vpop.f32.mrb[168].mxu1  ;;  %v11490_v58 = vld [vmem:[#allocation46_spill] sm:$0xff] }
 0x43f   :  { %v6133_v62 = vsel %vm4486_vm5, %v6013_v21, 0.0  ;;  %v6014_v10 = vmul.f32 %v5950_v56, %v11219_v28  ;;  %v10720_v35 = vadd.f32 %v7068_v31, %v11490_v58  ;;  %v5834_v15 = vpop.f32.mrb[169].mxu1  ;;  %v11492_v21 = vmax.f32 %v10684_v33, 0.0  ;;  %v11493_v28 = vld [vmem:[#allocation42_spill] sm:$0xff]  ;;  %v11496_v58 = vld [vmem:[#allocation45_spill] sm:$0xff]  ;;  %v5956_v33 = vld [vmem:[%s11081_s8 + $0xd8] sm:$0xff] }
 0x440   :  { %v6015_v43 = vmul.f32 %v10616_v8, %v11488_v22  ;;  %v6063_v26 = vadd.f32 %v10611_v34, %v6061_v61  ;;  %v6134_v46 = vadd.f32 %v6133_v62, %v6132_v60  ;;  %v5954_v8 = vld [vmem:[%s11081_s8 + $0xc8] sm:$0xff]  ;;  %v10730_v13 = vadd.f32 %v5834_v15, %v11493_v28  ;;  %v7069_v61 = vpop.f32.mrb[170].mxu1  ;;  %v11498_v15 = vld [vmem:[#allocation39_spill] sm:$0xff] }
 0x441   :  { %v6016_v22 = vmul.f32 %v5952_v42, %v11492_v21  ;;  %v6135_v56 = vsel %vm4486_vm5, %v6014_v10, 0.0  ;;  %v11495_v60 = vmax.f32 %v11487_v37, 0.0  ;;  %v10735_v30 = vadd.f32 %v7069_v61, %v11496_v58  ;;  %v5837_v53 = vpop.f32.mrb[171].mxu1 }
 0x442   :  { %11494 = vst [vmem:[#allocation62_spill] sm:$0xff] %v10730_v13  ;;  %v6065_v62 = vadd.f32 %v6064_v16, %v6063_v26  ;;  %v6136_v31 = vadd.f32 %v6135_v56, %v6134_v46  ;;  %v6137_v42 = vsel %vm4486_vm5, %v6015_v43, 0.0  ;;  %v11224_v28 = vmax.f32 %v10730_v13, 0.0  ;;  %v11503_v43 = vld [vmem:[#allocation50_spill] sm:$0xff] }
 0x443   :  { %v5985_v34 = vmul.f32 %v5953_v36, %v11495_v60  ;;  %11497 = vst [vmem:[#allocation64_spill] sm:$0xff] %v10735_v30  ;;  %v10744_v21 = vadd.f32 %v5837_v53, %v11498_v15  ;;  %v6070_v16 = vsel %vm4486_vm5, %v5984_v44, 0.0  ;;  %v11499_v26 = vmax.f32 %v11489_v12, 0.0 }
 0x444   :  { %v6067_v56 = vadd.f32 %v6066_v20, %v6065_v62  ;;  %v6138_v61 = vadd.f32 %v6137_v42, %v6136_v31  ;;  %v6139_v60 = vsel %vm4486_vm5, %v6016_v22, 0.0  ;;  %v6017_v58 = vmul.f32 %v5953_v36, %v11224_v28 }
 0x445   :  { %v5986_v46 = vmul.f32 %v5954_v8, %v11499_v26  ;;  %v11226_v10 = vmax.f32 %v10744_v21, 0.0  ;;  %v6076_v48 = vsel %vm4486_vm5, %v5987_v17, 0.0  ;;  %v11500_v53 = vmax.f32 %v11491_v47, 0.0  ;;  %v11502_v26 = vld [vmem:[#allocation43_spill] sm:$0xff] }
 0x446   :  { %v6140_v44 = vadd.f32 %v6139_v60, %v6138_v61  ;;  %v6069_v50 = vadd.f32 %v10664_v41, %v6067_v56  ;;  %v6072_v20 = vsel %vm4486_vm5, %v5985_v34, 0.0  ;;  %v11501_v62 = vmax.f32 %v10720_v35, 0.0  ;;  %v7072_v42 = vpop.f32.mrb[172].mxu1 }
 0x447   :  { %v5988_v15 = vmul.f32 %v5956_v33, %v11500_v53  ;;  %v6141_v31 = vsel %vm4486_vm5, %v6017_v58, 0.0  ;;  %v6018_v36 = vmul.f32 %v5954_v8, %v11226_v10  ;;  %v10766_v13 = vadd.f32 %v7072_v42, %v11503_v43  ;;  %v5850_v61 = vpop.f32.mrb[173].mxu1  ;;  %v11506_v58 = vld [vmem:[#allocation48_spill] sm:$0xff] }
 0x448   :  { %v6019_v22 = vmul.f32 %v5955_v3, %v11501_v62  ;;  %v6142_v17 = vadd.f32 %v6141_v31, %v6140_v44  ;;  %v6071_v60 = vadd.f32 %v6070_v16, %v6069_v50  ;;  %v6074_v41 = vsel %vm4486_vm5, %v5986_v46, 0.0  ;;  %v5957_v3 = vld [vmem:[%s11081_s8 + $0xe0] sm:$0xff]  ;;  %v7073_v44 = vpop.f32.mrb[174].mxu1  ;;  %v11509_v42 = vld [vmem:[#allocation52_spill] sm:$0xff] }
 0x449   :  { %11504 = vst [vmem:[#allocation66_spill] sm:$0xff] %v10766_v13  ;;  %v11505_v34 = vmax.f32 %v10735_v30, 0.0  ;;  %v6143_v8 = vsel %vm4486_vm5, %v6018_v36, 0.0  ;;  %v10776_v53 = vadd.f32 %v5850_v61, %v11506_v58  ;;  %v11508_v62 = vld [vmem:[#allocation49_spill] sm:$0xff]  ;;  %v10780_v50 = vadd.f32 %v7073_v44, %v11509_v42  ;;  %v5853_v16 = vpop.f32.mrb[175].mxu1  ;;  %v11512_v61 = vld [vmem:[#allocation40_spill] sm:$0xff] }
 0x44a   :  { %v6144_v31 = vadd.f32 %v6143_v8, %v6142_v17  ;;  %v6073_v46 = vadd.f32 %v6072_v20, %v6071_v60  ;;  %v6145_v10 = vsel %vm4486_vm5, %v6019_v22, 0.0  ;;  %v11513_v30 = vmax.f32 %v11502_v26, 0.0  ;;  %v5958_v17 = vld [vmem:[%s11081_s8 + $0xe8] sm:$0xff] }
 0x44b   :  { %v6020_v56 = vmul.f32 %v5956_v33, %v11505_v34  ;;  %11507 = vst [vmem:[#allocation71_spill] sm:$0xff] %v10776_v53  ;;  %11510 = vst [vmem:[#allocation68_spill] sm:$0xff] %v10780_v50  ;;  %v11228_v33 = vmax.f32 %v10776_v53, 0.0  ;;  %v11511_v34 = vld [vmem:[#allocation51_spill] sm:$0xff] }
 0x44c   :  { %v10786_v36 = vadd.f32 %v5853_v16, %v11511_v34  ;;  %v5989_v43 = vmul.f32 %v5957_v3, %v11513_v30  ;;  %v6146_v8 = vadd.f32 %v6145_v10, %v6144_v31  ;;  %v6075_v20 = vadd.f32 %v6074_v41, %v6073_v46  ;;  %v5959_v30 = vld [vmem:[%s11081_s8 + $0xf0] sm:$0xff] }
 0x44d   :  { %v6147_v22 = vsel %vm4486_vm5, %v6020_v56, 0.0  ;;  %v6021_v60 = vmul.f32 %v5957_v3, %v11228_v33  ;;  %v6078_v16 = vsel %vm4486_vm5, %v5988_v15, 0.0  ;;  %v11514_v34 = vld [vmem:[#allocation47_spill] sm:$0xff]  ;;  %v11515_v41 = vmax.f32 %v11508_v62, 0.0  ;;  %v5960_v15 = vld [vmem:[%s11081_s8 + $0xf8] sm:$0xff] }
 0x44e   :  { %v11230_v42 = vmax.f32 %v10786_v36, 0.0  ;;  %v6148_v28 = vadd.f32 %v6147_v22, %v6146_v8  ;;  %v6077_v10 = vadd.f32 %v6076_v48, %v6075_v20  ;;  %v11516_v31 = vmax.f32 %v10766_v13, 0.0 }
 0x44f   :  { %v5990_v56 = vmul.f32 %v5958_v17, %v11515_v41  ;;  %v6149_v46 = vsel %vm4486_vm5, %v6021_v60, 0.0  ;;  %v11517_v8 = vmax.f32 %v11512_v61, 0.0  ;;  %v6080_v20 = vsel %vm4486_vm5, %v5989_v43, 0.0 }
 0x450   :  { %v6023_v3 = vmul.f32 %v5959_v30, %v11516_v31  ;;  %v6022_v33 = vmul.f32 %v5958_v17, %v11230_v42  ;;  %v6150_v44 = vadd.f32 %v6149_v46, %v6148_v28  ;;  %v6079_v53 = vadd.f32 %v6078_v16, %v6077_v10 }
 0x451   :  { %v5991_v48 = vmul.f32 %v5959_v30, %v11517_v8  ;;  %v11518_v22 = vmax.f32 %v10780_v50, 0.0  ;;  %v11519_v17 = vmax.f32 %v11514_v34, 0.0  ;;  %v6082_v13 = vsel %vm4486_vm5, %v5990_v56, 0.0 }
 0x452   :  { %v6151_v31 = vsel %vm4486_vm5, %v6022_v33, 0.0  ;;  %v6081_v58 = vadd.f32 %v6080_v20, %v6079_v53  ;;  %v6153_v28 = vsel %vm4486_vm5, %v6023_v3, 0.0 }
 0x453   :  { %v6024_v41 = vmul.f32 %v5960_v15, %v11518_v22  ;;  %v6152_v60 = vadd.f32 %v6151_v31, %v6150_v44  ;;  %v5992_v42 = vmul.f32 %v5960_v15, %v11519_v17  ;;  %v6084_v30 = vsel %vm4486_vm5, %v5991_v48, 0.0  ;;  %v6244_v48 = vld [vmem:[%s11083_s10] sm:$0xff]  ;;  %s7285_s10 = smov [#allocation2]  }
 0x454   :  { %v6083_v10 = vadd.f32 %v6082_v13, %v6081_v58  ;;  %s6491_s27 = sshll.u32 %s7285_s10, 4  ;;  %s6492_s27 = int_to_ptr.vmem [resolvable:$true] %s6491_s27 }
 0x455   :  { %v6154_v16 = vadd.f32 %v6153_v28, %v6152_v60  ;;  %v6155_v43 = vsel %vm4486_vm5, %v6024_v41, 0.0  ;;  %v6086_v22 = vsel %vm4486_vm5, %v5992_v42, 0.0  ;;  %v11520_v42 = vmov 0.0   ;;  %s7252_s28 = scalar_lea.vmem %s6492_s27, 8192  ;;  %p7257_p1 = scmp.lt.s32.totalorder %s6492_s27, %s6492_s27 }
 0x456   :  { %v6085_v8 = vadd.f32 %v6084_v30, %v6083_v10  ;;  %p7253_p0 = scmp.ne.s32.totalorder %s6492_s27, %s7252_s28  ;;  %p7258_p2 = scmp.lt.s32.totalorder %s7252_s28, %s7252_s28 }
 0x457   :  { %v6156_v46 = vadd.f32 %v6155_v43, %v6154_v16 }
 0x458   :  { %v6087_v44 = vadd.f32 %v6086_v22, %v6085_v8  ;;  %v7284_v22 = vmov 1966171168   ;;  %p7259_p3 = por %p7258_p2, %p7257_p1 }
 0x459   :  { %v6157_v33 = vrot.slane %v6156_v46, 4 }
 0x45a   :  { %v6088_v20 = vrot.slane %v6087_v44, 4  ;;  %p7260_p4 = pnand %p7259_p3, %p7253_p0 }
 0x45b   :  { %v6158_v53 = vadd.f32 %v6157_v33, %v6156_v46  ;;  %v6327_v33 = vunpack.c.l.s4 %v7284_v22  ;;  %v11529_v22 = vmax.f32 %v10334_v0, 0.0 }
 0x45c   :  { %v6089_v15 = vadd.f32 %v6088_v20, %v6087_v44 }
 0x45d   :  { %v6159_v31 = vrot.slane %v6158_v53, 2  ;;  %v6328_v44 = vunpack.c.0.s8 %v6327_v33 }
 0x45e   :  { %v6090_v56 = vrot.slane %v6089_v15, 2 }
 0x45f   :  { %v6160_v17 = vadd.f32 %v6159_v31, %v6158_v53  ;;  %v11521_v53 = vld [vmem:[#allocation36_spill] sm:$0xff] }
 0x460   :  { %v6091_v50 = vadd.f32 %v6090_v56, %v6089_v15  ;;  %v6331_v20 = vsub.s32 %v6328_v44, %v11521_v53  ;;  %v11530_v44 = vmax.f32 %v10358_v4, 0.0  ;;  %v11539_v4 = vld [vmem:[#allocation22_spill] sm:$0xff] }
 0x461   :  { %v6161_v3 = vrot.slane %v6160_v17, 1  ;;  %v11540_v0 = vmax.f32 %v11539_v4, 0.0 }
 0x462   :  { %v6092_v60 = vrot.slane %v6091_v50, 1 }
 0x463   :  { %v6162_v13 = vadd.f32 %v6161_v3, %v6160_v17  ;;  %v6350_v17 = vsub.s32 0, %v11521_v53 }
 0x464   :  { %v6093_v58 = vadd.f32 %v6092_v60, %v6091_v50 }
 0x466   :  { %v6170_v41 = vsel %vm6169_vm8, %v6162_v13, %v6093_v58 }
 0x467   :  { %7083 = vmatmul.mubr.msk.f32.vlgmr.msra.gmra.mrb[196].mxu0 %vm4486_vm5, %v6170_v41 }
 0x468   :  { %7086 = vmatpush3.msra.mxu0 %v6244_v48  ;;  %7087 = vmatprep.mubr.msk.f32.mxu0 %vm7277_vm0, %v11520_v42  ;;  %v11522_v48 = vld [vmem:[#allocation24_spill] sm:$0xff] }
 0x469   :  { %v11523_v41 = vmax.f32 %v11522_v48, 0.0  ;;  %v11535_v48 = vld [vmem:[#allocation23_spill] sm:$0xff] }
 0x53a   :  { %v6239_v28 = vpop.f32.mrb[196].mxu0 }
 0x53b   :  { %v6243_v16 = vmax.f32 %v6239_v28, 0.0  ;;  %v7084_v10 = vpop.f32.mrb[197].mxu0  ;;  %v11524_v28 = vld [vmem:[#allocation25_spill] sm:$0xff] }
 0x53d   :  { %7088 = vmatmul.mubr.msk.f32.vlgmr.msra.gmra.mrb[198].mxu0 %vm6245_vm9, %v6243_v16  ;;  %v11525_v16 = vmax.f32 %v11524_v28, 0.0 }
 0x610   :  { %v6315_v30 = vpop.f32.mrb[198].mxu0 }
 0x611   :  { %v6727_v43 = vmul.f32 -1.442695, %v6315_v30  ;;  %v7089_v46 = vpop.f32.mrb[199].mxu0  ;;  %v11526_v30 = vld [vmem:[#allocation26_spill] sm:$0xff] }
 0x613   :  { %7242 = vpow2.f32 %v6727_v43  ;;  %v11527_v43 = vmax.f32 %v11526_v30, 0.0 }
 0x61d   :  { %v7243_v50 = vpop.eup %7242 }
 0x61e   :  { %v6322_v8 = vadd.f32 1.0, %v7243_v50  ;;  %v11528_v50 = vmax.f32 %v10136_v49, 0.0  ;;  %v11537_v49 = vld [vmem:[#allocation20_spill] sm:$0xff] }
 0x620   :  { %7244 = vrcp.f32 %v6322_v8 }
 0x62a   :  { %v7245_v31 = vpop.eup %7244 }
 0x62b   :  { %v6332_v15 = vrot.slane %v7245_v31, %v6331_v20 }
 0x62d   :  { %v6333_v56 = vcombine.high %v6332_v15, %v6332_v15  ;;  %v6340_v3 = vrot.slane %v6332_v15, %v6331_v20  ;;  %v11532_v15 = vmax.f32 %v10492_v18, 0.0  ;;  %v11541_v18 = vld [vmem:[#allocation72_spill] sm:$0xff] }
 0x62f   :  { %v6347_v60 = vrot.slane %v6333_v56, %v6331_v20  ;;  %v6351_v13 = vrot.slane %v6340_v3, %v6350_v17  ;;  %v11531_v20 = vmax.f32 %v10477_v2, 0.0  ;;  %v11533_v56 = vld [vmem:[#allocation21_spill] sm:$0xff] }
 0x630   :  { %v11534_v3 = vmax.f32 %v11533_v56, 0.0 }
 0x631   :  { %v10835_v58 = vrot.slane %v6347_v60, %v6350_v17  ;;  %v6358_v42 = vmul.f32 %v6351_v13, %v11523_v41  ;;  %v6359_v10 = vmul.f32 %v6351_v13, %v11525_v16  ;;  %v6360_v46 = vmul.f32 %v6351_v13, %v11527_v43 }
 0x632   :  { %v6361_v8 = vmul.f32 %v6351_v13, %v11528_v50  ;;  %v6362_v33 = vmul.f32 %v6351_v13, %v11529_v22  ;;  %v6363_v53 = vmul.f32 %v6351_v13, %v11530_v44  ;;  %v6364_v31 = vmul.f32 %v6351_v13, %v11531_v20  ;;  %v11544_v20 = vld [vmem:[#allocation63_spill] sm:$0xff] }
 0x633   :  { %v6365_v17 = vmul.f32 %v6351_v13, %v11532_v15  ;;  %v6366_v60 = vmul.f32 %v6351_v13, %v11534_v3  ;;  %v11536_v41 = vmax.f32 %v11535_v48, 0.0  ;;  %v11538_v16 = vmax.f32 %v11537_v49, 0.0  ;;  %6422 = vst.msk [vmem:[#allocation2] sm:$0xff] %vm4486_vm5, %v6358_v42  ;;  %6423 = vst.msk [vmem:[#allocation2 + $0x8] sm:$0xff] %vm4486_vm5, %v6359_v10 }
 0x634   :  { %6424 = vst.msk [vmem:[#allocation2 + $0x10] sm:$0xff] %vm4486_vm5, %v6360_v46  ;;  %v6369_v2 = vmul.f32 %v6351_v13, %v11540_v0  ;;  %v11542_v43 = vmax.f32 %v11541_v18, 0.0  ;;  %v11543_v22 = vmax.f32 %v10078_v52, 0.0  ;;  %v11545_v15 = vmax.f32 %v11544_v20, 0.0  ;;  %6425 = vst.msk [vmem:[#allocation2 + $0x18] sm:$0xff] %vm4486_vm5, %v6361_v8 }
 0x635   :  { %v6367_v28 = vmul.f32 %v6351_v13, %v11536_v41  ;;  %v6368_v30 = vmul.f32 %v6351_v13, %v11538_v16  ;;  %6426 = vst.msk [vmem:[#allocation2 + $0x20] sm:$0xff] %vm4486_vm5, %v6362_v33  ;;  %6427 = vst.msk [vmem:[#allocation2 + $0x28] sm:$0xff] %vm4486_vm5, %v6363_v53  ;;  %v11546_v42 = vmax.f32 %v10076_v1, 0.0  ;;  %v11547_v46 = vmax.f32 %v10096_v25, 0.0 }
 0x636   :  { %v6370_v50 = vmul.f32 %v6351_v13, %v11542_v43  ;;  %v6371_v44 = vmul.f32 %v6351_v13, %v11543_v22  ;;  %v6372_v56 = vmul.f32 %v6351_v13, %v11545_v15  ;;  %6428 = vst.msk [vmem:[#allocation2 + $0x30] sm:$0xff] %vm4486_vm5, %v6364_v31  ;;  %v11548_v52 = vmax.f32 %v10100_v39, 0.0  ;;  %6429 = vst.msk [vmem:[#allocation2 + $0x38] sm:$0xff] %vm4486_vm5, %v6365_v17  ;;  %v11563_v43 = vld [vmem:[#allocation67_spill] sm:$0xff] }
 0x637   :  { %v6373_v10 = vmul.f32 %v6351_v13, %v11546_v42  ;;  %v6374_v3 = vmul.f32 %v6351_v13, %v11547_v46  ;;  %v11549_v41 = vmax.f32 %v10092_v5, 0.0  ;;  %6430 = vst.msk [vmem:[#allocation2 + $0x40] sm:$0xff] %vm4486_vm5, %v6366_v60  ;;  %6431 = vst.msk [vmem:[#allocation2 + $0x48] sm:$0xff] %vm4486_vm5, %v6367_v28  ;;  %v11550_v1 = vmax.f32 %v10098_v9, 0.0  ;;  %v11571_v42 = vld [vmem:[#allocation55_spill] sm:$0xff] }
 0x638   :  { %v6375_v48 = vmul.f32 %v6351_v13, %v11548_v52  ;;  %6432 = vst.msk [vmem:[#allocation2 + $0x50] sm:$0xff] %vm4486_vm5, %v6368_v30  ;;  %v11551_v25 = vmax.f32 %v10112_v11, 0.0  ;;  %v11552_v39 = vmax.f32 %v11476_v19, 0.0  ;;  %v11553_v5 = vmax.f32 %v10108_v55, 0.0  ;;  %6433 = vst.msk [vmem:[#allocation2 + $0x58] sm:$0xff] %vm4486_vm5, %v6369_v2 }
 0x639   :  { %v6376_v49 = vmul.f32 %v6351_v13, %v11549_v41  ;;  %v6377_v8 = vmul.f32 %v6351_v13, %v11550_v1  ;;  %6434 = vst.msk [vmem:[#allocation2 + $0x60] sm:$0xff] %vm4486_vm5, %v6370_v50  ;;  %6435 = vst.msk [vmem:[#allocation2 + $0x68] sm:$0xff] %vm4486_vm5, %v6371_v44  ;;  %v11554_v9 = vmax.f32 %v11477_v63, 0.0  ;;  %v11555_v11 = vmax.f32 %v11487_v37, 0.0  ;;  %v11567_v44 = vld [vmem:[#allocation54_spill] sm:$0xff] }
 0x63a   :  { %v6378_v33 = vmul.f32 %v6351_v13, %v11551_v25  ;;  %v6379_v53 = vmul.f32 %v6351_v13, %v11552_v39  ;;  %v6380_v31 = vmul.f32 %v6351_v13, %v11553_v5  ;;  %6436 = vst.msk [vmem:[#allocation2 + $0x70] sm:$0xff] %vm4486_vm5, %v6372_v56  ;;  %v11556_v19 = vmax.f32 %v11489_v12, 0.0  ;;  %6437 = vst.msk [vmem:[#allocation2 + $0x78] sm:$0xff] %vm4486_vm5, %v6373_v10 }
 0x63b   :  { %v6381_v17 = vmul.f32 %v6351_v13, %v11554_v9  ;;  %v6382_v60 = vmul.f32 %v6351_v13, %v11555_v11  ;;  %v11557_v55 = vmax.f32 %v11482_v54, 0.0  ;;  %6438 = vst.msk [vmem:[#allocation2 + $0x80] sm:$0xff] %vm4486_vm5, %v6374_v3  ;;  %6439 = vst.msk [vmem:[#allocation2 + $0x88] sm:$0xff] %vm4486_vm5, %v6375_v48  ;;  %v11558_v63 = vmax.f32 %v11491_v47, 0.0 }
 0x63c   :  { %v6383_v28 = vmul.f32 %v6351_v13, %v11556_v19  ;;  %6440 = vst.msk [vmem:[#allocation2 + $0x90] sm:$0xff] %vm4486_vm5, %v6376_v49  ;;  %v11559_v37 = vmax.f32 %v11502_v26, 0.0  ;;  %v11560_v12 = vmax.f32 %v11508_v62, 0.0  ;;  %v11561_v54 = vmax.f32 %v11512_v61, 0.0  ;;  %6441 = vst.msk [vmem:[#allocation2 + $0x98] sm:$0xff] %vm4486_vm5, %v6377_v8  ;;  %v11565_v62 = vld [vmem:[#allocation53_spill] sm:$0xff] }
 0x63d   :  { %v6384_v16 = vmul.f32 %v6351_v13, %v11557_v55  ;;  %v6385_v30 = vmul.f32 %v6351_v13, %v11558_v63  ;;  %6442 = vst.msk [vmem:[#allocation2 + $0xa0] sm:$0xff] %vm4486_vm5, %v6378_v33  ;;  %6443 = vst.msk [vmem:[#allocation2 + $0xa8] sm:$0xff] %vm4486_vm5, %v6379_v53  ;;  %v11562_v47 = vmax.f32 %v11514_v34, 0.0  ;;  %v11564_v26 = vmax.f32 %v11563_v43, 0.0  ;;  %v11569_v34 = vld [vmem:[#allocation69_spill] sm:$0xff] }
 0x63e   :  { %v6386_v4 = vmul.f32 %v6351_v13, %v11559_v37  ;;  %v6387_v0 = vmul.f32 %v6351_v13, %v11560_v12  ;;  %v6388_v2 = vmul.f32 %v6351_v13, %v11561_v54  ;;  %6444 = vst.msk [vmem:[#allocation2 + $0xb0] sm:$0xff] %vm4486_vm5, %v6380_v31  ;;  %v11566_v22 = vmax.f32 %v11565_v62, 0.0  ;;  %6445 = vst.msk [vmem:[#allocation2 + $0xb8] sm:$0xff] %vm4486_vm5, %v6381_v17  ;;  %v11593_v37 = vld [vmem:[#allocation57_spill] sm:$0xff] }
 0x63f   :  { %v6389_v18 = vmul.f32 %v6351_v13, %v11562_v47  ;;  %v6390_v50 = vmul.f32 %v10835_v58, %v11564_v26  ;;  %v11568_v20 = vmax.f32 %v11567_v44, 0.0  ;;  %6446 = vst.msk [vmem:[#allocation2 + $0xc0] sm:$0xff] %vm4486_vm5, %v6382_v60  ;;  %6447 = vst.msk [vmem:[#allocation2 + $0xc8] sm:$0xff] %vm4486_vm5, %v6383_v28  ;;  %v11570_v13 = vmax.f32 %v11569_v34, 0.0  ;;  %v11589_v28 = vld [vmem:[#allocation58_spill] sm:$0xff] }
 0x640   :  { %v6391_v61 = vmul.f32 %v10835_v58, %v11566_v22  ;;  %6448 = vst.msk [vmem:[#allocation2 + $0xd0] sm:$0xff] %vm4486_vm5, %v6384_v16  ;;  %v11572_v10 = vmax.f32 %v11571_v42, 0.0  ;;  %v11573_v3 = vmax.f32 %v10461_v57, 0.0  ;;  %v11574_v48 = vmax.f32 %v10439_v14, 0.0  ;;  %6449 = vst.msk [vmem:[#allocation2 + $0xd8] sm:$0xff] %vm4486_vm5, %v6385_v30  ;;  %v11591_v16 = vld [vmem:[#allocation60_spill] sm:$0xff] }
 0x641   :  { %v6392_v15 = vmul.f32 %v10835_v58, %v11568_v20  ;;  %v6393_v56 = vmul.f32 %v10835_v58, %v11570_v13  ;;  %6450 = vst.msk [vmem:[#allocation2 + $0xe0] sm:$0xff] %vm4486_vm5, %v6386_v4  ;;  %6451 = vst.msk [vmem:[#allocation2 + $0xe8] sm:$0xff] %vm4486_vm5, %v6387_v0  ;;  %v11575_v49 = vmax.f32 %v10451_v29, 0.0  ;;  %v11576_v57 = vmax.f32 %v10495_v51, 0.0  ;;  %v11595_v0 = vld [vmem:[#allocation59_spill] sm:$0xff]  ;;  %v11597_v47 = vld [vmem:[#allocation62_spill] sm:$0xff] }
 0x642   :  { %v6394_v46 = vmul.f32 %v10835_v58, %v11572_v10  ;;  %v6395_v52 = vmul.f32 %v10835_v58, %v11573_v3  ;;  %v6396_v41 = vmul.f32 %v10835_v58, %v11574_v48  ;;  %6452 = vst.msk [vmem:[#allocation2 + $0xf0] sm:$0xff] %vm4486_vm5, %v6388_v2  ;;  %v11577_v14 = vmax.f32 %v10515_v6, 0.0  ;;  %6453 = vst.msk [vmem:[#allocation2 + $0xf8] sm:$0xff] %vm4486_vm5, %v6389_v18 }
 0x643   :  { %v6397_v1 = vmul.f32 %v10835_v58, %v11575_v49  ;;  %v6398_v8 = vmul.f32 %v10835_v58, %v11576_v57  ;;  %v11578_v33 = vmax.f32 %v10488_v40, 0.0  ;;  %6454 = vst.msk [vmem:[#allocation2 + $0x100] sm:$0xff] %vm4486_vm5, %v6390_v50  ;;  %6455 = vst.msk [vmem:[#allocation2 + $0x108] sm:$0xff] %vm4486_vm5, %v6391_v61  ;;  %v11579_v29 = vmax.f32 %v10501_v32, 0.0  ;;  %v11601_v61 = vld [vmem:[#allocation64_spill] sm:$0xff] }
 0x644   :  { %v6399_v25 = vmul.f32 %v10835_v58, %v11577_v14  ;;  %6456 = vst.msk [vmem:[#allocation2 + $0x110] sm:$0xff] %vm4486_vm5, %v6392_v15  ;;  %v11580_v6 = vmax.f32 %v10565_v24, 0.0  ;;  %v11581_v40 = vmax.f32 %v10576_v38, 0.0  ;;  %v11582_v31 = vmax.f32 %v10550_v7, 0.0  ;;  %6457 = vst.msk [vmem:[#allocation2 + $0x118] sm:$0xff] %vm4486_vm5, %v6393_v56  ;;  %v11603_v15 = vld [vmem:[#allocation71_spill] sm:$0xff] }
 0x645   :  { %v6400_v39 = vmul.f32 %v10835_v58, %v11578_v33  ;;  %v6401_v51 = vmul.f32 %v10835_v58, %v11579_v29  ;;  %6458 = vst.msk [vmem:[#allocation2 + $0x120] sm:$0xff] %vm4486_vm5, %v6394_v46  ;;  %6459 = vst.msk [vmem:[#allocation2 + $0x128] sm:$0xff] %vm4486_vm5, %v6395_v52  ;;  %v11583_v32 = vmax.f32 %v10570_v23, 0.0  ;;  %v11584_v38 = vmax.f32 %v10623_v59, 0.0  ;;  %v11587_v23 = vld [vmem:[#allocation56_spill] sm:$0xff]  ;;  %v11606_v56 = vld [vmem:[#allocation66_spill] sm:$0xff] }
 0x646   :  { %v6402_v53 = vmul.f32 %v10835_v58, %v11580_v6  ;;  %v6403_v5 = vmul.f32 %v10835_v58, %v11581_v40  ;;  %v6404_v9 = vmul.f32 %v10835_v58, %v11582_v31  ;;  %6460 = vst.msk [vmem:[#allocation2 + $0x130] sm:$0xff] %vm4486_vm5, %v6396_v41  ;;  %v11585_v7 = vmax.f32 %v10634_v45, 0.0  ;;  %6461 = vst.msk [vmem:[#allocation2 + $0x138] sm:$0xff] %vm4486_vm5, %v6397_v1  ;;  %v11608_v46 = vld [vmem:[#allocation68_spill] sm:$0xff] }
 0x647   :  { %v6405_v24 = vmul.f32 %v10835_v58, %v11583_v32  ;;  %v6406_v17 = vmul.f32 %v10835_v58, %v11584_v38  ;;  %v11586_v60 = vmax.f32 %v10608_v27, 0.0  ;;  %6462 = vst.msk [vmem:[#allocation2 + $0x140] sm:$0xff] %vm4486_vm5, %v6398_v8  ;;  %6463 = vst.msk [vmem:[#allocation2 + $0x148] sm:$0xff] %vm4486_vm5, %v6399_v25  ;;  %v11588_v59 = vmax.f32 %v11587_v23, 0.0 }
 0x648   :  { %v6407_v11 = vmul.f32 %v10835_v58, %v11585_v7  ;;  %6464 = vst.msk [vmem:[#allocation2 + $0x150] sm:$0xff] %vm4486_vm5, %v6400_v39  ;;  %v11590_v55 = vmax.f32 %v11589_v28, 0.0  ;;  %v11592_v63 = vmax.f32 %v11591_v16, 0.0  ;;  %v11594_v4 = vmax.f32 %v11593_v37, 0.0  ;;  %6465 = vst.msk [vmem:[#allocation2 + $0x158] sm:$0xff] %vm4486_vm5, %v6401_v51 }
 0x649   :  { %v6408_v19 = vmul.f32 %v10835_v58, %v11586_v60  ;;  %v6409_v45 = vmul.f32 %v10835_v58, %v11588_v59  ;;  %6466 = vst.msk [vmem:[#allocation2 + $0x160] sm:$0xff] %vm4486_vm5, %v6402_v53  ;;  %6467 = vst.msk [vmem:[#allocation2 + $0x168] sm:$0xff] %vm4486_vm5, %v6403_v5  ;;  %v11596_v54 = vmax.f32 %v11595_v0, 0.0  ;;  %v11598_v18 = vmax.f32 %v11597_v47, 0.0 }
 0x64a   :  { %v6410_v27 = vmul.f32 %v10835_v58, %v11590_v55  ;;  %v6411_v30 = vmul.f32 %v10835_v58, %v11592_v63  ;;  %v6412_v12 = vmul.f32 %v10835_v58, %v11594_v4  ;;  %6468 = vst.msk [vmem:[#allocation2 + $0x170] sm:$0xff] %vm4486_vm5, %v6404_v9  ;;  %v11599_v26 = vmax.f32 %v10744_v21, 0.0  ;;  %6469 = vst.msk [vmem:[#allocation2 + $0x178] sm:$0xff] %vm4486_vm5, %v6405_v24 }
 0x64b   :  { %v6413_v2 = vmul.f32 %v10835_v58, %v11596_v54  ;;  %v6414_v43 = vmul.f32 %v10835_v58, %v11598_v18  ;;  %v11600_v62 = vmax.f32 %v10720_v35, 0.0  ;;  %6470 = vst.msk [vmem:[#allocation2 + $0x180] sm:$0xff] %vm4486_vm5, %v6406_v17  ;;  %6471 = vst.msk [vmem:[#allocation2 + $0x188] sm:$0xff] %vm4486_vm5, %v6407_v11  ;;  %v11602_v44 = vmax.f32 %v11601_v61, 0.0 }
 0x64c   :  { %v6415_v50 = vmul.f32 %v10835_v58, %v11599_v26  ;;  %6472 = vst.msk [vmem:[#allocation2 + $0x190] sm:$0xff] %vm4486_vm5, %v6408_v19  ;;  %v11604_v21 = vmax.f32 %v11603_v15, 0.0  ;;  %v11605_v35 = vmax.f32 %v10786_v36, 0.0  ;;  %v11607_v42 = vmax.f32 %v11606_v56, 0.0  ;;  %6473 = vst.msk [vmem:[#allocation2 + $0x198] sm:$0xff] %vm4486_vm5, %v6409_v45 }
 0x64d   :  { %v6416_v22 = vmul.f32 %v10835_v58, %v11600_v62  ;;  %v6417_v20 = vmul.f32 %v10835_v58, %v11602_v44  ;;  %6474 = vst.msk [vmem:[#allocation2 + $0x1a0] sm:$0xff] %vm4486_vm5, %v6410_v27  ;;  %6475 = vst.msk [vmem:[#allocation2 + $0x1a8] sm:$0xff] %vm4486_vm5, %v6411_v30  ;;  %v11609_v3 = vmax.f32 %v11608_v46, 0.0 }
 0x64e   :  { %v6418_v34 = vmul.f32 %v10835_v58, %v11604_v21  ;;  %v6419_v13 = vmul.f32 %v10835_v58, %v11605_v35  ;;  %v6420_v10 = vmul.f32 %v10835_v58, %v11607_v42  ;;  %6476 = vst.msk [vmem:[#allocation2 + $0x1b0] sm:$0xff] %vm4486_vm5, %v6412_v12  ;;  %6477 = vst.msk [vmem:[#allocation2 + $0x1b8] sm:$0xff] %vm4486_vm5, %v6413_v2 }
 0x64f   :  { %v6421_v52 = vmul.f32 %v10835_v58, %v11609_v3  ;;  %6478 = vst.msk [vmem:[#allocation2 + $0x1c0] sm:$0xff] %vm4486_vm5, %v6414_v43  ;;  %6479 = vst.msk [vmem:[#allocation2 + $0x1c8] sm:$0xff] %vm4486_vm5, %v6415_v50 }
 0x650   :  { %6480 = vst.msk [vmem:[#allocation2 + $0x1d0] sm:$0xff] %vm4486_vm5, %v6416_v22  ;;  %6481 = vst.msk [vmem:[#allocation2 + $0x1d8] sm:$0xff] %vm4486_vm5, %v6417_v20 }
 0x651   :  { %6482 = vst.msk [vmem:[#allocation2 + $0x1e0] sm:$0xff] %vm4486_vm5, %v6418_v34  ;;  %6483 = vst.msk [vmem:[#allocation2 + $0x1e8] sm:$0xff] %vm4486_vm5, %v6419_v13 }
 0x652   :  { %6484 = vst.msk [vmem:[#allocation2 + $0x1f0] sm:$0xff] %vm4486_vm5, %v6420_v10  ;;  %6485 = vst.msk [vmem:[#allocation2 + $0x1f8] sm:$0xff] %vm4486_vm5, %v6421_v52 }
 0x653   :  { %7263 = shalt.err (!%p7260_p4)
}
 0x654   :  { %s7264_s30 = scalar_lea.hbm %s11084_s11, 8192 }
 0x655   :  { %p7265_p5 = scmp.ne.s32.totalorder %s11084_s11, %s7264_s30  ;;  %p7268_p6 = scmp.lt.u32.totalorder %s7264_s30, %s11084_s11 }
 0x657   :  { %p7270_p7 = pnand %p7268_p6, %p7265_p5 }
 0x659   :  { %7273 = shalt.err (!%p7270_p7)
}
 0x65a   :  { %s7286_s1 = smov 128   ;;  %s7287_s2 = smov 8  }
 0x65b   :  { %6497 = dma.vmem_to_hbm [thread:$0]  %s6492_s27, 8192, %s11084_s11, [#allocation3], %s7286_s1, %s7286_s1, %s7287_s2  }
 0x65c   :  { %7274 = dma.done.wait [#allocation3], 8192  }
 0x65d   :  { %7275 = vsyncadd [#allocation3], 4294959104 }
 0x65e   :  { %6501 = vsyncpa [#allocation3], 1 }

</bundles_post_ra>
